<compile_context>
chip_gen: v7x
topology: tpu7x:2x2x1
jax: 0.10.0
libtpu: 0.0.40
codegen_flags: <defaults>
</compile_context>

<pallas_src>
import functools

import jax
import jax.numpy as jnp
from jax.experimental import pallas as pl
from jax.experimental.pallas import tpu as pltpu


def _lr_kernel(psf_ref, mask_ref, x_ref, out_ref, *, k, p, iterations, clip):
    """One grid step processes one lane-packed strip of images.

    psf_ref  : (k, k)      f32 SMEM  -- PSF taps (scalar reads, hoisted)
    mask_ref : (Hs, Ws)    f32 VMEM  -- 1.0 at real pixels, 0.0 at any padding
    x_ref    : (1, Hs, Ws) f32 VMEM  -- packed, zero-padded input strip
    out_ref  : (1, Hs, Ws) f32 VMEM  -- packed, zero-padded output strip
    """
    Hs = x_ref.shape[1]
    Ws = x_ref.shape[2]

    # Hoist all k*k scalar tap reads (and their scalar->vector broadcasts) out of
    # the conv / iteration loops; JAX does not CSE repeated SMEM reads.
    taps = [[psf_ref[i, j] for j in range(k)] for i in range(k)]
    taps_m = [[taps[k - 1 - i][k - 1 - j] for j in range(k)] for i in range(k)]

    mask = mask_ref[...]
    interior = mask > 0.0
    x = x_ref[0]

    def conv_same(src, t):
        # `src` is exactly zero at every non-pixel position (per-image borders,
        # inter-image separators, alignment padding), so rotating the whole strip
        # (pltpu.roll wraps around) reproduces the zero-padded "same"
        # cross-correlation exactly at every real pixel; wrap-around garbage lands
        # only on non-pixel positions, which are re-masked before ever being used.
        lane_rolled = [
            src if dj == p else pltpu.roll(src, shift=(p - dj) % Ws, axis=1)
            for dj in range(k)
        ]
        acc = None
        for di in range(k):
            row = None
            for dj in range(k):
                term = t[di][dj] * lane_rolled[dj]
                row = term if row is None else row + term
            if di != p:
                row = pltpu.roll(row, shift=(p - di) % Hs, axis=0)
            acc = row if acc is None else acc + row
        return acc

    im = 0.5 * mask  # 0.5 at real pixels, 0 elsewhere (zero-padding invariant)
    for _ in range(iterations):
        convolved = conv_same(im, taps)
        # x / convolved via EUP approximate reciprocal + Newton refinement
        # (moves the divide off the VALU; 2 steps keep the error at f32 level).
        inv = pl.reciprocal(convolved, approx=True)
        for _ in range(2):
            inv = inv * (2.0 - convolved * inv)
        relative_blur = jnp.where(interior, x * inv, 0.0)
        im = jnp.where(interior, im * conv_same(relative_blur, taps_m), 0.0)

    if clip:
        im = jnp.clip(im, -1.0, 1.0)
    out_ref[0] = im


def lucy_richardson(x, psf, *, iterations=4, clip=True):
    """x: (N, C, H, W), psf: (k, k). Returns (N, C, H, W) f32."""
    N, C, H, W = x.shape
    k = psf.shape[0]
    p = (k - 1) // 2
    Hp, Wp = H + 2 * p, W + 2 * p
    M = N * C

    # Lane-dense packing: G padded images per strip along the lane axis, strip
    # rounded up to (8, 128) alignment.  G is capped so each array stays a few
    # vregs (keeps register pressure low).
    # TODO(synk): spatially tile very large images with a 2*p*iterations halo so
    # one strip always fits scoped VMEM (especially v7x's 64 MiB).
    G = max(1, min(M, 128 // Wp)) if Wp <= 128 else 1
    S = -(-M // G)                      # number of strips == grid steps
    Hs = -(-Hp // 8) * 8                # sublane-aligned strip height
    Ws = -(-(G * Wp) // 128) * 128      # lane-aligned strip width

    xf = x.reshape(M, H, W).astype(jnp.float32)
    if S * G > M:  # pad batch with dummy images (0.5 keeps all convs positive)
        xf = jnp.concatenate(
            [xf, jnp.full((S * G - M, H, W), 0.5, jnp.float32)], axis=0)
    xpad = jnp.pad(xf, ((0, 0), (p, Hs - H - p), (p, Wp - W - p)))
    xs = (xpad.reshape(S, G, Hs, Wp).transpose(0, 2, 1, 3)
          .reshape(S, Hs, G * Wp))
    xs = jnp.pad(xs, ((0, 0), (0, 0), (0, Ws - G * Wp)))

    # Interior (real-pixel) mask, identical for every strip.
    mask = jnp.pad(jnp.ones((H, W), jnp.float32),
                   ((p, Hs - H - p), (p, Wp - W - p)))
    mask = jnp.pad(jnp.tile(mask, (1, G)), ((0, 0), (0, Ws - G * Wp)))

    kernel = functools.partial(_lr_kernel, k=k, p=p,
                               iterations=iterations, clip=clip)

    out = pl.pallas_call(
        kernel,
        out_shape=jax.ShapeDtypeStruct((S, Hs, Ws), jnp.float32),
        grid=(S,),
        in_specs=[
            pl.BlockSpec(memory_space=pltpu.MemorySpace.SMEM),   # PSF taps
            pl.BlockSpec((Hs, Ws), lambda s: (0, 0)),            # pixel mask
            pl.BlockSpec((1, Hs, Ws), lambda s: (s, 0, 0)),      # packed strips
        ],
        out_specs=pl.BlockSpec((1, Hs, Ws), lambda s: (s, 0, 0)),
        compiler_params=pltpu.CompilerParams(
            dimension_semantics=("parallel",),   # strips are independent (v7x 2 TCs)
            vmem_limit_bytes=32 * 1024 * 1024,
        ),
    )(psf.astype(jnp.float32), mask, xs)

    # Unpack strips back to (N, C, H, W).
    out = (out[:, :, :G * Wp].reshape(S, Hs, G, Wp).transpose(0, 2, 1, 3)
           .reshape(S * G, Hs, Wp))[:M, p:p + H, p:p + W]
    return out.reshape(N, C, H, W)


def lucy_richardson_ref(x, psf, *, iterations=4, clip=True):
    """Pure-JAX reference matching the PyTorch forward exactly."""
    k = psf.shape[0]
    p = (k - 1) // 2
    w = psf.astype(jnp.float32)[None, None]              # (1,1,k,k) OIHW
    wm = psf[::-1, ::-1].astype(jnp.float32)[None, None]
    dn = jax.lax.conv_dimension_numbers(x.shape, w.shape, ("NCHW", "OIHW", "NCHW"))

    def conv(a, kern):
        return jax.lax.conv_general_dilated(
            a, kern, window_strides=(1, 1), padding=[(p, p), (p, p)],
            dimension_numbers=dn)

    im = jnp.full_like(x, 0.5)
    for _ in range(iterations):
        convolved = conv(im, w)
        relative_blur = x / convolved
        im = im * conv(relative_blur, wm)
    if clip:
        im = jnp.clip(im, -1.0, 1.0)
    return im


if __name__ == "__main__":
    key = jax.random.PRNGKey(0)
    kx, kpsf = jax.random.split(key)

    # The module's conv kernel is (1,1,k,k) -> single input channel.
    # N=14 deliberately exercises multi-strip packing + dummy-image padding.
    N, C, H, W = 14, 1, 16, 16
    x = jax.random.uniform(kx, (N, C, H, W), jnp.float32, minval=0.1, maxval=1.0)

    # Deterministic, slightly asymmetric 5x5 PSF normalized to sum 1
    # (so the mirrored-kernel path is actually exercised).
    k = 5
    psf = jax.random.uniform(kpsf, (k, k), jnp.float32, minval=0.0, maxval=1.0)
    psf = psf / jnp.sum(psf)

    out = jax.block_until_ready(lucy_richardson(x, psf, iterations=4, clip=True))
    ref = lucy_richardson_ref(x, psf, iterations=4, clip=True)

    assert out.shape == (N, C, H, W)
    err = float(jnp.max(jnp.abs(out - ref)))
    assert jnp.allclose(out, ref, rtol=1e-4, atol=1e-4), f"max abs err {err}"
    print("KERNEL_OK")
</pallas_src>

<mosaic_0001>
module attributes {stable_mosaic.version = 11 : i64} {
  func.func @_lr_kernel(%arg0: i32, %arg1: memref<5x5xf32, #tpu.memory_space<smem>>, %arg2: memref<24x128xf32, #tpu.memory_space<vmem>>, %arg3: memref<1x24x128xf32, #tpu.memory_space<vmem>>, %arg4: memref<1x24x128xf32, #tpu.memory_space<vmem>>) attributes {dimension_semantics = [#tpu.dimension_semantics<parallel>], iteration_bounds = array<i64: 3>, scalar_prefetch = 0 : i64, scratch_operands = 0 : i64, tpu.core_type = #tpu.core_type<tc>, window_params = [{transform_indices = @transform_0, window_bounds = array<i64: 5, 5>}, {pipeline_mode = #tpu.pipeline_mode<synchronous>, transform_indices = @transform_1, window_bounds = array<i64: 24, 128>}, {transform_indices = @transform_2, window_bounds = array<i64: 1, 24, 128>}, {transform_indices = @transform_3, window_bounds = array<i64: 1, 24, 128>}]} {
    %c0 = arith.constant 0 : index
    %c0_0 = arith.constant 0 : index
    %0 = memref.load %arg1[%c0, %c0_0] : memref<5x5xf32, #tpu.memory_space<smem>>
    %c0_1 = arith.constant 0 : index
    %c1 = arith.constant 1 : index
    %1 = memref.load %arg1[%c0_1, %c1] : memref<5x5xf32, #tpu.memory_space<smem>>
    %c0_2 = arith.constant 0 : index
    %c2 = arith.constant 2 : index
    %2 = memref.load %arg1[%c0_2, %c2] : memref<5x5xf32, #tpu.memory_space<smem>>
    %c0_3 = arith.constant 0 : index
    %c3 = arith.constant 3 : index
    %3 = memref.load %arg1[%c0_3, %c3] : memref<5x5xf32, #tpu.memory_space<smem>>
    %c0_4 = arith.constant 0 : index
    %c4 = arith.constant 4 : index
    %4 = memref.load %arg1[%c0_4, %c4] : memref<5x5xf32, #tpu.memory_space<smem>>
    %c1_5 = arith.constant 1 : index
    %c0_6 = arith.constant 0 : index
    %5 = memref.load %arg1[%c1_5, %c0_6] : memref<5x5xf32, #tpu.memory_space<smem>>
    %c1_7 = arith.constant 1 : index
    %c1_8 = arith.constant 1 : index
    %6 = memref.load %arg1[%c1_7, %c1_8] : memref<5x5xf32, #tpu.memory_space<smem>>
    %c1_9 = arith.constant 1 : index
    %c2_10 = arith.constant 2 : index
    %7 = memref.load %arg1[%c1_9, %c2_10] : memref<5x5xf32, #tpu.memory_space<smem>>
    %c1_11 = arith.constant 1 : index
    %c3_12 = arith.constant 3 : index
    %8 = memref.load %arg1[%c1_11, %c3_12] : memref<5x5xf32, #tpu.memory_space<smem>>
    %c1_13 = arith.constant 1 : index
    %c4_14 = arith.constant 4 : index
    %9 = memref.load %arg1[%c1_13, %c4_14] : memref<5x5xf32, #tpu.memory_space<smem>>
    %c2_15 = arith.constant 2 : index
    %c0_16 = arith.constant 0 : index
    %10 = memref.load %arg1[%c2_15, %c0_16] : memref<5x5xf32, #tpu.memory_space<smem>>
    %c2_17 = arith.constant 2 : index
    %c1_18 = arith.constant 1 : index
    %11 = memref.load %arg1[%c2_17, %c1_18] : memref<5x5xf32, #tpu.memory_space<smem>>
    %c2_19 = arith.constant 2 : index
    %c2_20 = arith.constant 2 : index
    %12 = memref.load %arg1[%c2_19, %c2_20] : memref<5x5xf32, #tpu.memory_space<smem>>
    %c2_21 = arith.constant 2 : index
    %c3_22 = arith.constant 3 : index
    %13 = memref.load %arg1[%c2_21, %c3_22] : memref<5x5xf32, #tpu.memory_space<smem>>
    %c2_23 = arith.constant 2 : index
    %c4_24 = arith.constant 4 : index
    %14 = memref.load %arg1[%c2_23, %c4_24] : memref<5x5xf32, #tpu.memory_space<smem>>
    %c3_25 = arith.constant 3 : index
    %c0_26 = arith.constant 0 : index
    %15 = memref.load %arg1[%c3_25, %c0_26] : memref<5x5xf32, #tpu.memory_space<smem>>
    %c3_27 = arith.constant 3 : index
    %c1_28 = arith.constant 1 : index
    %16 = memref.load %arg1[%c3_27, %c1_28] : memref<5x5xf32, #tpu.memory_space<smem>>
    %c3_29 = arith.constant 3 : index
    %c2_30 = arith.constant 2 : index
    %17 = memref.load %arg1[%c3_29, %c2_30] : memref<5x5xf32, #tpu.memory_space<smem>>
    %c3_31 = arith.constant 3 : index
    %c3_32 = arith.constant 3 : index
    %18 = memref.load %arg1[%c3_31, %c3_32] : memref<5x5xf32, #tpu.memory_space<smem>>
    %c3_33 = arith.constant 3 : index
    %c4_34 = arith.constant 4 : index
    %19 = memref.load %arg1[%c3_33, %c4_34] : memref<5x5xf32, #tpu.memory_space<smem>>
    %c4_35 = arith.constant 4 : index
    %c0_36 = arith.constant 0 : index
    %20 = memref.load %arg1[%c4_35, %c0_36] : memref<5x5xf32, #tpu.memory_space<smem>>
    %c4_37 = arith.constant 4 : index
    %c1_38 = arith.constant 1 : index
    %21 = memref.load %arg1[%c4_37, %c1_38] : memref<5x5xf32, #tpu.memory_space<smem>>
    %c4_39 = arith.constant 4 : index
    %c2_40 = arith.constant 2 : index
    %22 = memref.load %arg1[%c4_39, %c2_40] : memref<5x5xf32, #tpu.memory_space<smem>>
    %c4_41 = arith.constant 4 : index
    %c3_42 = arith.constant 3 : index
    %23 = memref.load %arg1[%c4_41, %c3_42] : memref<5x5xf32, #tpu.memory_space<smem>>
    %c4_43 = arith.constant 4 : index
    %c4_44 = arith.constant 4 : index
    %24 = memref.load %arg1[%c4_43, %c4_44] : memref<5x5xf32, #tpu.memory_space<smem>>
    %c0_45 = arith.constant 0 : index
    %c0_46 = arith.constant 0 : index
    %25 = vector.load %arg2[%c0_45, %c0_46] : memref<24x128xf32, #tpu.memory_space<vmem>>, vector<24x128xf32>
    %cst = arith.constant 0.000000e+00 : f32
    %26 = vector.broadcast %cst : f32 to vector<24x128xf32>
    %27 = arith.cmpf ogt, %25, %26 : vector<24x128xf32>
    %c0_47 = arith.constant 0 : index
    %c0_48 = arith.constant 0 : index
    %c0_49 = arith.constant 0 : index
    %28 = vector.load %arg3[%c0_47, %c0_48, %c0_49] : memref<1x24x128xf32, #tpu.memory_space<vmem>>, vector<1x24x128xf32>
    %29 = vector.shape_cast %28 : vector<1x24x128xf32> to vector<24x128xf32>
    %cst_50 = arith.constant 5.000000e-01 : f32
    %30 = vector.broadcast %cst_50 : f32 to vector<24x128xf32>
    %31 = arith.mulf %30, %25 : vector<24x128xf32>
    %c2_i32 = arith.constant 2 : i32
    %32 = tpu.dynamic_rotate %31 by %c2_i32 dim 1 : vector<24x128xf32>, i32 -> vector<24x128xf32>
    %c1_i32 = arith.constant 1 : i32
    %33 = tpu.dynamic_rotate %31 by %c1_i32 dim 1 : vector<24x128xf32>, i32 -> vector<24x128xf32>
    %c127_i32 = arith.constant 127 : i32
    %34 = tpu.dynamic_rotate %31 by %c127_i32 dim 1 : vector<24x128xf32>, i32 -> vector<24x128xf32>
    %c126_i32 = arith.constant 126 : i32
    %35 = tpu.dynamic_rotate %31 by %c126_i32 dim 1 : vector<24x128xf32>, i32 -> vector<24x128xf32>
    %36 = vector.broadcast %0 : f32 to vector<24x128xf32>
    %37 = arith.mulf %36, %32 : vector<24x128xf32>
    %38 = vector.broadcast %1 : f32 to vector<24x128xf32>
    %39 = arith.mulf %38, %33 : vector<24x128xf32>
    %40 = arith.addf %37, %39 : vector<24x128xf32>
    %41 = vector.broadcast %2 : f32 to vector<24x128xf32>
    %42 = arith.mulf %41, %31 : vector<24x128xf32>
    %43 = arith.addf %40, %42 : vector<24x128xf32>
    %44 = vector.broadcast %3 : f32 to vector<24x128xf32>
    %45 = arith.mulf %44, %34 : vector<24x128xf32>
    %46 = arith.addf %43, %45 : vector<24x128xf32>
    %47 = vector.broadcast %4 : f32 to vector<24x128xf32>
    %48 = arith.mulf %47, %35 : vector<24x128xf32>
    %49 = arith.addf %46, %48 : vector<24x128xf32>
    %c2_i32_51 = arith.constant 2 : i32
    %50 = tpu.dynamic_rotate %49 by %c2_i32_51 dim 0 : vector<24x128xf32>, i32 -> vector<24x128xf32>
    %51 = vector.broadcast %5 : f32 to vector<24x128xf32>
    %52 = arith.mulf %51, %32 : vector<24x128xf32>
    %53 = vector.broadcast %6 : f32 to vector<24x128xf32>
    %54 = arith.mulf %53, %33 : vector<24x128xf32>
    %55 = arith.addf %52, %54 : vector<24x128xf32>
    %56 = vector.broadcast %7 : f32 to vector<24x128xf32>
    %57 = arith.mulf %56, %31 : vector<24x128xf32>
    %58 = arith.addf %55, %57 : vector<24x128xf32>
    %59 = vector.broadcast %8 : f32 to vector<24x128xf32>
    %60 = arith.mulf %59, %34 : vector<24x128xf32>
    %61 = arith.addf %58, %60 : vector<24x128xf32>
    %62 = vector.broadcast %9 : f32 to vector<24x128xf32>
    %63 = arith.mulf %62, %35 : vector<24x128xf32>
    %64 = arith.addf %61, %63 : vector<24x128xf32>
    %c1_i32_52 = arith.constant 1 : i32
    %65 = tpu.dynamic_rotate %64 by %c1_i32_52 dim 0 : vector<24x128xf32>, i32 -> vector<24x128xf32>
    %66 = arith.addf %50, %65 : vector<24x128xf32>
    %67 = vector.broadcast %10 : f32 to vector<24x128xf32>
    %68 = arith.mulf %67, %32 : vector<24x128xf32>
    %69 = vector.broadcast %11 : f32 to vector<24x128xf32>
    %70 = arith.mulf %69, %33 : vector<24x128xf32>
    %71 = arith.addf %68, %70 : vector<24x128xf32>
    %72 = vector.broadcast %12 : f32 to vector<24x128xf32>
    %73 = arith.mulf %72, %31 : vector<24x128xf32>
    %74 = arith.addf %71, %73 : vector<24x128xf32>
    %75 = vector.broadcast %13 : f32 to vector<24x128xf32>
    %76 = arith.mulf %75, %34 : vector<24x128xf32>
    %77 = arith.addf %74, %76 : vector<24x128xf32>
    %78 = vector.broadcast %14 : f32 to vector<24x128xf32>
    %79 = arith.mulf %78, %35 : vector<24x128xf32>
    %80 = arith.addf %77, %79 : vector<24x128xf32>
    %81 = arith.addf %66, %80 : vector<24x128xf32>
    %82 = vector.broadcast %15 : f32 to vector<24x128xf32>
    %83 = arith.mulf %82, %32 : vector<24x128xf32>
    %84 = vector.broadcast %16 : f32 to vector<24x128xf32>
    %85 = arith.mulf %84, %33 : vector<24x128xf32>
    %86 = arith.addf %83, %85 : vector<24x128xf32>
    %87 = vector.broadcast %17 : f32 to vector<24x128xf32>
    %88 = arith.mulf %87, %31 : vector<24x128xf32>
    %89 = arith.addf %86, %88 : vector<24x128xf32>
    %90 = vector.broadcast %18 : f32 to vector<24x128xf32>
    %91 = arith.mulf %90, %34 : vector<24x128xf32>
    %92 = arith.addf %89, %91 : vector<24x128xf32>
    %93 = vector.broadcast %19 : f32 to vector<24x128xf32>
    %94 = arith.mulf %93, %35 : vector<24x128xf32>
    %95 = arith.addf %92, %94 : vector<24x128xf32>
    %c23_i32 = arith.constant 23 : i32
    %96 = tpu.dynamic_rotate %95 by %c23_i32 dim 0 : vector<24x128xf32>, i32 -> vector<24x128xf32>
    %97 = arith.addf %81, %96 : vector<24x128xf32>
    %98 = vector.broadcast %20 : f32 to vector<24x128xf32>
    %99 = arith.mulf %98, %32 : vector<24x128xf32>
    %100 = vector.broadcast %21 : f32 to vector<24x128xf32>
    %101 = arith.mulf %100, %33 : vector<24x128xf32>
    %102 = arith.addf %99, %101 : vector<24x128xf32>
    %103 = vector.broadcast %22 : f32 to vector<24x128xf32>
    %104 = arith.mulf %103, %31 : vector<24x128xf32>
    %105 = arith.addf %102, %104 : vector<24x128xf32>
    %106 = vector.broadcast %23 : f32 to vector<24x128xf32>
    %107 = arith.mulf %106, %34 : vector<24x128xf32>
    %108 = arith.addf %105, %107 : vector<24x128xf32>
    %109 = vector.broadcast %24 : f32 to vector<24x128xf32>
    %110 = arith.mulf %109, %35 : vector<24x128xf32>
    %111 = arith.addf %108, %110 : vector<24x128xf32>
    %c22_i32 = arith.constant 22 : i32
    %112 = tpu.dynamic_rotate %111 by %c22_i32 dim 0 : vector<24x128xf32>, i32 -> vector<24x128xf32>
    %113 = arith.addf %97, %112 : vector<24x128xf32>
    %114 = tpu.reciprocal %113 {approx = true} : vector<24x128xf32> -> vector<24x128xf32>
    %115 = arith.mulf %113, %114 : vector<24x128xf32>
    %cst_53 = arith.constant 2.000000e+00 : f32
    %116 = vector.broadcast %cst_53 : f32 to vector<24x128xf32>
    %117 = arith.subf %116, %115 : vector<24x128xf32>
    %118 = arith.mulf %114, %117 : vector<24x128xf32>
    %119 = arith.mulf %113, %118 : vector<24x128xf32>
    %cst_54 = arith.constant 2.000000e+00 : f32
    %120 = vector.broadcast %cst_54 : f32 to vector<24x128xf32>
    %121 = arith.subf %120, %119 : vector<24x128xf32>
    %122 = arith.mulf %118, %121 : vector<24x128xf32>
    %123 = arith.mulf %29, %122 : vector<24x128xf32>
    %cst_55 = arith.constant 0.000000e+00 : f32
    %124 = vector.broadcast %cst_55 : f32 to vector<24x128xf32>
    %125 = arith.select %27, %123, %124 : vector<24x128xi1>, vector<24x128xf32>
    %c2_i32_56 = arith.constant 2 : i32
    %126 = tpu.dynamic_rotate %125 by %c2_i32_56 dim 1 : vector<24x128xf32>, i32 -> vector<24x128xf32>
    %c1_i32_57 = arith.constant 1 : i32
    %127 = tpu.dynamic_rotate %125 by %c1_i32_57 dim 1 : vector<24x128xf32>, i32 -> vector<24x128xf32>
    %c127_i32_58 = arith.constant 127 : i32
    %128 = tpu.dynamic_rotate %125 by %c127_i32_58 dim 1 : vector<24x128xf32>, i32 -> vector<24x128xf32>
    %c126_i32_59 = arith.constant 126 : i32
    %129 = tpu.dynamic_rotate %125 by %c126_i32_59 dim 1 : vector<24x128xf32>, i32 -> vector<24x128xf32>
    %130 = vector.broadcast %24 : f32 to vector<24x128xf32>
    %131 = arith.mulf %130, %126 : vector<24x128xf32>
    %132 = vector.broadcast %23 : f32 to vector<24x128xf32>
    %133 = arith.mulf %132, %127 : vector<24x128xf32>
    %134 = arith.addf %131, %133 : vector<24x128xf32>
    %135 = vector.broadcast %22 : f32 to vector<24x128xf32>
    %136 = arith.mulf %135, %125 : vector<24x128xf32>
    %137 = arith.addf %134, %136 : vector<24x128xf32>
    %138 = vector.broadcast %21 : f32 to vector<24x128xf32>
    %139 = arith.mulf %138, %128 : vector<24x128xf32>
    %140 = arith.addf %137, %139 : vector<24x128xf32>
    %141 = vector.broadcast %20 : f32 to vector<24x128xf32>
    %142 = arith.mulf %141, %129 : vector<24x128xf32>
    %143 = arith.addf %140, %142 : vector<24x128xf32>
    %c2_i32_60 = arith.constant 2 : i32
    %144 = tpu.dynamic_rotate %143 by %c2_i32_60 dim 0 : vector<24x128xf32>, i32 -> vector<24x128xf32>
    %145 = vector.broadcast %19 : f32 to vector<24x128xf32>
    %146 = arith.mulf %145, %126 : vector<24x128xf32>
    %147 = vector.broadcast %18 : f32 to vector<24x128xf32>
    %148 = arith.mulf %147, %127 : vector<24x128xf32>
    %149 = arith.addf %146, %148 : vector<24x128xf32>
    %150 = vector.broadcast %17 : f32 to vector<24x128xf32>
    %151 = arith.mulf %150, %125 : vector<24x128xf32>
    %152 = arith.addf %149, %151 : vector<24x128xf32>
    %153 = vector.broadcast %16 : f32 to vector<24x128xf32>
    %154 = arith.mulf %153, %128 : vector<24x128xf32>
    %155 = arith.addf %152, %154 : vector<24x128xf32>
    %156 = vector.broadcast %15 : f32 to vector<24x128xf32>
    %157 = arith.mulf %156, %129 : vector<24x128xf32>
    %158 = arith.addf %155, %157 : vector<24x128xf32>
    %c1_i32_61 = arith.constant 1 : i32
    %159 = tpu.dynamic_rotate %158 by %c1_i32_61 dim 0 : vector<24x128xf32>, i32 -> vector<24x128xf32>
    %160 = arith.addf %144, %159 : vector<24x128xf32>
    %161 = vector.broadcast %14 : f32 to vector<24x128xf32>
    %162 = arith.mulf %161, %126 : vector<24x128xf32>
    %163 = vector.broadcast %13 : f32 to vector<24x128xf32>
    %164 = arith.mulf %163, %127 : vector<24x128xf32>
    %165 = arith.addf %162, %164 : vector<24x128xf32>
    %166 = vector.broadcast %12 : f32 to vector<24x128xf32>
    %167 = arith.mulf %166, %125 : vector<24x128xf32>
    %168 = arith.addf %165, %167 : vector<24x128xf32>
    %169 = vector.broadcast %11 : f32 to vector<24x128xf32>
    %170 = arith.mulf %169, %128 : vector<24x128xf32>
    %171 = arith.addf %168, %170 : vector<24x128xf32>
    %172 = vector.broadcast %10 : f32 to vector<24x128xf32>
    %173 = arith.mulf %172, %129 : vector<24x128xf32>
    %174 = arith.addf %171, %173 : vector<24x128xf32>
    %175 = arith.addf %160, %174 : vector<24x128xf32>
    %176 = vector.broadcast %9 : f32 to vector<24x128xf32>
    %177 = arith.mulf %176, %126 : vector<24x128xf32>
    %178 = vector.broadcast %8 : f32 to vector<24x128xf32>
    %179 = arith.mulf %178, %127 : vector<24x128xf32>
    %180 = arith.addf %177, %179 : vector<24x128xf32>
    %181 = vector.broadcast %7 : f32 to vector<24x128xf32>
    %182 = arith.mulf %181, %125 : vector<24x128xf32>
    %183 = arith.addf %180, %182 : vector<24x128xf32>
    %184 = vector.broadcast %6 : f32 to vector<24x128xf32>
    %185 = arith.mulf %184, %128 : vector<24x128xf32>
    %186 = arith.addf %183, %185 : vector<24x128xf32>
    %187 = vector.broadcast %5 : f32 to vector<24x128xf32>
    %188 = arith.mulf %187, %129 : vector<24x128xf32>
    %189 = arith.addf %186, %188 : vector<24x128xf32>
    %c23_i32_62 = arith.constant 23 : i32
    %190 = tpu.dynamic_rotate %189 by %c23_i32_62 dim 0 : vector<24x128xf32>, i32 -> vector<24x128xf32>
    %191 = arith.addf %175, %190 : vector<24x128xf32>
    %192 = vector.broadcast %4 : f32 to vector<24x128xf32>
    %193 = arith.mulf %192, %126 : vector<24x128xf32>
    %194 = vector.broadcast %3 : f32 to vector<24x128xf32>
    %195 = arith.mulf %194, %127 : vector<24x128xf32>
    %196 = arith.addf %193, %195 : vector<24x128xf32>
    %197 = vector.broadcast %2 : f32 to vector<24x128xf32>
    %198 = arith.mulf %197, %125 : vector<24x128xf32>
    %199 = arith.addf %196, %198 : vector<24x128xf32>
    %200 = vector.broadcast %1 : f32 to vector<24x128xf32>
    %201 = arith.mulf %200, %128 : vector<24x128xf32>
    %202 = arith.addf %199, %201 : vector<24x128xf32>
    %203 = vector.broadcast %0 : f32 to vector<24x128xf32>
    %204 = arith.mulf %203, %129 : vector<24x128xf32>
    %205 = arith.addf %202, %204 : vector<24x128xf32>
    %c22_i32_63 = arith.constant 22 : i32
    %206 = tpu.dynamic_rotate %205 by %c22_i32_63 dim 0 : vector<24x128xf32>, i32 -> vector<24x128xf32>
    %207 = arith.addf %191, %206 : vector<24x128xf32>
    %208 = arith.mulf %31, %207 : vector<24x128xf32>
    %cst_64 = arith.constant 0.000000e+00 : f32
    %209 = vector.broadcast %cst_64 : f32 to vector<24x128xf32>
    %210 = arith.select %27, %208, %209 : vector<24x128xi1>, vector<24x128xf32>
    %c2_i32_65 = arith.constant 2 : i32
    %211 = tpu.dynamic_rotate %210 by %c2_i32_65 dim 1 : vector<24x128xf32>, i32 -> vector<24x128xf32>
    %c1_i32_66 = arith.constant 1 : i32
    %212 = tpu.dynamic_rotate %210 by %c1_i32_66 dim 1 : vector<24x128xf32>, i32 -> vector<24x128xf32>
    %c127_i32_67 = arith.constant 127 : i32
    %213 = tpu.dynamic_rotate %210 by %c127_i32_67 dim 1 : vector<24x128xf32>, i32 -> vector<24x128xf32>
    %c126_i32_68 = arith.constant 126 : i32
    %214 = tpu.dynamic_rotate %210 by %c126_i32_68 dim 1 : vector<24x128xf32>, i32 -> vector<24x128xf32>
    %215 = vector.broadcast %0 : f32 to vector<24x128xf32>
    %216 = arith.mulf %215, %211 : vector<24x128xf32>
    %217 = vector.broadcast %1 : f32 to vector<24x128xf32>
    %218 = arith.mulf %217, %212 : vector<24x128xf32>
    %219 = arith.addf %216, %218 : vector<24x128xf32>
    %220 = vector.broadcast %2 : f32 to vector<24x128xf32>
    %221 = arith.mulf %220, %210 : vector<24x128xf32>
    %222 = arith.addf %219, %221 : vector<24x128xf32>
    %223 = vector.broadcast %3 : f32 to vector<24x128xf32>
    %224 = arith.mulf %223, %213 : vector<24x128xf32>
    %225 = arith.addf %222, %224 : vector<24x128xf32>
    %226 = vector.broadcast %4 : f32 to vector<24x128xf32>
    %227 = arith.mulf %226, %214 : vector<24x128xf32>
    %228 = arith.addf %225, %227 : vector<24x128xf32>
    %c2_i32_69 = arith.constant 2 : i32
    %229 = tpu.dynamic_rotate %228 by %c2_i32_69 dim 0 : vector<24x128xf32>, i32 -> vector<24x128xf32>
    %230 = vector.broadcast %5 : f32 to vector<24x128xf32>
    %231 = arith.mulf %230, %211 : vector<24x128xf32>
    %232 = vector.broadcast %6 : f32 to vector<24x128xf32>
    %233 = arith.mulf %232, %212 : vector<24x128xf32>
    %234 = arith.addf %231, %233 : vector<24x128xf32>
    %235 = vector.broadcast %7 : f32 to vector<24x128xf32>
    %236 = arith.mulf %235, %210 : vector<24x128xf32>
    %237 = arith.addf %234, %236 : vector<24x128xf32>
    %238 = vector.broadcast %8 : f32 to vector<24x128xf32>
    %239 = arith.mulf %238, %213 : vector<24x128xf32>
    %240 = arith.addf %237, %239 : vector<24x128xf32>
    %241 = vector.broadcast %9 : f32 to vector<24x128xf32>
    %242 = arith.mulf %241, %214 : vector<24x128xf32>
    %243 = arith.addf %240, %242 : vector<24x128xf32>
    %c1_i32_70 = arith.constant 1 : i32
    %244 = tpu.dynamic_rotate %243 by %c1_i32_70 dim 0 : vector<24x128xf32>, i32 -> vector<24x128xf32>
    %245 = arith.addf %229, %244 : vector<24x128xf32>
    %246 = vector.broadcast %10 : f32 to vector<24x128xf32>
    %247 = arith.mulf %246, %211 : vector<24x128xf32>
    %248 = vector.broadcast %11 : f32 to vector<24x128xf32>
    %249 = arith.mulf %248, %212 : vector<24x128xf32>
    %250 = arith.addf %247, %249 : vector<24x128xf32>
    %251 = vector.broadcast %12 : f32 to vector<24x128xf32>
    %252 = arith.mulf %251, %210 : vector<24x128xf32>
    %253 = arith.addf %250, %252 : vector<24x128xf32>
    %254 = vector.broadcast %13 : f32 to vector<24x128xf32>
    %255 = arith.mulf %254, %213 : vector<24x128xf32>
    %256 = arith.addf %253, %255 : vector<24x128xf32>
    %257 = vector.broadcast %14 : f32 to vector<24x128xf32>
    %258 = arith.mulf %257, %214 : vector<24x128xf32>
    %259 = arith.addf %256, %258 : vector<24x128xf32>
    %260 = arith.addf %245, %259 : vector<24x128xf32>
    %261 = vector.broadcast %15 : f32 to vector<24x128xf32>
    %262 = arith.mulf %261, %211 : vector<24x128xf32>
    %263 = vector.broadcast %16 : f32 to vector<24x128xf32>
    %264 = arith.mulf %263, %212 : vector<24x128xf32>
    %265 = arith.addf %262, %264 : vector<24x128xf32>
    %266 = vector.broadcast %17 : f32 to vector<24x128xf32>
    %267 = arith.mulf %266, %210 : vector<24x128xf32>
    %268 = arith.addf %265, %267 : vector<24x128xf32>
    %269 = vector.broadcast %18 : f32 to vector<24x128xf32>
    %270 = arith.mulf %269, %213 : vector<24x128xf32>
    %271 = arith.addf %268, %270 : vector<24x128xf32>
    %272 = vector.broadcast %19 : f32 to vector<24x128xf32>
    %273 = arith.mulf %272, %214 : vector<24x128xf32>
    %274 = arith.addf %271, %273 : vector<24x128xf32>
    %c23_i32_71 = arith.constant 23 : i32
    %275 = tpu.dynamic_rotate %274 by %c23_i32_71 dim 0 : vector<24x128xf32>, i32 -> vector<24x128xf32>
    %276 = arith.addf %260, %275 : vector<24x128xf32>
    %277 = vector.broadcast %20 : f32 to vector<24x128xf32>
    %278 = arith.mulf %277, %211 : vector<24x128xf32>
    %279 = vector.broadcast %21 : f32 to vector<24x128xf32>
    %280 = arith.mulf %279, %212 : vector<24x128xf32>
    %281 = arith.addf %278, %280 : vector<24x128xf32>
    %282 = vector.broadcast %22 : f32 to vector<24x128xf32>
    %283 = arith.mulf %282, %210 : vector<24x128xf32>
    %284 = arith.addf %281, %283 : vector<24x128xf32>
    %285 = vector.broadcast %23 : f32 to vector<24x128xf32>
    %286 = arith.mulf %285, %213 : vector<24x128xf32>
    %287 = arith.addf %284, %286 : vector<24x128xf32>
    %288 = vector.broadcast %24 : f32 to vector<24x128xf32>
    %289 = arith.mulf %288, %214 : vector<24x128xf32>
    %290 = arith.addf %287, %289 : vector<24x128xf32>
    %c22_i32_72 = arith.constant 22 : i32
    %291 = tpu.dynamic_rotate %290 by %c22_i32_72 dim 0 : vector<24x128xf32>, i32 -> vector<24x128xf32>
    %292 = arith.addf %276, %291 : vector<24x128xf32>
    %293 = tpu.reciprocal %292 {approx = true} : vector<24x128xf32> -> vector<24x128xf32>
    %294 = arith.mulf %292, %293 : vector<24x128xf32>
    %cst_73 = arith.constant 2.000000e+00 : f32
    %295 = vector.broadcast %cst_73 : f32 to vector<24x128xf32>
    %296 = arith.subf %295, %294 : vector<24x128xf32>
    %297 = arith.mulf %293, %296 : vector<24x128xf32>
    %298 = arith.mulf %292, %297 : vector<24x128xf32>
    %cst_74 = arith.constant 2.000000e+00 : f32
    %299 = vector.broadcast %cst_74 : f32 to vector<24x128xf32>
    %300 = arith.subf %299, %298 : vector<24x128xf32>
    %301 = arith.mulf %297, %300 : vector<24x128xf32>
    %302 = arith.mulf %29, %301 : vector<24x128xf32>
    %cst_75 = arith.constant 0.000000e+00 : f32
    %303 = vector.broadcast %cst_75 : f32 to vector<24x128xf32>
    %304 = arith.select %27, %302, %303 : vector<24x128xi1>, vector<24x128xf32>
    %c2_i32_76 = arith.constant 2 : i32
    %305 = tpu.dynamic_rotate %304 by %c2_i32_76 dim 1 : vector<24x128xf32>, i32 -> vector<24x128xf32>
    %c1_i32_77 = arith.constant 1 : i32
    %306 = tpu.dynamic_rotate %304 by %c1_i32_77 dim 1 : vector<24x128xf32>, i32 -> vector<24x128xf32>
    %c127_i32_78 = arith.constant 127 : i32
    %307 = tpu.dynamic_rotate %304 by %c127_i32_78 dim 1 : vector<24x128xf32>, i32 -> vector<24x128xf32>
    %c126_i32_79 = arith.constant 126 : i32
    %308 = tpu.dynamic_rotate %304 by %c126_i32_79 dim 1 : vector<24x128xf32>, i32 -> vector<24x128xf32>
    %309 = vector.broadcast %24 : f32 to vector<24x128xf32>
    %310 = arith.mulf %309, %305 : vector<24x128xf32>
    %311 = vector.broadcast %23 : f32 to vector<24x128xf32>
    %312 = arith.mulf %311, %306 : vector<24x128xf32>
    %313 = arith.addf %310, %312 : vector<24x128xf32>
    %314 = vector.broadcast %22 : f32 to vector<24x128xf32>
    %315 = arith.mulf %314, %304 : vector<24x128xf32>
    %316 = arith.addf %313, %315 : vector<24x128xf32>
    %317 = vector.broadcast %21 : f32 to vector<24x128xf32>
    %318 = arith.mulf %317, %307 : vector<24x128xf32>
    %319 = arith.addf %316, %318 : vector<24x128xf32>
    %320 = vector.broadcast %20 : f32 to vector<24x128xf32>
    %321 = arith.mulf %320, %308 : vector<24x128xf32>
    %322 = arith.addf %319, %321 : vector<24x128xf32>
    %c2_i32_80 = arith.constant 2 : i32
    %323 = tpu.dynamic_rotate %322 by %c2_i32_80 dim 0 : vector<24x128xf32>, i32 -> vector<24x128xf32>
    %324 = vector.broadcast %19 : f32 to vector<24x128xf32>
    %325 = arith.mulf %324, %305 : vector<24x128xf32>
    %326 = vector.broadcast %18 : f32 to vector<24x128xf32>
    %327 = arith.mulf %326, %306 : vector<24x128xf32>
    %328 = arith.addf %325, %327 : vector<24x128xf32>
    %329 = vector.broadcast %17 : f32 to vector<24x128xf32>
    %330 = arith.mulf %329, %304 : vector<24x128xf32>
    %331 = arith.addf %328, %330 : vector<24x128xf32>
    %332 = vector.broadcast %16 : f32 to vector<24x128xf32>
    %333 = arith.mulf %332, %307 : vector<24x128xf32>
    %334 = arith.addf %331, %333 : vector<24x128xf32>
    %335 = vector.broadcast %15 : f32 to vector<24x128xf32>
    %336 = arith.mulf %335, %308 : vector<24x128xf32>
    %337 = arith.addf %334, %336 : vector<24x128xf32>
    %c1_i32_81 = arith.constant 1 : i32
    %338 = tpu.dynamic_rotate %337 by %c1_i32_81 dim 0 : vector<24x128xf32>, i32 -> vector<24x128xf32>
    %339 = arith.addf %323, %338 : vector<24x128xf32>
    %340 = vector.broadcast %14 : f32 to vector<24x128xf32>
    %341 = arith.mulf %340, %305 : vector<24x128xf32>
    %342 = vector.broadcast %13 : f32 to vector<24x128xf32>
    %343 = arith.mulf %342, %306 : vector<24x128xf32>
    %344 = arith.addf %341, %343 : vector<24x128xf32>
    %345 = vector.broadcast %12 : f32 to vector<24x128xf32>
    %346 = arith.mulf %345, %304 : vector<24x128xf32>
    %347 = arith.addf %344, %346 : vector<24x128xf32>
    %348 = vector.broadcast %11 : f32 to vector<24x128xf32>
    %349 = arith.mulf %348, %307 : vector<24x128xf32>
    %350 = arith.addf %347, %349 : vector<24x128xf32>
    %351 = vector.broadcast %10 : f32 to vector<24x128xf32>
    %352 = arith.mulf %351, %308 : vector<24x128xf32>
    %353 = arith.addf %350, %352 : vector<24x128xf32>
    %354 = arith.addf %339, %353 : vector<24x128xf32>
    %355 = vector.broadcast %9 : f32 to vector<24x128xf32>
    %356 = arith.mulf %355, %305 : vector<24x128xf32>
    %357 = vector.broadcast %8 : f32 to vector<24x128xf32>
    %358 = arith.mulf %357, %306 : vector<24x128xf32>
    %359 = arith.addf %356, %358 : vector<24x128xf32>
    %360 = vector.broadcast %7 : f32 to vector<24x128xf32>
    %361 = arith.mulf %360, %304 : vector<24x128xf32>
    %362 = arith.addf %359, %361 : vector<24x128xf32>
    %363 = vector.broadcast %6 : f32 to vector<24x128xf32>
    %364 = arith.mulf %363, %307 : vector<24x128xf32>
    %365 = arith.addf %362, %364 : vector<24x128xf32>
    %366 = vector.broadcast %5 : f32 to vector<24x128xf32>
    %367 = arith.mulf %366, %308 : vector<24x128xf32>
    %368 = arith.addf %365, %367 : vector<24x128xf32>
    %c23_i32_82 = arith.constant 23 : i32
    %369 = tpu.dynamic_rotate %368 by %c23_i32_82 dim 0 : vector<24x128xf32>, i32 -> vector<24x128xf32>
    %370 = arith.addf %354, %369 : vector<24x128xf32>
    %371 = vector.broadcast %4 : f32 to vector<24x128xf32>
    %372 = arith.mulf %371, %305 : vector<24x128xf32>
    %373 = vector.broadcast %3 : f32 to vector<24x128xf32>
    %374 = arith.mulf %373, %306 : vector<24x128xf32>
    %375 = arith.addf %372, %374 : vector<24x128xf32>
    %376 = vector.broadcast %2 : f32 to vector<24x128xf32>
    %377 = arith.mulf %376, %304 : vector<24x128xf32>
    %378 = arith.addf %375, %377 : vector<24x128xf32>
    %379 = vector.broadcast %1 : f32 to vector<24x128xf32>
    %380 = arith.mulf %379, %307 : vector<24x128xf32>
    %381 = arith.addf %378, %380 : vector<24x128xf32>
    %382 = vector.broadcast %0 : f32 to vector<24x128xf32>
    %383 = arith.mulf %382, %308 : vector<24x128xf32>
    %384 = arith.addf %381, %383 : vector<24x128xf32>
    %c22_i32_83 = arith.constant 22 : i32
    %385 = tpu.dynamic_rotate %384 by %c22_i32_83 dim 0 : vector<24x128xf32>, i32 -> vector<24x128xf32>
    %386 = arith.addf %370, %385 : vector<24x128xf32>
    %387 = arith.mulf %210, %386 : vector<24x128xf32>
    %cst_84 = arith.constant 0.000000e+00 : f32
    %388 = vector.broadcast %cst_84 : f32 to vector<24x128xf32>
    %389 = arith.select %27, %387, %388 : vector<24x128xi1>, vector<24x128xf32>
    %c2_i32_85 = arith.constant 2 : i32
    %390 = tpu.dynamic_rotate %389 by %c2_i32_85 dim 1 : vector<24x128xf32>, i32 -> vector<24x128xf32>
    %c1_i32_86 = arith.constant 1 : i32
    %391 = tpu.dynamic_rotate %389 by %c1_i32_86 dim 1 : vector<24x128xf32>, i32 -> vector<24x128xf32>
    %c127_i32_87 = arith.constant 127 : i32
    %392 = tpu.dynamic_rotate %389 by %c127_i32_87 dim 1 : vector<24x128xf32>, i32 -> vector<24x128xf32>
    %c126_i32_88 = arith.constant 126 : i32
    %393 = tpu.dynamic_rotate %389 by %c126_i32_88 dim 1 : vector<24x128xf32>, i32 -> vector<24x128xf32>
    %394 = vector.broadcast %0 : f32 to vector<24x128xf32>
    %395 = arith.mulf %394, %390 : vector<24x128xf32>
    %396 = vector.broadcast %1 : f32 to vector<24x128xf32>
    %397 = arith.mulf %396, %391 : vector<24x128xf32>
    %398 = arith.addf %395, %397 : vector<24x128xf32>
    %399 = vector.broadcast %2 : f32 to vector<24x128xf32>
    %400 = arith.mulf %399, %389 : vector<24x128xf32>
    %401 = arith.addf %398, %400 : vector<24x128xf32>
    %402 = vector.broadcast %3 : f32 to vector<24x128xf32>
    %403 = arith.mulf %402, %392 : vector<24x128xf32>
    %404 = arith.addf %401, %403 : vector<24x128xf32>
    %405 = vector.broadcast %4 : f32 to vector<24x128xf32>
    %406 = arith.mulf %405, %393 : vector<24x128xf32>
    %407 = arith.addf %404, %406 : vector<24x128xf32>
    %c2_i32_89 = arith.constant 2 : i32
    %408 = tpu.dynamic_rotate %407 by %c2_i32_89 dim 0 : vector<24x128xf32>, i32 -> vector<24x128xf32>
    %409 = vector.broadcast %5 : f32 to vector<24x128xf32>
    %410 = arith.mulf %409, %390 : vector<24x128xf32>
    %411 = vector.broadcast %6 : f32 to vector<24x128xf32>
    %412 = arith.mulf %411, %391 : vector<24x128xf32>
    %413 = arith.addf %410, %412 : vector<24x128xf32>
    %414 = vector.broadcast %7 : f32 to vector<24x128xf32>
    %415 = arith.mulf %414, %389 : vector<24x128xf32>
    %416 = arith.addf %413, %415 : vector<24x128xf32>
    %417 = vector.broadcast %8 : f32 to vector<24x128xf32>
    %418 = arith.mulf %417, %392 : vector<24x128xf32>
    %419 = arith.addf %416, %418 : vector<24x128xf32>
    %420 = vector.broadcast %9 : f32 to vector<24x128xf32>
    %421 = arith.mulf %420, %393 : vector<24x128xf32>
    %422 = arith.addf %419, %421 : vector<24x128xf32>
    %c1_i32_90 = arith.constant 1 : i32
    %423 = tpu.dynamic_rotate %422 by %c1_i32_90 dim 0 : vector<24x128xf32>, i32 -> vector<24x128xf32>
    %424 = arith.addf %408, %423 : vector<24x128xf32>
    %425 = vector.broadcast %10 : f32 to vector<24x128xf32>
    %426 = arith.mulf %425, %390 : vector<24x128xf32>
    %427 = vector.broadcast %11 : f32 to vector<24x128xf32>
    %428 = arith.mulf %427, %391 : vector<24x128xf32>
    %429 = arith.addf %426, %428 : vector<24x128xf32>
    %430 = vector.broadcast %12 : f32 to vector<24x128xf32>
    %431 = arith.mulf %430, %389 : vector<24x128xf32>
    %432 = arith.addf %429, %431 : vector<24x128xf32>
    %433 = vector.broadcast %13 : f32 to vector<24x128xf32>
    %434 = arith.mulf %433, %392 : vector<24x128xf32>
    %435 = arith.addf %432, %434 : vector<24x128xf32>
    %436 = vector.broadcast %14 : f32 to vector<24x128xf32>
    %437 = arith.mulf %436, %393 : vector<24x128xf32>
    %438 = arith.addf %435, %437 : vector<24x128xf32>
    %439 = arith.addf %424, %438 : vector<24x128xf32>
    %440 = vector.broadcast %15 : f32 to vector<24x128xf32>
    %441 = arith.mulf %440, %390 : vector<24x128xf32>
    %442 = vector.broadcast %16 : f32 to vector<24x128xf32>
    %443 = arith.mulf %442, %391 : vector<24x128xf32>
    %444 = arith.addf %441, %443 : vector<24x128xf32>
    %445 = vector.broadcast %17 : f32 to vector<24x128xf32>
    %446 = arith.mulf %445, %389 : vector<24x128xf32>
    %447 = arith.addf %444, %446 : vector<24x128xf32>
    %448 = vector.broadcast %18 : f32 to vector<24x128xf32>
    %449 = arith.mulf %448, %392 : vector<24x128xf32>
    %450 = arith.addf %447, %449 : vector<24x128xf32>
    %451 = vector.broadcast %19 : f32 to vector<24x128xf32>
    %452 = arith.mulf %451, %393 : vector<24x128xf32>
    %453 = arith.addf %450, %452 : vector<24x128xf32>
    %c23_i32_91 = arith.constant 23 : i32
    %454 = tpu.dynamic_rotate %453 by %c23_i32_91 dim 0 : vector<24x128xf32>, i32 -> vector<24x128xf32>
    %455 = arith.addf %439, %454 : vector<24x128xf32>
    %456 = vector.broadcast %20 : f32 to vector<24x128xf32>
    %457 = arith.mulf %456, %390 : vector<24x128xf32>
    %458 = vector.broadcast %21 : f32 to vector<24x128xf32>
    %459 = arith.mulf %458, %391 : vector<24x128xf32>
    %460 = arith.addf %457, %459 : vector<24x128xf32>
    %461 = vector.broadcast %22 : f32 to vector<24x128xf32>
    %462 = arith.mulf %461, %389 : vector<24x128xf32>
    %463 = arith.addf %460, %462 : vector<24x128xf32>
    %464 = vector.broadcast %23 : f32 to vector<24x128xf32>
    %465 = arith.mulf %464, %392 : vector<24x128xf32>
    %466 = arith.addf %463, %465 : vector<24x128xf32>
    %467 = vector.broadcast %24 : f32 to vector<24x128xf32>
    %468 = arith.mulf %467, %393 : vector<24x128xf32>
    %469 = arith.addf %466, %468 : vector<24x128xf32>
    %c22_i32_92 = arith.constant 22 : i32
    %470 = tpu.dynamic_rotate %469 by %c22_i32_92 dim 0 : vector<24x128xf32>, i32 -> vector<24x128xf32>
    %471 = arith.addf %455, %470 : vector<24x128xf32>
    %472 = tpu.reciprocal %471 {approx = true} : vector<24x128xf32> -> vector<24x128xf32>
    %473 = arith.mulf %471, %472 : vector<24x128xf32>
    %cst_93 = arith.constant 2.000000e+00 : f32
    %474 = vector.broadcast %cst_93 : f32 to vector<24x128xf32>
    %475 = arith.subf %474, %473 : vector<24x128xf32>
    %476 = arith.mulf %472, %475 : vector<24x128xf32>
    %477 = arith.mulf %471, %476 : vector<24x128xf32>
    %cst_94 = arith.constant 2.000000e+00 : f32
    %478 = vector.broadcast %cst_94 : f32 to vector<24x128xf32>
    %479 = arith.subf %478, %477 : vector<24x128xf32>
    %480 = arith.mulf %476, %479 : vector<24x128xf32>
    %481 = arith.mulf %29, %480 : vector<24x128xf32>
    %cst_95 = arith.constant 0.000000e+00 : f32
    %482 = vector.broadcast %cst_95 : f32 to vector<24x128xf32>
    %483 = arith.select %27, %481, %482 : vector<24x128xi1>, vector<24x128xf32>
    %c2_i32_96 = arith.constant 2 : i32
    %484 = tpu.dynamic_rotate %483 by %c2_i32_96 dim 1 : vector<24x128xf32>, i32 -> vector<24x128xf32>
    %c1_i32_97 = arith.constant 1 : i32
    %485 = tpu.dynamic_rotate %483 by %c1_i32_97 dim 1 : vector<24x128xf32>, i32 -> vector<24x128xf32>
    %c127_i32_98 = arith.constant 127 : i32
    %486 = tpu.dynamic_rotate %483 by %c127_i32_98 dim 1 : vector<24x128xf32>, i32 -> vector<24x128xf32>
    %c126_i32_99 = arith.constant 126 : i32
    %487 = tpu.dynamic_rotate %483 by %c126_i32_99 dim 1 : vector<24x128xf32>, i32 -> vector<24x128xf32>
    %488 = vector.broadcast %24 : f32 to vector<24x128xf32>
    %489 = arith.mulf %488, %484 : vector<24x128xf32>
    %490 = vector.broadcast %23 : f32 to vector<24x128xf32>
    %491 = arith.mulf %490, %485 : vector<24x128xf32>
    %492 = arith.addf %489, %491 : vector<24x128xf32>
    %493 = vector.broadcast %22 : f32 to vector<24x128xf32>
    %494 = arith.mulf %493, %483 : vector<24x128xf32>
    %495 = arith.addf %492, %494 : vector<24x128xf32>
    %496 = vector.broadcast %21 : f32 to vector<24x128xf32>
    %497 = arith.mulf %496, %486 : vector<24x128xf32>
    %498 = arith.addf %495, %497 : vector<24x128xf32>
    %499 = vector.broadcast %20 : f32 to vector<24x128xf32>
    %500 = arith.mulf %499, %487 : vector<24x128xf32>
    %501 = arith.addf %498, %500 : vector<24x128xf32>
    %c2_i32_100 = arith.constant 2 : i32
    %502 = tpu.dynamic_rotate %501 by %c2_i32_100 dim 0 : vector<24x128xf32>, i32 -> vector<24x128xf32>
    %503 = vector.broadcast %19 : f32 to vector<24x128xf32>
    %504 = arith.mulf %503, %484 : vector<24x128xf32>
    %505 = vector.broadcast %18 : f32 to vector<24x128xf32>
    %506 = arith.mulf %505, %485 : vector<24x128xf32>
    %507 = arith.addf %504, %506 : vector<24x128xf32>
    %508 = vector.broadcast %17 : f32 to vector<24x128xf32>
    %509 = arith.mulf %508, %483 : vector<24x128xf32>
    %510 = arith.addf %507, %509 : vector<24x128xf32>
    %511 = vector.broadcast %16 : f32 to vector<24x128xf32>
    %512 = arith.mulf %511, %486 : vector<24x128xf32>
    %513 = arith.addf %510, %512 : vector<24x128xf32>
    %514 = vector.broadcast %15 : f32 to vector<24x128xf32>
    %515 = arith.mulf %514, %487 : vector<24x128xf32>
    %516 = arith.addf %513, %515 : vector<24x128xf32>
    %c1_i32_101 = arith.constant 1 : i32
    %517 = tpu.dynamic_rotate %516 by %c1_i32_101 dim 0 : vector<24x128xf32>, i32 -> vector<24x128xf32>
    %518 = arith.addf %502, %517 : vector<24x128xf32>
    %519 = vector.broadcast %14 : f32 to vector<24x128xf32>
    %520 = arith.mulf %519, %484 : vector<24x128xf32>
    %521 = vector.broadcast %13 : f32 to vector<24x128xf32>
    %522 = arith.mulf %521, %485 : vector<24x128xf32>
    %523 = arith.addf %520, %522 : vector<24x128xf32>
    %524 = vector.broadcast %12 : f32 to vector<24x128xf32>
    %525 = arith.mulf %524, %483 : vector<24x128xf32>
    %526 = arith.addf %523, %525 : vector<24x128xf32>
    %527 = vector.broadcast %11 : f32 to vector<24x128xf32>
    %528 = arith.mulf %527, %486 : vector<24x128xf32>
    %529 = arith.addf %526, %528 : vector<24x128xf32>
    %530 = vector.broadcast %10 : f32 to vector<24x128xf32>
    %531 = arith.mulf %530, %487 : vector<24x128xf32>
    %532 = arith.addf %529, %531 : vector<24x128xf32>
    %533 = arith.addf %518, %532 : vector<24x128xf32>
    %534 = vector.broadcast %9 : f32 to vector<24x128xf32>
    %535 = arith.mulf %534, %484 : vector<24x128xf32>
    %536 = vector.broadcast %8 : f32 to vector<24x128xf32>
    %537 = arith.mulf %536, %485 : vector<24x128xf32>
    %538 = arith.addf %535, %537 : vector<24x128xf32>
    %539 = vector.broadcast %7 : f32 to vector<24x128xf32>
    %540 = arith.mulf %539, %483 : vector<24x128xf32>
    %541 = arith.addf %538, %540 : vector<24x128xf32>
    %542 = vector.broadcast %6 : f32 to vector<24x128xf32>
    %543 = arith.mulf %542, %486 : vector<24x128xf32>
    %544 = arith.addf %541, %543 : vector<24x128xf32>
    %545 = vector.broadcast %5 : f32 to vector<24x128xf32>
    %546 = arith.mulf %545, %487 : vector<24x128xf32>
    %547 = arith.addf %544, %546 : vector<24x128xf32>
    %c23_i32_102 = arith.constant 23 : i32
    %548 = tpu.dynamic_rotate %547 by %c23_i32_102 dim 0 : vector<24x128xf32>, i32 -> vector<24x128xf32>
    %549 = arith.addf %533, %548 : vector<24x128xf32>
    %550 = vector.broadcast %4 : f32 to vector<24x128xf32>
    %551 = arith.mulf %550, %484 : vector<24x128xf32>
    %552 = vector.broadcast %3 : f32 to vector<24x128xf32>
    %553 = arith.mulf %552, %485 : vector<24x128xf32>
    %554 = arith.addf %551, %553 : vector<24x128xf32>
    %555 = vector.broadcast %2 : f32 to vector<24x128xf32>
    %556 = arith.mulf %555, %483 : vector<24x128xf32>
    %557 = arith.addf %554, %556 : vector<24x128xf32>
    %558 = vector.broadcast %1 : f32 to vector<24x128xf32>
    %559 = arith.mulf %558, %486 : vector<24x128xf32>
    %560 = arith.addf %557, %559 : vector<24x128xf32>
    %561 = vector.broadcast %0 : f32 to vector<24x128xf32>
    %562 = arith.mulf %561, %487 : vector<24x128xf32>
    %563 = arith.addf %560, %562 : vector<24x128xf32>
    %c22_i32_103 = arith.constant 22 : i32
    %564 = tpu.dynamic_rotate %563 by %c22_i32_103 dim 0 : vector<24x128xf32>, i32 -> vector<24x128xf32>
    %565 = arith.addf %549, %564 : vector<24x128xf32>
    %566 = arith.mulf %389, %565 : vector<24x128xf32>
    %cst_104 = arith.constant 0.000000e+00 : f32
    %567 = vector.broadcast %cst_104 : f32 to vector<24x128xf32>
    %568 = arith.select %27, %566, %567 : vector<24x128xi1>, vector<24x128xf32>
    %c2_i32_105 = arith.constant 2 : i32
    %569 = tpu.dynamic_rotate %568 by %c2_i32_105 dim 1 : vector<24x128xf32>, i32 -> vector<24x128xf32>
    %c1_i32_106 = arith.constant 1 : i32
    %570 = tpu.dynamic_rotate %568 by %c1_i32_106 dim 1 : vector<24x128xf32>, i32 -> vector<24x128xf32>
    %c127_i32_107 = arith.constant 127 : i32
    %571 = tpu.dynamic_rotate %568 by %c127_i32_107 dim 1 : vector<24x128xf32>, i32 -> vector<24x128xf32>
    %c126_i32_108 = arith.constant 126 : i32
    %572 = tpu.dynamic_rotate %568 by %c126_i32_108 dim 1 : vector<24x128xf32>, i32 -> vector<24x128xf32>
    %573 = vector.broadcast %0 : f32 to vector<24x128xf32>
    %574 = arith.mulf %573, %569 : vector<24x128xf32>
    %575 = vector.broadcast %1 : f32 to vector<24x128xf32>
    %576 = arith.mulf %575, %570 : vector<24x128xf32>
    %577 = arith.addf %574, %576 : vector<24x128xf32>
    %578 = vector.broadcast %2 : f32 to vector<24x128xf32>
    %579 = arith.mulf %578, %568 : vector<24x128xf32>
    %580 = arith.addf %577, %579 : vector<24x128xf32>
    %581 = vector.broadcast %3 : f32 to vector<24x128xf32>
    %582 = arith.mulf %581, %571 : vector<24x128xf32>
    %583 = arith.addf %580, %582 : vector<24x128xf32>
    %584 = vector.broadcast %4 : f32 to vector<24x128xf32>
    %585 = arith.mulf %584, %572 : vector<24x128xf32>
    %586 = arith.addf %583, %585 : vector<24x128xf32>
    %c2_i32_109 = arith.constant 2 : i32
    %587 = tpu.dynamic_rotate %586 by %c2_i32_109 dim 0 : vector<24x128xf32>, i32 -> vector<24x128xf32>
    %588 = vector.broadcast %5 : f32 to vector<24x128xf32>
    %589 = arith.mulf %588, %569 : vector<24x128xf32>
    %590 = vector.broadcast %6 : f32 to vector<24x128xf32>
    %591 = arith.mulf %590, %570 : vector<24x128xf32>
    %592 = arith.addf %589, %591 : vector<24x128xf32>
    %593 = vector.broadcast %7 : f32 to vector<24x128xf32>
    %594 = arith.mulf %593, %568 : vector<24x128xf32>
    %595 = arith.addf %592, %594 : vector<24x128xf32>
    %596 = vector.broadcast %8 : f32 to vector<24x128xf32>
    %597 = arith.mulf %596, %571 : vector<24x128xf32>
    %598 = arith.addf %595, %597 : vector<24x128xf32>
    %599 = vector.broadcast %9 : f32 to vector<24x128xf32>
    %600 = arith.mulf %599, %572 : vector<24x128xf32>
    %601 = arith.addf %598, %600 : vector<24x128xf32>
    %c1_i32_110 = arith.constant 1 : i32
    %602 = tpu.dynamic_rotate %601 by %c1_i32_110 dim 0 : vector<24x128xf32>, i32 -> vector<24x128xf32>
    %603 = arith.addf %587, %602 : vector<24x128xf32>
    %604 = vector.broadcast %10 : f32 to vector<24x128xf32>
    %605 = arith.mulf %604, %569 : vector<24x128xf32>
    %606 = vector.broadcast %11 : f32 to vector<24x128xf32>
    %607 = arith.mulf %606, %570 : vector<24x128xf32>
    %608 = arith.addf %605, %607 : vector<24x128xf32>
    %609 = vector.broadcast %12 : f32 to vector<24x128xf32>
    %610 = arith.mulf %609, %568 : vector<24x128xf32>
    %611 = arith.addf %608, %610 : vector<24x128xf32>
    %612 = vector.broadcast %13 : f32 to vector<24x128xf32>
    %613 = arith.mulf %612, %571 : vector<24x128xf32>
    %614 = arith.addf %611, %613 : vector<24x128xf32>
    %615 = vector.broadcast %14 : f32 to vector<24x128xf32>
    %616 = arith.mulf %615, %572 : vector<24x128xf32>
    %617 = arith.addf %614, %616 : vector<24x128xf32>
    %618 = arith.addf %603, %617 : vector<24x128xf32>
    %619 = vector.broadcast %15 : f32 to vector<24x128xf32>
    %620 = arith.mulf %619, %569 : vector<24x128xf32>
    %621 = vector.broadcast %16 : f32 to vector<24x128xf32>
    %622 = arith.mulf %621, %570 : vector<24x128xf32>
    %623 = arith.addf %620, %622 : vector<24x128xf32>
    %624 = vector.broadcast %17 : f32 to vector<24x128xf32>
    %625 = arith.mulf %624, %568 : vector<24x128xf32>
    %626 = arith.addf %623, %625 : vector<24x128xf32>
    %627 = vector.broadcast %18 : f32 to vector<24x128xf32>
    %628 = arith.mulf %627, %571 : vector<24x128xf32>
    %629 = arith.addf %626, %628 : vector<24x128xf32>
    %630 = vector.broadcast %19 : f32 to vector<24x128xf32>
    %631 = arith.mulf %630, %572 : vector<24x128xf32>
    %632 = arith.addf %629, %631 : vector<24x128xf32>
    %c23_i32_111 = arith.constant 23 : i32
    %633 = tpu.dynamic_rotate %632 by %c23_i32_111 dim 0 : vector<24x128xf32>, i32 -> vector<24x128xf32>
    %634 = arith.addf %618, %633 : vector<24x128xf32>
    %635 = vector.broadcast %20 : f32 to vector<24x128xf32>
    %636 = arith.mulf %635, %569 : vector<24x128xf32>
    %637 = vector.broadcast %21 : f32 to vector<24x128xf32>
    %638 = arith.mulf %637, %570 : vector<24x128xf32>
    %639 = arith.addf %636, %638 : vector<24x128xf32>
    %640 = vector.broadcast %22 : f32 to vector<24x128xf32>
    %641 = arith.mulf %640, %568 : vector<24x128xf32>
    %642 = arith.addf %639, %641 : vector<24x128xf32>
    %643 = vector.broadcast %23 : f32 to vector<24x128xf32>
    %644 = arith.mulf %643, %571 : vector<24x128xf32>
    %645 = arith.addf %642, %644 : vector<24x128xf32>
    %646 = vector.broadcast %24 : f32 to vector<24x128xf32>
    %647 = arith.mulf %646, %572 : vector<24x128xf32>
    %648 = arith.addf %645, %647 : vector<24x128xf32>
    %c22_i32_112 = arith.constant 22 : i32
    %649 = tpu.dynamic_rotate %648 by %c22_i32_112 dim 0 : vector<24x128xf32>, i32 -> vector<24x128xf32>
    %650 = arith.addf %634, %649 : vector<24x128xf32>
    %651 = tpu.reciprocal %650 {approx = true} : vector<24x128xf32> -> vector<24x128xf32>
    %652 = arith.mulf %650, %651 : vector<24x128xf32>
    %cst_113 = arith.constant 2.000000e+00 : f32
    %653 = vector.broadcast %cst_113 : f32 to vector<24x128xf32>
    %654 = arith.subf %653, %652 : vector<24x128xf32>
    %655 = arith.mulf %651, %654 : vector<24x128xf32>
    %656 = arith.mulf %650, %655 : vector<24x128xf32>
    %cst_114 = arith.constant 2.000000e+00 : f32
    %657 = vector.broadcast %cst_114 : f32 to vector<24x128xf32>
    %658 = arith.subf %657, %656 : vector<24x128xf32>
    %659 = arith.mulf %655, %658 : vector<24x128xf32>
    %660 = arith.mulf %29, %659 : vector<24x128xf32>
    %cst_115 = arith.constant 0.000000e+00 : f32
    %661 = vector.broadcast %cst_115 : f32 to vector<24x128xf32>
    %662 = arith.select %27, %660, %661 : vector<24x128xi1>, vector<24x128xf32>
    %c2_i32_116 = arith.constant 2 : i32
    %663 = tpu.dynamic_rotate %662 by %c2_i32_116 dim 1 : vector<24x128xf32>, i32 -> vector<24x128xf32>
    %c1_i32_117 = arith.constant 1 : i32
    %664 = tpu.dynamic_rotate %662 by %c1_i32_117 dim 1 : vector<24x128xf32>, i32 -> vector<24x128xf32>
    %c127_i32_118 = arith.constant 127 : i32
    %665 = tpu.dynamic_rotate %662 by %c127_i32_118 dim 1 : vector<24x128xf32>, i32 -> vector<24x128xf32>
    %c126_i32_119 = arith.constant 126 : i32
    %666 = tpu.dynamic_rotate %662 by %c126_i32_119 dim 1 : vector<24x128xf32>, i32 -> vector<24x128xf32>
    %667 = vector.broadcast %24 : f32 to vector<24x128xf32>
    %668 = arith.mulf %667, %663 : vector<24x128xf32>
    %669 = vector.broadcast %23 : f32 to vector<24x128xf32>
    %670 = arith.mulf %669, %664 : vector<24x128xf32>
    %671 = arith.addf %668, %670 : vector<24x128xf32>
    %672 = vector.broadcast %22 : f32 to vector<24x128xf32>
    %673 = arith.mulf %672, %662 : vector<24x128xf32>
    %674 = arith.addf %671, %673 : vector<24x128xf32>
    %675 = vector.broadcast %21 : f32 to vector<24x128xf32>
    %676 = arith.mulf %675, %665 : vector<24x128xf32>
    %677 = arith.addf %674, %676 : vector<24x128xf32>
    %678 = vector.broadcast %20 : f32 to vector<24x128xf32>
    %679 = arith.mulf %678, %666 : vector<24x128xf32>
    %680 = arith.addf %677, %679 : vector<24x128xf32>
    %c2_i32_120 = arith.constant 2 : i32
    %681 = tpu.dynamic_rotate %680 by %c2_i32_120 dim 0 : vector<24x128xf32>, i32 -> vector<24x128xf32>
    %682 = vector.broadcast %19 : f32 to vector<24x128xf32>
    %683 = arith.mulf %682, %663 : vector<24x128xf32>
    %684 = vector.broadcast %18 : f32 to vector<24x128xf32>
    %685 = arith.mulf %684, %664 : vector<24x128xf32>
    %686 = arith.addf %683, %685 : vector<24x128xf32>
    %687 = vector.broadcast %17 : f32 to vector<24x128xf32>
    %688 = arith.mulf %687, %662 : vector<24x128xf32>
    %689 = arith.addf %686, %688 : vector<24x128xf32>
    %690 = vector.broadcast %16 : f32 to vector<24x128xf32>
    %691 = arith.mulf %690, %665 : vector<24x128xf32>
    %692 = arith.addf %689, %691 : vector<24x128xf32>
    %693 = vector.broadcast %15 : f32 to vector<24x128xf32>
    %694 = arith.mulf %693, %666 : vector<24x128xf32>
    %695 = arith.addf %692, %694 : vector<24x128xf32>
    %c1_i32_121 = arith.constant 1 : i32
    %696 = tpu.dynamic_rotate %695 by %c1_i32_121 dim 0 : vector<24x128xf32>, i32 -> vector<24x128xf32>
    %697 = arith.addf %681, %696 : vector<24x128xf32>
    %698 = vector.broadcast %14 : f32 to vector<24x128xf32>
    %699 = arith.mulf %698, %663 : vector<24x128xf32>
    %700 = vector.broadcast %13 : f32 to vector<24x128xf32>
    %701 = arith.mulf %700, %664 : vector<24x128xf32>
    %702 = arith.addf %699, %701 : vector<24x128xf32>
    %703 = vector.broadcast %12 : f32 to vector<24x128xf32>
    %704 = arith.mulf %703, %662 : vector<24x128xf32>
    %705 = arith.addf %702, %704 : vector<24x128xf32>
    %706 = vector.broadcast %11 : f32 to vector<24x128xf32>
    %707 = arith.mulf %706, %665 : vector<24x128xf32>
    %708 = arith.addf %705, %707 : vector<24x128xf32>
    %709 = vector.broadcast %10 : f32 to vector<24x128xf32>
    %710 = arith.mulf %709, %666 : vector<24x128xf32>
    %711 = arith.addf %708, %710 : vector<24x128xf32>
    %712 = arith.addf %697, %711 : vector<24x128xf32>
    %713 = vector.broadcast %9 : f32 to vector<24x128xf32>
    %714 = arith.mulf %713, %663 : vector<24x128xf32>
    %715 = vector.broadcast %8 : f32 to vector<24x128xf32>
    %716 = arith.mulf %715, %664 : vector<24x128xf32>
    %717 = arith.addf %714, %716 : vector<24x128xf32>
    %718 = vector.broadcast %7 : f32 to vector<24x128xf32>
    %719 = arith.mulf %718, %662 : vector<24x128xf32>
    %720 = arith.addf %717, %719 : vector<24x128xf32>
    %721 = vector.broadcast %6 : f32 to vector<24x128xf32>
    %722 = arith.mulf %721, %665 : vector<24x128xf32>
    %723 = arith.addf %720, %722 : vector<24x128xf32>
    %724 = vector.broadcast %5 : f32 to vector<24x128xf32>
    %725 = arith.mulf %724, %666 : vector<24x128xf32>
    %726 = arith.addf %723, %725 : vector<24x128xf32>
    %c23_i32_122 = arith.constant 23 : i32
    %727 = tpu.dynamic_rotate %726 by %c23_i32_122 dim 0 : vector<24x128xf32>, i32 -> vector<24x128xf32>
    %728 = arith.addf %712, %727 : vector<24x128xf32>
    %729 = vector.broadcast %4 : f32 to vector<24x128xf32>
    %730 = arith.mulf %729, %663 : vector<24x128xf32>
    %731 = vector.broadcast %3 : f32 to vector<24x128xf32>
    %732 = arith.mulf %731, %664 : vector<24x128xf32>
    %733 = arith.addf %730, %732 : vector<24x128xf32>
    %734 = vector.broadcast %2 : f32 to vector<24x128xf32>
    %735 = arith.mulf %734, %662 : vector<24x128xf32>
    %736 = arith.addf %733, %735 : vector<24x128xf32>
    %737 = vector.broadcast %1 : f32 to vector<24x128xf32>
    %738 = arith.mulf %737, %665 : vector<24x128xf32>
    %739 = arith.addf %736, %738 : vector<24x128xf32>
    %740 = vector.broadcast %0 : f32 to vector<24x128xf32>
    %741 = arith.mulf %740, %666 : vector<24x128xf32>
    %742 = arith.addf %739, %741 : vector<24x128xf32>
    %c22_i32_123 = arith.constant 22 : i32
    %743 = tpu.dynamic_rotate %742 by %c22_i32_123 dim 0 : vector<24x128xf32>, i32 -> vector<24x128xf32>
    %744 = arith.addf %728, %743 : vector<24x128xf32>
    %745 = arith.mulf %568, %744 : vector<24x128xf32>
    %cst_124 = arith.constant 0.000000e+00 : f32
    %746 = vector.broadcast %cst_124 : f32 to vector<24x128xf32>
    %747 = arith.select %27, %745, %746 : vector<24x128xi1>, vector<24x128xf32>
    %cst_125 = arith.constant -1.000000e+00 : f32
    %cst_126 = arith.constant 1.000000e+00 : f32
    %748 = vector.broadcast %cst_125 : f32 to vector<24x128xf32>
    %749 = arith.maximumf %748, %747 : vector<24x128xf32>
    %750 = vector.broadcast %cst_126 : f32 to vector<24x128xf32>
    %751 = arith.minimumf %750, %749 : vector<24x128xf32>
    %c0_127 = arith.constant 0 : index
    %c0_128 = arith.constant 0 : index
    %c0_129 = arith.constant 0 : index
    %752 = vector.load %arg4[%c0_127, %c0_128, %c0_129] : memref<1x24x128xf32, #tpu.memory_space<vmem>>, vector<1x24x128xf32>
    %753 = vector.shape_cast %752 : vector<1x24x128xf32> to vector<24x128xf32>
    %754 = vector.shape_cast %751 : vector<24x128xf32> to vector<1x24x128xf32>
    tpu.vector_store %arg4[%c0_127, %c0_128, %c0_129], %754 {strides = array<i32>} : memref<1x24x128xf32, #tpu.memory_space<vmem>>, vector<1x24x128xf32>,
    return
  }
  func.func @transform_0(%arg0: i32) -> (i32, i32) {
    %c0_i32 = arith.constant 0 : i32
    %c0_i32_0 = arith.constant 0 : i32
    %c0_i32_1 = arith.constant 0 : i32
    return %c0_i32, %c0_i32_0 : i32, i32
  }
  func.func @transform_1(%arg0: i32) -> (i32, i32) {
    %c0_i32 = arith.constant 0 : i32
    %c0_i32_0 = arith.constant 0 : i32
    %c0_i32_1 = arith.constant 0 : i32
    return %c0_i32, %c0_i32_0 : i32, i32
  }
  func.func @transform_2(%arg0: i32) -> (i32, i32, i32) {
    %c0_i32 = arith.constant 0 : i32
    %c0_i32_0 = arith.constant 0 : i32
    %c0_i32_1 = arith.constant 0 : i32
    return %arg0, %c0_i32, %c0_i32_0 : i32, i32, i32
  }
  func.func @transform_3(%arg0: i32) -> (i32, i32, i32) {
    %c0_i32 = arith.constant 0 : i32
    %c0_i32_0 = arith.constant 0 : i32
    %c0_i32_1 = arith.constant 0 : i32
    return %arg0, %c0_i32, %c0_i32_0 : i32, i32, i32
  }
}

</mosaic_0001>

<bundles_post_ra>
// kernel: tpu_custom_call.1
= control target key start
LH: loop header
LB: loop body
LE: loop exit
PB: predicated region body
PF: predicated region fallthrough
CT: control target
= control target key end

     0   :  { %s4333_s0 = inlined_call_operand.hbm [shape: f32[5,5], index: 0, kind: input, shape index: {}]   ;;  %s4334_s1 = inlined_call_operand.hbm [shape: f32[24,128], index: 1, kind: input, shape index: {}]   ;;  %s4335_s2 = inlined_call_operand.hbm [shape: f32[3,24,128], index: 2, kind: input, shape index: {}]   ;;  %s4336_s3 = inlined_call_operand.hbm [shape: f32[3,24,128], index: 3, kind: output, shape index: {}]  }
   0x1   :  { %4487 = sst [smem:[#allocation52_spill]] %s4333_s0 }
   0x2   :  { %4488 = sst [smem:[#allocation53_spill]] %s4334_s1 }
   0x3   :  { %4489 = sst [smem:[#allocation54_spill]] %s4335_s2 }
   0x4   :  { %8 = vsyncpa [#allocation5], 0 }
   0x5   :  { %9 = vsyncpa [#allocation3], 0 }
   0x6   :  { %10 = vsyncpa [#allocation8], 0 }
   0x7   :  { %12 = vsyncpa [#allocation8 + $0x1], 0 }
   0x8   :  { %13 = vsyncpa [#allocation4], 0 }
   0x9   :  { %15 = vsyncpa [#allocation4 + $0x1], 0  ;;  %s2420_s12 = smov 0   ;;  %s2422_s13 = smov 0  }
   0xa   :  { %s2424_s14 = smov 0   ;;  %s2426_s15 = smov 0  }
   0xb LB: > { %4490 = sst [smem:[#allocation14_spill]] %s2378_s13  ;;  %s2441_s16 = sadd.s32 4294967295, %s2386_s15   ;;  %s2386_s15 = sphi %s2426_s15, %s4686_s15   ;;  %s2382_s14 = sphi %s2424_s14, %s4689_s14   ;;  %s2378_s13 = sphi %s2422_s13, %s4688_s13   ;;  %s2374_s12 = sphi %s2420_s12, %s4687_s12  }
   0xc   : > { %4491 = sst [smem:[#allocation15_spill]] %s2382_s14  ;;  %s2096_s17 = sadd.s32 4294967294, %s2386_s15  }
   0xd   : > { %s2445_s18 = sadd.s32 1, %s2386_s15   ;;  %s70_s19 = sadd.s32 1, %s2382_s14 }
   0xe   : > { %4492 = sst [smem:[#allocation16_spill]] %s2445_s18  ;;  %s67_s20 = ssub.s32 %s2386_s15, %s2445_s18 }
   0xf   : > { %p77_p0 = scmp.ne.s32.totalorder %s2382_s14, %s2378_s13  ;;  %p68_p1 = scmp.eq.s32.totalorder %s67_s20, 0 }
  0x10   : > { %p78_p2 = scmp.eq.s32.totalorder %s2386_s15, 0  ;;  %p83_p3 = scmp.ne.s32.totalorder %s2378_s13, %s2374_s12 }
  0x11   : > { %p4338_p4 = scmp.eq.s32.totalorder %s2441_s16, 0  ;;  %p107_p7 = scmp.eq.s32.totalorder %s2441_s16, 2 }
  0x12   : > { %s2457_s21 = scalar_select %p68_p1, %s2382_s14, %s70_s19  }
  0x13   : > { %p79_p5 = por %p78_p2, %p77_p0  ;;  %p2461_p6 = por %p4338_p4, %p83_p3 }
  0x14   : > { %4493 = sst [smem:[#allocation17_spill]] %s2457_s21  ;;  %p113_p8 = scmp.eq.s32.totalorder %s2096_s17, 2 }
  0x15   : > { %s4494_s22 = scalar_select %p2461_p6, 1, 0 }
  0x16   : > { %p2097_p9 = scmp.ge.s32.totalorder %s2386_s15, 1  ;;  %p120_p10 = scmp.lt.s32.totalorder %s2386_s15, 4 }
  0x17   : > { %p2468_p11 = por %p107_p7, %p77_p0  ;;  %p2472_p12 = por %p113_p8, %p83_p3 }
  0x18   : > { %p2476_p13 = pnand %p2097_p9, %p120_p10  ;;  %p2168_p2 = scmp.lt.s32.totalorder %s2386_s15, 3 }
  0x19   : > { %s4495_s23 = scalar_select %p2468_p11, 1, 0 }
  0x1a   : > { %s4496_s24 = scalar_select %p2472_p12, 1, 0 }
  0x1b   : > { %s4498_s25 = scalar_select %p2476_p13, 1, 0 }
  0x1c   : > { %4497 = sst [smem:[#allocation18_spill]] %s4496_s24  ;;  %p2151_p1 = pneg %p2476_p13 }
  0x1d   : > { %p2489_p0 = pnand %p2168_p2, %p79_p5  ;;  %s2388_s28 = smov [#allocation6]  }
  0x1e   : > { %p2485_p6 = pnand %p2151_p1, %p4338_p4  ;;  %s141_s29 = sshll.u32 %s2388_s28, 4  ;;  %s142_s29 = int_to_ptr.vmem [resolvable:$true] %s141_s29 }
  0x1f   : > { %s4500_s27 = scalar_select %p2489_p0, 1, 0 }
  0x20   : > { %s4501_s0 = sld [smem:[#allocation52_spill]]  ;;  %p2243_p7 = pneg %p2485_p6 }
  0x26   : > { %s2241_s5 = scalar_lea.hbm %s4501_s0, 128 }
  0x27   : > { %p2242_p3 = scmp.ne.s32.totalorder %s4501_s0, %s2241_s5  ;;  %p2248_p5 = scmp.lt.u32.totalorder %s2241_s5, %s4501_s0 }
  0x29   : > { %p2244_p8 = pnand %p2243_p7, %p2242_p3 }
  0x2b   : > { %p2245_p9 = pneg %p2244_p8 }
  0x2d   : > { %p2250_p10 = pnand %p2248_p5, %p2245_p9 }
  0x2f   : > { %2253 = shalt.err (!%p2250_p10)
}
  0x30   : > { %s2389_s10 = smov [#allocation2]   ;;  %s155_s19 = sand.u32 1, %s2382_s14  }
  0x31   : > { %2154 = dma.hbm_to_smem (!%p2485_p6), %s4501_s0, 128, %s2389_s10, [#allocation5]  }
  0x32   : > { %s4502_s1 = sld [smem:[#allocation53_spill]] }
  0x38   : > { %s2254_s30 = scalar_lea.hbm %s4502_s1, 384 }
  0x39   : > { %p2255_p1 = scmp.ne.s32.totalorder %s4502_s1, %s2254_s30  ;;  %p2261_p8 = scmp.lt.u32.totalorder %s2254_s30, %s4502_s1 }
  0x3b   : > { %p2257_p2 = pnand %p2255_p1, %p2243_p7 }
  0x3d   : > { %p2258_p3 = pneg %p2257_p2 }
  0x3f   : > { %p2263_p9 = pnand %p2261_p8, %p2258_p3 }
  0x41   : > { %2266 = shalt.err (!%p2263_p9)
}
  0x42   : > { %s2267_s8 = scalar_lea.vmem %s142_s29, 384  ;;  %p2275_p12 = scmp.lt.s32.totalorder %s142_s29, %s142_s29 }
  0x43   : > { %p2268_p5 = scmp.ne.s32.totalorder %s142_s29, %s2267_s8  ;;  %p2276_p11 = scmp.lt.s32.totalorder %s2267_s8, %s2267_s8 }
  0x45   : > { %p2270_p10 = pnand %p2268_p5, %p2243_p7  ;;  %p2277_p13 = por %p2276_p11, %p2275_p12 }
  0x47   : > { %p2271_p4 = pneg %p2270_p10 }
  0x49   : > { %p2278_p0 = pnand %p2277_p13, %p2271_p4 }
  0x4b   : > { %2281 = shalt.err (!%p2278_p0)
}
  0x4c   : > { %s2390_s9 = smov 128   ;;  %s2391_s10 = smov 8  }
  0x4d   : > { %2157 = dma.hbm_to_vmem [thread:$0]  (!%p2485_p6), %s4502_s1, 384, %s142_s29, [#allocation3], %s2390_s9, %s2390_s9, %s2391_s10  }
  0x4e   : > { %s2135_s20 = smul.u32 24, %s155_s19  ;;  %s4503_s2 = sld [smem:[#allocation54_spill]] }
  0x4f   : > { %s2136_s28 = smul.u32 384, %s2386_s15  ;;  %s2544_s7 = scalar_lea.sflag [#allocation8], %s155_s19 }
  0x50   : > { %s159_s5 = scalar_lea.vmem [#allocation7], %s2135_s20  ;;  %p4504_p6 = scmp.ne.s32.totalorder %s4500_s27, 0 }
  0x51   : > { %s166_s26 = sshll.u32 %s159_s5, 4  ;;  %s2542_s26 = int_to_ptr.vmem [resolvable:$true] %s166_s26 }
  0x52   : > { %p2284_p11 = pneg %p4504_p6 }
  0x54   : > { %s2540_s6 = scalar_lea.hbm %s4503_s2, %s2136_s28  ;;  %s2287_s17 = scalar_lea.hbm %s4503_s2, 1152 }
  0x55   : > { %s2282_s8 = scalar_lea.hbm %s2540_s6, 384  ;;  %p2288_p0 = scmp.lt.u32.totalorder %s2540_s6, %s4503_s2 }
  0x56   : > { %p2283_p4 = scmp.ne.s32.totalorder %s2540_s6, %s2282_s8  ;;  %p2289_p7 = scmp.lt.u32.totalorder %s2287_s17, %s2282_s8 }
  0x57   : > { %p2291_p2 = scmp.lt.u32.totalorder %s2282_s8, %s2540_s6 }
  0x58   : > { %p2285_p12 = pnand %p2284_p11, %p2283_p4  ;;  %p2290_p1 = por %p2289_p7, %p2288_p0 }
  0x5a   : > { %p2286_p13 = pneg %p2285_p12  ;;  %p2292_p3 = por %p2291_p2, %p2290_p1 }
  0x5c   : > { %p2293_p8 = pnand %p2292_p3, %p2286_p13 }
  0x5e   : > { %2296 = shalt.err (!%p2293_p8)
}
  0x5f   : > { %s2297_s19 = scalar_lea.vmem %s2542_s26, 384  ;;  %s2392_s20 = smov [#allocation7]  }
  0x60   : > { %p2298_p9 = scmp.ne.s32.totalorder %s2542_s26, %s2297_s19  ;;  %s2302_s4 = sshll.u32 %s2392_s20, 4  ;;  %s2303_s4 = int_to_ptr.vmem [resolvable:$false] %s2302_s4 }
  0x61   : > { %s2304_s5 = scalar_lea.vmem %s2303_s4, 768  ;;  %p2305_p4 = scmp.lt.s32.totalorder %s2542_s26, %s2303_s4 }
  0x62   : > { %p2300_p5 = pnand %p2298_p9, %p2284_p11  ;;  %p2306_p12 = scmp.lt.s32.totalorder %s2304_s5, %s2297_s19 }
  0x64   : > { %p2301_p10 = pneg %p2300_p5  ;;  %p2307_p0 = por %p2306_p12, %p2305_p4 }
  0x66   : > { %p2308_p7 = pnand %p2307_p0, %p2301_p10 }
  0x68   : > { %2311 = shalt.err (!%p2308_p7)
}
  0x69   : > { %2161 = dma.hbm_to_vmem [thread:$0]  (!%p4504_p6), %s2540_s6, 384, %s2542_s26, %s2544_s7, %s2390_s9, %s2390_s9, %s2391_s10  }
  0x6a   : > { %p4505_p11 = scmp.ne.s32.totalorder %s4498_s25, 0 }
  0x6c   : > { %178 = sbr.rel (%p4505_p11) target bundleno = 1537 (0x601), region = 32 }
  0x73   : > { %p4506_p13 = scmp.eq.s32.totalorder %s2441_s16, 0 }
  0x75   : > { %2357 = dma.done.wait (%p4506_p13), [#allocation5], 128   ;;  %p4507_p1 = pmov %p4506_p13 }
  0x77   : > { %2359 = vsyncadd (%p4507_p1), [#allocation5], 4294967168  ;;  %p4508_p2 = pmov %p4507_p1 }
  0x78   : > { %p4509_p3 = pmov %p4507_p1 }
  0x79   : > { %2361 = dma.done.wait (%p4508_p2), [#allocation3], 384  }
  0x7a   : > { %2363 = vsyncadd (%p4509_p3), [#allocation3], 4294966912  ;;  %s2586_s27 = sand.u32 1, %s2378_s13   ;;  %p4510_p6 = scmp.ne.s32.totalorder %s4494_s22, 0 }
  0x7b   : > { %s4342_s25 = smul.u32 24, %s2586_s27  ;;  %s189_s9 = scalar_lea.sflag [#allocation8], %s2586_s27 }
  0x7d   : > { %s2592_s10 = scalar_lea.vmem [#allocation7], %s4342_s25 }
  0x7e   : > { %2365 = dma.done.wait (%p4510_p6), %s189_s9, 384  }
  0x7f   : > { %2367 = vsyncadd (%p4510_p6), %s189_s9, 4294966912 }
  0x80   : > { %197 = sfence }
  0x81   : > { %v2598_v0 = vld [vmem:[#allocation6 + $0x10] sm:$0xff]  ;;  %v2600_v1 = vld [vmem:[#allocation6] sm:$0xff]  ;;  %v2602_v2 = vld [vmem:[#allocation6 + $0x8] sm:$0xff]  ;;  %s4347_s6 = smov 2   ;;  %s4343_s22 = smov 1   ;;  %v312_v35 = vlaneseq }
  0x82   : > { %4511 = vst [vmem:[#allocation19_spill] sm:$0xff] %v2598_v0  ;;  %4512 = vst [vmem:[#allocation20_spill] sm:$0xff] %v2600_v1  ;;  %v2605_v3 = vmul.f32 0.5, %v2598_v0  ;;  %v2608_v4 = vmul.f32 0.5, %v2600_v1  ;;  %v2615_v5 = vmul.f32 0.5, %v2602_v2  ;;  %s4345_s26 = smov 127  }
  0x83   : > { %4513 = vst [vmem:[#allocation21_spill] sm:$0xff] %v2602_v2  ;;  %s4349_s7 = smov 126   ;;  %s216_s8 = sld [smem:[#allocation2]]  ;;  %v2767_v53 = vshrl.u32 %v312_v35, 7 }
  0x84   : > { %4514 = vst [vmem:[#allocation22_spill] sm:$0xff] %v2605_v3  ;;  %4515 = vst [vmem:[#allocation23_spill] sm:$0xff] %v2608_v4  ;;  %257 = vrot.lane.b32.xlu1 %v2605_v3, %s4347_s6  ;;  %253 = vrot.lane.b32.xlu0 %v2608_v4, %s4347_s6  ;;  %s2109_s29 = sld [smem:[#allocation2 + $0x80]]  ;;  %s2105_s30 = sld [smem:[#allocation2 + $0x1]] }
  0x85   : > { %4516 = vst [vmem:[#allocation24_spill] sm:$0xff] %v2615_v5  ;;  %s2114_s11 = sld [smem:[#allocation2 + $0x100]]  ;;  %s2110_s19 = sld [smem:[#allocation2 + $0x81]]  ;;  %4541 = vst [vmem:[#allocation49_spill] sm:$0xff] %v2767_v53  ;;  %vm314_vm0 = vcmp.lt.s32.totalorder %v2767_v53, 2  ;;  %vm353_vm1 = vcmp.lt.s32.totalorder %v2767_v53, 1 }
  0x86   : > { %s2119_s17 = sld [smem:[#allocation2 + $0x180]]  ;;  %s2115_s20 = sld [smem:[#allocation2 + $0x101]]  ;;  %vm430_vm2 = vcmp.lt.s32.totalorder %v2767_v53, 7  ;;  %vm472_vm3 = vcmp.lt.s32.totalorder %v2767_v53, 6 }
  0x87   : > { %s2124_s28 = sld [smem:[#allocation2 + $0x200]]  ;;  %s2120_s4 = sld [smem:[#allocation2 + $0x181]] }
  0x88   : > { %259 = vrot.lane.b32.xlu1 %v2608_v4, %s4343_s22  ;;  %255 = vrot.lane.b32.xlu0 %v2615_v5, %s4347_s6  ;;  %s2125_s5 = sld [smem:[#allocation2 + $0x201]]  ;;  %s2106_s9 = sld [smem:[#allocation2 + $0x2]] }
  0x89   : > { %s2107_s25 = sld [smem:[#allocation2 + $0x3]]  ;;  %s2116_s6 = sld [smem:[#allocation2 + $0x102]]  ;;  %v2643_v6 = vstv %s216_s8 }
  0x8a   : > { %s2121_s0 = sld [smem:[#allocation2 + $0x182]]  ;;  %s2117_s2 = sld [smem:[#allocation2 + $0x103]]  ;;  %4517 = vst [vmem:[#allocation25_spill] sm:$0xff] %v2643_v6  ;;  %v2645_v7 = vstv %s2109_s29  ;;  %v2657_v11 = vstv %s2105_s30 }
  0x8b   : > { %s2126_s1 = sld [smem:[#allocation2 + $0x202]]  ;;  %s2122_s21 = sld [smem:[#allocation2 + $0x183]]  ;;  %4518 = vst [vmem:[#allocation26_spill] sm:$0xff] %v2645_v7  ;;  %v2647_v8 = vstv %s2114_s11  ;;  %4522 = vst [vmem:[#allocation30_spill] sm:$0xff] %v2657_v11  ;;  %v2659_v12 = vstv %s2110_s19 }
  0x8c   : > { %263 = vrot.lane.b32.xlu1 %v2605_v3, %s4343_s22  ;;  %261 = vrot.lane.b32.xlu0 %v2615_v5, %s4343_s22  ;;  %s2111_s22 = sld [smem:[#allocation2 + $0x82]]  ;;  %s2639_s14 = sld [smem:[#allocation2 + $0x4]]  ;;  %4519 = vst [vmem:[#allocation27_spill] sm:$0xff] %v2647_v8  ;;  %v2649_v9 = vstv %s2119_s17  ;;  %4523 = vst [vmem:[#allocation31_spill] sm:$0xff] %v2659_v12  ;;  %v2665_v14 = vstv %s2115_s20 }
  0x8d   : > { %s2641_s13 = sld [smem:[#allocation2 + $0x84]]  ;;  %4520 = vst [vmem:[#allocation28_spill] sm:$0xff] %v2649_v9  ;;  %v2655_v10 = vstv %s2124_s28  ;;  %4525 = vst [vmem:[#allocation33_spill] sm:$0xff] %v2665_v14  ;;  %v2667_v15 = vstv %s2120_s4  ;;  %p4683_p9 = scmp.ne.s32.totalorder %s4495_s23, 0 }
  0x8e   : > { %s2651_s18 = sld [smem:[#allocation2 + $0x104]]  ;;  %4521 = vst [vmem:[#allocation29_spill] sm:$0xff] %v2655_v10  ;;  %v2661_v13 = vstv %s2106_s9  ;;  %v2669_v16 = vstv %s2125_s5 }
  0x8f   : > { %s2653_s24 = sld [smem:[#allocation2 + $0x184]]  ;;  %4524 = vst [vmem:[#allocation32_spill] sm:$0xff] %v2661_v13  ;;  %v2675_v18 = vmul.f32 %v2661_v13, %v2615_v5  ;;  %v2677_v19 = vstv %s2107_s25  ;;  %v2681_v21 = vstv %s2116_s6  ;;  %v2693_v25 = vmul.f32 %v2661_v13, %v2608_v4  ;;  %s1986_s6 = scalar_lea.sflag [#allocation4], %s2586_s27 }
  0x90   : > { %267 = vrot.lane.b32.xlu1 %v2615_v5, %s4345_s26  ;;  %265 = vrot.lane.b32.xlu0 %v2608_v4, %s4345_s26  ;;  %s2663_s8 = sld [smem:[#allocation2 + $0x204]]  ;;  %4527 = vst [vmem:[#allocation35_spill] sm:$0xff] %v2681_v21  ;;  %v2687_v23 = vstv %s2121_s0  ;;  %v2697_v26 = vmul.f32 %v2681_v21, %v2615_v5  ;;  %v2699_v27 = vstv %s2117_s2  ;;  %v2716_v34 = vmul.f32 %v2681_v21, %v2608_v4  ;;  %s4550_s0 = smov 2  }
  0x91   : > { %4528 = vst [vmem:[#allocation36_spill] sm:$0xff] %v2687_v23  ;;  %v2689_v24 = vstv %s2126_s1  ;;  %4530 = vst [vmem:[#allocation38_spill] sm:$0xff] %v2699_v27  ;;  %v2701_v28 = vstv %s2122_s21  ;;  %v2709_v32 = vmul.f32 %v2687_v23, %v2615_v5  ;;  %v2724_v37 = vmul.f32 %v2687_v23, %v2608_v4  ;;  %s4552_s1 = smov 1   ;;  %s4553_s2 = smov 127  }
  0x92   : > { %v2671_v17 = vstv %s2111_s22  ;;  %4529 = vst [vmem:[#allocation37_spill] sm:$0xff] %v2689_v24  ;;  %4531 = vst [vmem:[#allocation39_spill] sm:$0xff] %v2701_v28  ;;  %v2720_v36 = vmul.f32 %v2689_v24, %v2615_v5  ;;  %v2728_v38 = vmul.f32 %v2689_v24, %v2608_v4  ;;  %v2731_v39 = vstv %s2639_s14  ;;  %s2138_s14 = smul.u32 384, %s2441_s16 }
  0x93   : > { %4526 = vst [vmem:[#allocation34_spill] sm:$0xff] %v2671_v17  ;;  %v2685_v22 = vmul.f32 %v2671_v17, %v2615_v5  ;;  %v2705_v29 = vmul.f32 %v2671_v17, %v2608_v4  ;;  %4533 = vst [vmem:[#allocation41_spill] sm:$0xff] %v2731_v39  ;;  %v2734_v40 = vstv %s2641_s13  ;;  %v2744_v43 = vmul.f32 %v2661_v13, %v2605_v3  ;;  %s4554_s13 = smov 126  }
  0x94   : > { %271 = vrot.lane.b32.xlu1 %v2608_v4, %s4349_s7  ;;  %269 = vrot.lane.b32.xlu0 %v2605_v3, %s4345_s26  ;;  %s2112_s26 = sld [smem:[#allocation2 + $0x83]]  ;;  %4534 = vst [vmem:[#allocation42_spill] sm:$0xff] %v2734_v40  ;;  %v2737_v41 = vstv %s2651_s18  ;;  %v2751_v45 = vmul.f32 %v2671_v17, %v2605_v3  ;;  %v2755_v46 = vmul.f32 %v2681_v21, %v2605_v3  ;;  %s4679_s18 = smul.u32 24, %s2586_s27 }
  0x95   : > { %4535 = vst [vmem:[#allocation43_spill] sm:$0xff] %v2737_v41  ;;  %v2740_v42 = vstv %s2653_s24  ;;  %v2759_v47 = vmul.f32 %v2687_v23, %v2605_v3  ;;  %v2765_v52 = vmul.f32 %v2689_v24, %v2605_v3 }
  0x96   : > { %4536 = vst [vmem:[#allocation44_spill] sm:$0xff] %v2740_v42  ;;  %v2747_v44 = vstv %s2663_s8  ;;  %4538 = vst [vmem:[#allocation46_spill] sm:$0xff] %v2755_v46  ;;  %s215_s21 = scalar_lea.vmem [#allocation9], %s4679_s18 }
  0x97   : > { %4537 = vst [vmem:[#allocation45_spill] sm:$0xff] %v2747_v44  ;;  %4539 = vst [vmem:[#allocation47_spill] sm:$0xff] %v2759_v47  ;;  %s1999_s24 = sshll.u32 %s215_s21, 4  ;;  %s4290_s24 = int_to_ptr.vmem [resolvable:$true] %s1999_s24 }
  0x98   : > { %275 = vrot.lane.b32.xlu1 %v2605_v3, %s4349_s7  ;;  %273 = vrot.lane.b32.xlu0 %v2615_v5, %s4349_s7  ;;  %s2637_s7 = sld [smem:[#allocation2 + $0x203]]  ;;  %4540 = vst [vmem:[#allocation48_spill] sm:$0xff] %v2765_v52  ;;  %s2312_s22 = scalar_lea.vmem %s4290_s24, 384 }
  0x99   : > { %p2313_p8 = scmp.ne.s32.totalorder %s4290_s24, %s2312_s22 }
  0x9a   : > { %v2679_v20 = vstv %s2112_s26  ;;  %s2397_s26 = smov [#allocation9]  }
  0x9b   : > { %p2314_p5 = pnand %p2313_p8, %p4683_p9 }
  0x9d   : > { %p2315_p10 = pneg %p2314_p5 }
  0x9e   : > { %v2712_v33 = vstv %s2637_s7  ;;  %s2316_s7 = sshll.u32 %s2397_s26, 4  ;;  %s2317_s7 = int_to_ptr.vmem [resolvable:$false] %s2316_s7 }
  0x9f   : > { %4532 = vst [vmem:[#allocation40_spill] sm:$0xff] %v2712_v33  ;;  %s2318_s29 = scalar_lea.vmem %s2317_s7, 768  ;;  %p2319_p4 = scmp.lt.s32.totalorder %s4290_s24, %s2317_s7 }
  0xa0   : > { %p2320_p12 = scmp.lt.s32.totalorder %s2318_s29, %s2312_s22 }
  0xa2   : > { %p2321_p0 = por %p2320_p12, %p2319_p4 }
  0xa4   : > { %p2322_p7 = pnand %p2321_p0, %p2315_p10 }
  0xf6   : > { %v258_v30 = vpop.permute.xlu1 %257  ;;  %v254_v31 = vpop.permute.xlu0 %253 }
  0xf7   : > { %v280_v48 = vmul.f32 %v2643_v6, %v258_v30  ;;  %v321_v49 = vmul.f32 %v2645_v7, %v258_v30  ;;  %v363_v54 = vmul.f32 %v2647_v8, %v258_v30  ;;  %v398_v58 = vmul.f32 %v2649_v9, %v258_v30 }
  0xf8   : > { %v440_v59 = vmul.f32 %v2655_v10, %v258_v30  ;;  %v278_v60 = vmul.f32 %v2643_v6, %v254_v31  ;;  %v319_v61 = vmul.f32 %v2645_v7, %v254_v31  ;;  %v361_v62 = vmul.f32 %v2647_v8, %v254_v31 }
  0xf9   : > { %v396_v63 = vmul.f32 %v2649_v9, %v254_v31  ;;  %v438_v4 = vmul.f32 %v2655_v10, %v254_v31 }
  0xfa   : > { %v260_v50 = vpop.permute.xlu1 %259  ;;  %v256_v51 = vpop.permute.xlu0 %255 }
  0xfb   : > { %v282_v55 = vmul.f32 %v2657_v11, %v260_v50  ;;  %v323_v56 = vmul.f32 %v2659_v12, %v260_v50  ;;  %v365_v57 = vmul.f32 %v2665_v14, %v260_v50  ;;  %v400_v35 = vmul.f32 %v2667_v15, %v260_v50 }
  0xfc   : > { %v442_v3 = vmul.f32 %v2669_v16, %v260_v50  ;;  %v279_v5 = vmul.f32 %v2643_v6, %v256_v51  ;;  %v320_v13 = vmul.f32 %v2645_v7, %v256_v51  ;;  %v362_v30 = vmul.f32 %v2647_v8, %v256_v51 }
  0xfd   : > { %v285_v23 = vadd.f32 %v282_v55, %v278_v60  ;;  %v326_v24 = vadd.f32 %v323_v56, %v319_v61  ;;  %v368_v0 = vadd.f32 %v365_v57, %v361_v62  ;;  %v403_v6 = vadd.f32 %v400_v35, %v396_v63 }
  0xfe   : > { %v264_v17 = vpop.permute.xlu1 %263  ;;  %v262_v21 = vpop.permute.xlu0 %261  ;;  %v445_v47 = vadd.f32 %v442_v3, %v438_v4  ;;  %v397_v62 = vmul.f32 %v2649_v9, %v256_v51 }
  0xff   : > { %v284_v2 = vmul.f32 %v2657_v11, %v264_v17  ;;  %v325_v1 = vmul.f32 %v2659_v12, %v264_v17  ;;  %v283_v52 = vmul.f32 %v2657_v11, %v262_v21  ;;  %v324_v50 = vmul.f32 %v2659_v12, %v262_v21 }
 0x100   : > { %v366_v31 = vmul.f32 %v2665_v14, %v262_v21  ;;  %v367_v7 = vmul.f32 %v2665_v14, %v264_v17  ;;  %v402_v8 = vmul.f32 %v2667_v15, %v264_v17  ;;  %v444_v55 = vmul.f32 %v2669_v16, %v264_v17 }
 0x101   : > { %v286_v56 = vadd.f32 %v283_v52, %v279_v5  ;;  %v327_v57 = vadd.f32 %v324_v50, %v320_v13  ;;  %v439_v11 = vmul.f32 %v2655_v10, %v256_v51  ;;  %v401_v12 = vmul.f32 %v2667_v15, %v262_v21 }
 0x102   : > { %v369_v60 = vadd.f32 %v366_v31, %v362_v30  ;;  %v268_v61 = vpop.permute.xlu1 %267  ;;  %v443_v46 = vmul.f32 %v2669_v16, %v262_v21  ;;  %v287_v63 = vadd.f32 %v284_v2, %v280_v48  ;;  %v328_v3 = vadd.f32 %v325_v1, %v321_v49  ;;  %v266_v14 = vpop.permute.xlu0 %265 }
 0x103   : > { %v293_v4 = vadd.f32 %v2675_v18, %v286_v56  ;;  %v297_v35 = vmul.f32 %v2677_v19, %v268_v61  ;;  %v370_v17 = vadd.f32 %v367_v7, %v363_v54  ;;  %v2799_v5 = vadd.f32 %v402_v8, %v398_v58 }
 0x104   : > { %v404_v13 = vadd.f32 %v401_v12, %v397_v62  ;;  %v446_v52 = vadd.f32 %v443_v46, %v439_v11  ;;  %v2801_v30 = vadd.f32 %v444_v55, %v440_v59  ;;  %v334_v51 = vadd.f32 %v2685_v22, %v327_v57 }
 0x105   : > { %v338_v50 = vmul.f32 %v2679_v20, %v268_v61  ;;  %v376_v21 = vadd.f32 %v2697_v26, %v369_v60  ;;  %v380_v1 = vmul.f32 %v2699_v27, %v268_v61  ;;  %v415_v2 = vmul.f32 %v2701_v28, %v268_v61 }
 0x106   : > { %v457_v18 = vmul.f32 %v2712_v33, %v268_v61  ;;  %v296_v7 = vmul.f32 %v2677_v19, %v266_v14  ;;  %v2810_v8 = vadd.f32 %v297_v35, %v293_v4  ;;  %v411_v11 = vadd.f32 %v2709_v32, %v404_v13  ;;  %v272_v46 = vpop.permute.xlu1 %271  ;;  %v270_v55 = vpop.permute.xlu0 %269 }
 0x107   : > { %v292_v12 = vadd.f32 %v2693_v25, %v285_v23  ;;  %v337_v22 = vmul.f32 %v2679_v20, %v266_v14  ;;  %v453_v48 = vadd.f32 %v2720_v36, %v446_v52  ;;  %v333_v26 = vadd.f32 %v2705_v29, %v326_v24 }
 0x108   : > { %v375_v49 = vadd.f32 %v2716_v34, %v368_v0  ;;  %v414_v54 = vmul.f32 %v2701_v28, %v266_v14  ;;  %v379_v59 = vmul.f32 %v2699_v27, %v266_v14  ;;  %v410_v31 = vadd.f32 %v2724_v37, %v403_v6 }
 0x109   : > { %v299_v58 = vadd.f32 %v296_v7, %v292_v12  ;;  %v456_v32 = vmul.f32 %v2712_v33, %v266_v14  ;;  %v340_v23 = vadd.f32 %v337_v22, %v333_v26  ;;  %v452_v25 = vadd.f32 %v2728_v38, %v445_v47  ;;  %v4542_v26 = vld [vmem:[#allocation46_spill] sm:$0xff] }
 0x10a   : > { %v303_v56 = vmul.f32 %v2731_v39, %v272_v46  ;;  %v344_v36 = vmul.f32 %v2734_v40, %v272_v46  ;;  %v417_v24 = vadd.f32 %v414_v54, %v410_v31  ;;  %v386_v0 = vmul.f32 %v2737_v41, %v272_v46  ;;  %v276_v52 = vpop.permute.xlu1 %275 }
 0x10b   : > { %v421_v29 = vmul.f32 %v2740_v42, %v272_v46  ;;  %v463_v34 = vmul.f32 %v2747_v44, %v272_v46  ;;  %v341_v57 = vadd.f32 %v338_v50, %v334_v51  ;;  %v298_v14 = vmul.f32 %v2677_v19, %v270_v55 }
 0x10c   : > { %v306_v60 = vadd.f32 %v303_v56, %v299_v58  ;;  %v2828_v6 = vadd.f32 %v344_v36, %v340_v23  ;;  %v382_v37 = vadd.f32 %v379_v59, %v375_v49  ;;  %v459_v38 = vadd.f32 %v456_v32, %v452_v25  ;;  %v274_v58 = vpop.permute.xlu0 %273 }
 0x10d   : > { %v2833_v47 = vadd.f32 %v421_v29, %v417_v24  ;;  %v339_v61 = vmul.f32 %v2679_v20, %v270_v55  ;;  %v383_v62 = vadd.f32 %v380_v1, %v376_v21  ;;  %v418_v4 = vadd.f32 %v415_v2, %v411_v11  ;;  %v4544_v11 = vld [vmem:[#allocation48_spill] sm:$0xff] }
 0x10e   : > { %v460_v35 = vadd.f32 %v457_v18, %v453_v48  ;;  %v294_v13 = vadd.f32 %v2744_v43, %v287_v63  ;;  %v309_v51 = vrot.slane %v306_v60, 6  ;;  %v389_v50 = vadd.f32 %v386_v0, %v382_v37 }
 0x10f   : > { %v2837_v7 = vadd.f32 %v463_v34, %v459_v38  ;;  %v335_v12 = vadd.f32 %v2751_v45, %v328_v3  ;;  %v350_v22 = vrot.slane %v2828_v6, 7  ;;  %v377_v49 = vadd.f32 %v4542_v26, %v370_v17  ;;  %v4543_v45 = vld [vmem:[#allocation47_spill] sm:$0xff] }
 0x110   : > { %v301_v46 = vadd.f32 %v298_v14, %v294_v13  ;;  %v416_v54 = vmul.f32 %v2701_v28, %v270_v55  ;;  %v427_v21 = vrot.slane %v2833_v47, 1  ;;  %v305_v43 = vmul.f32 %v2731_v39, %v276_v52 }
 0x111   : > { %v342_v1 = vadd.f32 %v339_v61, %v335_v12  ;;  %v346_v63 = vmul.f32 %v2734_v40, %v276_v52  ;;  %v381_v2 = vmul.f32 %v2699_v27, %v270_v55  ;;  %v412_v3 = vadd.f32 %v4543_v45, %v2799_v5 }
 0x112   : > { %v458_v18 = vmul.f32 %v2712_v33, %v270_v55  ;;  %v423_v17 = vmul.f32 %v2740_v42, %v276_v52  ;;  %v454_v48 = vadd.f32 %v4544_v11, %v2801_v30  ;;  %v308_v59 = vadd.f32 %v305_v43, %v301_v46 }
 0x113   : > { %v349_v31 = vadd.f32 %v346_v63, %v342_v1  ;;  %v304_v32 = vmul.f32 %v2731_v39, %v274_v58  ;;  %v419_v23 = vadd.f32 %v416_v54, %v412_v3  ;;  %v388_v25 = vmul.f32 %v2737_v41, %v276_v52 }
 0x114   : > { %v465_v56 = vmul.f32 %v2747_v44, %v276_v52  ;;  %v345_v36 = vmul.f32 %v2734_v40, %v274_v58  ;;  %v311_v24 = vrot.slane %v308_v59, 6  ;;  %v422_v0 = vmul.f32 %v2740_v42, %v274_v58 }
 0x115   : > { %v352_v5 = vrot.slane %v349_v31, 7  ;;  %v307_v55 = vadd.f32 %v304_v32, %v2810_v8  ;;  %v461_v29 = vadd.f32 %v458_v18, %v454_v48  ;;  %v426_v34 = vadd.f32 %v423_v17, %v419_v23 }
 0x116   : > { %v348_v30 = vadd.f32 %v345_v36, %v341_v57  ;;  %v387_v60 = vmul.f32 %v2737_v41, %v274_v58  ;;  %v317_v6 = vsel %vm314_vm0, %v311_v24, %v309_v51  ;;  %v425_v38 = vadd.f32 %v422_v0, %v418_v4 }
 0x117   : > { %v356_v14 = vsel %vm353_vm1, %v352_v5, %v350_v22  ;;  %v310_v37 = vrot.slane %v307_v55, 6  ;;  %v384_v47 = vadd.f32 %v381_v2, %v377_v49  ;;  %v468_v13 = vadd.f32 %v465_v56, %v461_v29 }
 0x118   : > { %v357_v61 = vadd.f32 %v356_v14, %v317_v6  ;;  %v351_v52 = vrot.slane %v348_v30, 7  ;;  %v428_v12 = vrot.slane %v425_v38, 1  ;;  %v464_v46 = vmul.f32 %v2747_v44, %v274_v58 }
 0x119   : > { %v315_v8 = vsel %vm314_vm0, %v310_v37, %v311_v24  ;;  %v316_v57 = vsel %vm314_vm0, %v309_v51, %v310_v37  ;;  %v429_v26 = vrot.slane %v426_v34, 1  ;;  %v391_v1 = vadd.f32 %v388_v25, %v384_v47 }
 0x11a   : > { %v354_v54 = vsel %vm353_vm1, %v351_v52, %v352_v5  ;;  %v355_v4 = vsel %vm353_vm1, %v350_v22, %v351_v52  ;;  %v392_v49 = vadd.f32 %v389_v50, %v357_v61  ;;  %v390_v2 = vadd.f32 %v387_v60, %v383_v62 }
 0x11b   : > { %v358_v43 = vadd.f32 %v355_v4, %v316_v57  ;;  %v359_v63 = vadd.f32 %v354_v54, %v315_v8  ;;  %v471_v45 = vrot.slane %v468_v13, 2  ;;  %v432_v3 = vsel %vm430_vm2, %v427_v21, %v428_v12  ;;  %v2889_v13 = vld [vmem:[%s2592_s10] sm:$0xff]  ;;  %v2892_v8 = vld [vmem:[%s2592_s10 + $0x8] sm:$0xff]  ;;  %v4549_v4 = vld [vmem:[#allocation21_spill] sm:$0xff] }
 0x11c   : > { %v467_v51 = vadd.f32 %v464_v46, %v460_v35  ;;  %v434_v17 = vadd.f32 %v432_v3, %v392_v49  ;;  %v469_v11 = vrot.slane %v2837_v7, 2  ;;  %v433_v22 = vsel %vm430_vm2, %v429_v26, %v427_v21  ;;  %4545 = vst [vmem:[#allocation46_spill] sm:$0xff] %v2889_v13  ;;  %4546 = vst [vmem:[#allocation47_spill] sm:$0xff] %v2892_v8  ;;  %v4547_v46 = vld [vmem:[#allocation20_spill] sm:$0xff] }
 0x11d   : > { %v393_v58 = vadd.f32 %v390_v2, %v358_v43  ;;  %v394_v18 = vadd.f32 %v391_v1, %v359_v63  ;;  %v431_v50 = vsel %vm430_vm2, %v428_v12, %v429_v26  ;;  %vm244_vm4 = vcmp.gt.f32.partialorder %v4547_v46, 0.0  ;;  %v2896_v26 = vld [vmem:[%s2592_s10 + $0x10] sm:$0xff] }
 0x11e   : > { %v470_v48 = vrot.slane %v467_v51, 2  ;;  %v475_v31 = vsel %vm472_vm3, %v471_v45, %v469_v11  ;;  %4548 = vst [vmem:[#allocation48_spill] sm:$0xff] %v2896_v26  ;;  %vm245_vm5 = vcmp.gt.f32.partialorder %v4549_v4, 0.0  ;;  %v4555_v51 = vld [vmem:[#allocation37_spill] sm:$0xff] }
 0x11f   : > { %v435_v62 = vadd.f32 %v431_v50, %v393_v58  ;;  %v436_v59 = vadd.f32 %v433_v22, %v394_v18  ;;  %v4557_v22 = vld [vmem:[#allocation35_spill] sm:$0xff] }
 0x120   : > { %v473_v35 = vsel %vm472_vm3, %v470_v48, %v471_v45  ;;  %v474_v32 = vsel %vm472_vm3, %v469_v11, %v470_v48  ;;  %v4551_v45 = vld [vmem:[#allocation19_spill] sm:$0xff]  ;;  %v4558_v48 = vld [vmem:[#allocation34_spill] sm:$0xff] }
 0x121   : > { %v476_v23 = vadd.f32 %v474_v32, %v434_v17  ;;  %v477_v7 = vadd.f32 %v473_v35, %v435_v62  ;;  %v478_v25 = vadd.f32 %v475_v31, %v436_v59  ;;  %vm246_vm6 = vcmp.gt.f32.partialorder %v4551_v45, 0.0  ;;  %v4556_v17 = vld [vmem:[#allocation36_spill] sm:$0xff] }
 0x122   : > { %v4559_v59 = vld [vmem:[#allocation32_spill] sm:$0xff] }
 0x123   : > { %2214 = vrcp.f32 %v476_v23 }
 0x124   : > { %2216 = vrcp.f32 %v477_v7 }
 0x125   : > { %2218 = vrcp.f32 %v478_v25 }
 0x12d   : > { %v2215_v21 = vpop.eup %2214 }
 0x12e   : > { %v2217_v56 = vpop.eup %2216  ;;  %v482_v36 = vmul.f32 %v2215_v21, %v476_v23 }
 0x12f   : > { %v2219_v24 = vpop.eup %2218  ;;  %v483_v5 = vmul.f32 %v2217_v56, %v477_v7 }
 0x130   : > { %v484_v55 = vmul.f32 %v2219_v24, %v478_v25  ;;  %v485_v0 = vsub.f32 2.0, %v482_v36 }
 0x131   : > { %v486_v29 = vsub.f32 2.0, %v483_v5 }
 0x132   : > { %v487_v34 = vsub.f32 2.0, %v484_v55  ;;  %v488_v30 = vmul.f32 %v2215_v21, %v485_v0 }
 0x133   : > { %v489_v60 = vmul.f32 %v2217_v56, %v486_v29 }
 0x134   : > { %v491_v6 = vmul.f32 %v488_v30, %v476_v23  ;;  %v490_v14 = vmul.f32 %v2219_v24, %v487_v34 }
 0x135   : > { %v492_v37 = vmul.f32 %v489_v60, %v477_v7 }
 0x136   : > { %v494_v38 = vsub.f32 2.0, %v491_v6  ;;  %v493_v47 = vmul.f32 %v490_v14, %v478_v25 }
 0x137   : > { %v495_v61 = vsub.f32 2.0, %v492_v37 }
 0x138   : > { %v497_v52 = vmul.f32 %v494_v38, %v488_v30  ;;  %v496_v57 = vsub.f32 2.0, %v493_v47 }
 0x139   : > { %v498_v12 = vmul.f32 %v495_v61, %v489_v60 }
 0x13a   : > { %v500_v54 = vmul.f32 %v497_v52, %v2889_v13  ;;  %v499_v49 = vmul.f32 %v496_v57, %v490_v14 }
 0x13b   : > { %v501_v1 = vmul.f32 %v498_v12, %v2892_v8 }
 0x13c   : > { %v503_v43 = vsel %vm244_vm4, %v500_v54, 0.0  ;;  %v502_v63 = vmul.f32 %v499_v49, %v2896_v26 }
 0x13d   : > { %506 = vrot.lane.b32.xlu0 %v503_v43, %s4550_s0  ;;  %v504_v2 = vsel %vm245_vm5, %v501_v1, 0.0  ;;  %v2922_v58 = vmul.f32 %v503_v43, %v4555_v51  ;;  %v2925_v11 = vmul.f32 %v503_v43, %v4556_v17  ;;  %v2928_v50 = vmul.f32 %v503_v43, %v4557_v22 }
 0x13e   : > { %508 = vrot.lane.b32.xlu1 %v504_v2, %s4550_s0  ;;  %v505_v3 = vsel %vm246_vm6, %v502_v63, 0.0  ;;  %v2931_v62 = vmul.f32 %v503_v43, %v4558_v48  ;;  %v2934_v31 = vmul.f32 %v503_v43, %v4559_v59  ;;  %v2937_v32 = vmul.f32 %v504_v2, %v4555_v51 }
 0x13f   : > { %v2940_v23 = vmul.f32 %v504_v2, %v4556_v17  ;;  %v2943_v7 = vmul.f32 %v504_v2, %v4557_v22  ;;  %v2946_v25 = vmul.f32 %v504_v2, %v4558_v48  ;;  %v2949_v21 = vmul.f32 %v504_v2, %v4559_v59 }
 0x140   : > { %v2952_v56 = vmul.f32 %v505_v3, %v4555_v51  ;;  %v2955_v36 = vmul.f32 %v505_v3, %v4556_v17  ;;  %v2958_v24 = vmul.f32 %v505_v3, %v4557_v22  ;;  %v2963_v0 = vmul.f32 %v505_v3, %v4558_v48 }
 0x141   : > { %510 = vrot.lane.b32.xlu0 %v505_v3, %s4550_s0  ;;  %v2966_v29 = vmul.f32 %v505_v3, %v4559_v59 }
 0x142   : > { %512 = vrot.lane.b32.xlu1 %v503_v43, %s4552_s1 }
 0x145   : > { %514 = vrot.lane.b32.xlu0 %v504_v2, %s4552_s1 }
 0x146   : > { %516 = vrot.lane.b32.xlu1 %v505_v3, %s4552_s1 }
 0x149   : > { %518 = vrot.lane.b32.xlu0 %v503_v43, %s4553_s2 }
 0x14a   : > { %520 = vrot.lane.b32.xlu1 %v504_v2, %s4553_s2 }
 0x14d   : > { %522 = vrot.lane.b32.xlu0 %v505_v3, %s4553_s2 }
 0x14e   : > { %524 = vrot.lane.b32.xlu1 %v503_v43, %s4554_s13 }
 0x151   : > { %526 = vrot.lane.b32.xlu0 %v504_v2, %s4554_s13 }
 0x152   : > { %528 = vrot.lane.b32.xlu1 %v505_v3, %s4554_s13 }
 0x1af   : > { %v507_v18 = vpop.permute.xlu0 %506 }
 0x1b0   : > { %v509_v35 = vpop.permute.xlu1 %508  ;;  %v530_v5 = vmul.f32 %v507_v18, %v2747_v44  ;;  %v563_v55 = vmul.f32 %v507_v18, %v2740_v42  ;;  %v599_v34 = vmul.f32 %v507_v18, %v2737_v41  ;;  %v629_v30 = vmul.f32 %v507_v18, %v2734_v40 }
 0x1b1   : > { %v665_v60 = vmul.f32 %v507_v18, %v2731_v39  ;;  %v531_v6 = vmul.f32 %v509_v35, %v2747_v44  ;;  %v564_v37 = vmul.f32 %v509_v35, %v2740_v42  ;;  %v600_v38 = vmul.f32 %v509_v35, %v2737_v41 }
 0x1b2   : > { %v630_v47 = vmul.f32 %v509_v35, %v2734_v40  ;;  %v666_v61 = vmul.f32 %v509_v35, %v2731_v39 }
 0x1b3   : > { %v511_v14 = vpop.permute.xlu0 %510 }
 0x1b4   : > { %v513_v52 = vpop.permute.xlu1 %512  ;;  %v532_v57 = vmul.f32 %v511_v14, %v2747_v44  ;;  %v565_v1 = vmul.f32 %v511_v14, %v2740_v42  ;;  %v601_v43 = vmul.f32 %v511_v14, %v2737_v41  ;;  %v631_v3 = vmul.f32 %v511_v14, %v2734_v40 }
 0x1b5   : > { %v533_v12 = vmul.f32 %v513_v52, %v2712_v33  ;;  %v566_v54 = vmul.f32 %v513_v52, %v2701_v28  ;;  %v602_v49 = vmul.f32 %v513_v52, %v2699_v27  ;;  %v632_v63 = vmul.f32 %v513_v52, %v2679_v20 }
 0x1b6   : > { %v668_v2 = vmul.f32 %v513_v52, %v2677_v19  ;;  %v667_v18 = vmul.f32 %v511_v14, %v2731_v39 }
 0x1b7   : > { %v536_v35 = vadd.f32 %v533_v12, %v530_v5  ;;  %v569_v26 = vadd.f32 %v566_v54, %v563_v55  ;;  %v515_v8 = vpop.permute.xlu0 %514  ;;  %v605_v13 = vadd.f32 %v602_v49, %v599_v34  ;;  %v635_v44 = vadd.f32 %v632_v63, %v629_v30 }
 0x1b8   : > { %v534_v51 = vmul.f32 %v515_v8, %v2712_v33  ;;  %v567_v17 = vmul.f32 %v515_v8, %v2701_v28  ;;  %v517_v42 = vpop.permute.xlu1 %516  ;;  %v603_v41 = vmul.f32 %v515_v8, %v2699_v27  ;;  %v633_v22 = vmul.f32 %v515_v8, %v2679_v20 }
 0x1b9   : > { %v669_v52 = vmul.f32 %v515_v8, %v2677_v19  ;;  %v535_v40 = vmul.f32 %v517_v42, %v2712_v33  ;;  %v671_v48 = vadd.f32 %v668_v2, %v665_v60  ;;  %v568_v5 = vmul.f32 %v517_v42, %v2701_v28 }
 0x1ba   : > { %v537_v14 = vadd.f32 %v534_v51, %v531_v6  ;;  %v604_v55 = vmul.f32 %v517_v42, %v2699_v27  ;;  %v570_v34 = vadd.f32 %v567_v17, %v564_v37  ;;  %v606_v30 = vadd.f32 %v603_v41, %v600_v38 }
 0x1bb   : > { %v636_v12 = vadd.f32 %v633_v22, %v630_v47  ;;  %v672_v54 = vadd.f32 %v669_v52, %v666_v61  ;;  %v519_v49 = vpop.permute.xlu0 %518  ;;  %v538_v63 = vadd.f32 %v535_v40, %v532_v57  ;;  %v571_v39 = vadd.f32 %v568_v5, %v565_v1  ;;  %v4560_v22 = vld [vmem:[#allocation33_spill] sm:$0xff]  ;;  %v4561_v57 = vld [vmem:[#allocation31_spill] sm:$0xff] }
 0x1bc   : > { %v634_v59 = vmul.f32 %v517_v42, %v2679_v20  ;;  %v670_v45 = vmul.f32 %v517_v42, %v2677_v19  ;;  %v542_v8 = vadd.f32 %v2922_v58, %v536_v35  ;;  %v545_v60 = vmul.f32 %v519_v49, %v2669_v16  ;;  %v521_v40 = vpop.permute.xlu1 %520  ;;  %v4562_v35 = vld [vmem:[#allocation30_spill] sm:$0xff] }
 0x1bd   : > { %v575_v51 = vadd.f32 %v2925_v11, %v569_v26  ;;  %v578_v6 = vmul.f32 %v519_v49, %v2667_v15  ;;  %v607_v2 = vadd.f32 %v604_v55, %v601_v43  ;;  %v611_v41 = vadd.f32 %v2928_v50, %v605_v13 }
 0x1be   : > { %v637_v17 = vadd.f32 %v634_v59, %v631_v3  ;;  %v614_v37 = vmul.f32 %v519_v49, %v4560_v22  ;;  %v673_v38 = vadd.f32 %v670_v45, %v667_v18  ;;  %v548_v47 = vadd.f32 %v545_v60, %v542_v8 }
 0x1bf   : > { %v581_v61 = vadd.f32 %v578_v6, %v575_v51  ;;  %v644_v42 = vmul.f32 %v519_v49, %v4561_v57  ;;  %v641_v58 = vadd.f32 %v2931_v62, %v635_v44  ;;  %v680_v52 = vmul.f32 %v519_v49, %v4562_v35  ;;  %v523_v45 = vpop.permute.xlu0 %522 }
 0x1c0   : > { %v617_v1 = vadd.f32 %v614_v37, %v611_v41  ;;  %v543_v26 = vadd.f32 %v2937_v32, %v537_v14  ;;  %v677_v11 = vadd.f32 %v2934_v31, %v671_v48  ;;  %v546_v59 = vmul.f32 %v521_v40, %v2669_v16  ;;  %v4563_v37 = vld [vmem:[#allocation27_spill] sm:$0xff] }
 0x1c1   : > { %v576_v13 = vadd.f32 %v2940_v23, %v570_v34  ;;  %v579_v50 = vmul.f32 %v521_v40, %v2667_v15  ;;  %v647_v43 = vadd.f32 %v644_v42, %v641_v58  ;;  %v612_v3 = vadd.f32 %v2943_v7, %v606_v30 }
 0x1c2   : > { %v615_v18 = vmul.f32 %v521_v40, %v4560_v22  ;;  %v642_v44 = vadd.f32 %v2946_v25, %v636_v12  ;;  %v683_v62 = vadd.f32 %v680_v52, %v677_v11  ;;  %v549_v5 = vadd.f32 %v546_v59, %v543_v26  ;;  %v525_v25 = vpop.permute.xlu1 %524  ;;  %v4565_v52 = vld [vmem:[#allocation25_spill] sm:$0xff] }
 0x1c3   : > { %v645_v32 = vmul.f32 %v521_v40, %v4561_v57  ;;  %v678_v48 = vadd.f32 %v2949_v21, %v672_v54  ;;  %v582_v31 = vadd.f32 %v579_v50, %v576_v13  ;;  %v681_v14 = vmul.f32 %v521_v40, %v4562_v35  ;;  %v527_v6 = vpop.permute.xlu0 %526 }
 0x1c4   : > { %v544_v23 = vadd.f32 %v2952_v56, %v538_v63  ;;  %v547_v55 = vmul.f32 %v523_v45, %v2669_v16  ;;  %v618_v34 = vadd.f32 %v615_v18, %v612_v3  ;;  %v577_v7 = vadd.f32 %v2955_v36, %v571_v39 }
 0x1c5   : > { %v648_v49 = vadd.f32 %v645_v32, %v642_v44  ;;  %v580_v30 = vmul.f32 %v523_v45, %v2667_v15  ;;  %v684_v12 = vadd.f32 %v681_v14, %v678_v48  ;;  %v613_v60 = vadd.f32 %v2958_v24, %v607_v2  ;;  %v4564_v2 = vld [vmem:[#allocation26_spill] sm:$0xff] }
 0x1c6   : > { %v550_v8 = vadd.f32 %v547_v55, %v544_v23  ;;  %v616_v21 = vmul.f32 %v523_v45, %v4560_v22  ;;  %v643_v51 = vadd.f32 %v2963_v0, %v637_v17  ;;  %v646_v56 = vmul.f32 %v523_v45, %v4561_v57 }
 0x1c7   : > { %v583_v54 = vadd.f32 %v580_v30, %v577_v7  ;;  %v682_v63 = vmul.f32 %v523_v45, %v4562_v35  ;;  %v679_v41 = vadd.f32 %v2966_v29, %v673_v38  ;;  %v551_v39 = vmul.f32 %v525_v25, %v2655_v10  ;;  %v529_v45 = vpop.permute.xlu1 %528 }
 0x1c8   : > { %v584_v36 = vmul.f32 %v525_v25, %v2649_v9  ;;  %v620_v40 = vmul.f32 %v525_v25, %v4563_v37  ;;  %v619_v42 = vadd.f32 %v616_v21, %v613_v60  ;;  %v649_v24 = vadd.f32 %v646_v56, %v643_v51 }
 0x1c9   : > { %v650_v58 = vmul.f32 %v525_v25, %v4564_v2  ;;  %v686_v26 = vmul.f32 %v525_v25, %v4565_v52  ;;  %v685_v0 = vadd.f32 %v682_v63, %v679_v41  ;;  %v554_v17 = vadd.f32 %v551_v39, %v548_v47 }
 0x1ca   : > { %v587_v11 = vadd.f32 %v584_v36, %v581_v61  ;;  %v552_v59 = vmul.f32 %v527_v6, %v2655_v10  ;;  %v623_v13 = vadd.f32 %v620_v40, %v617_v1  ;;  %v585_v38 = vmul.f32 %v527_v6, %v2649_v9 }
 0x1cb   : > { %v653_v50 = vadd.f32 %v650_v58, %v647_v43  ;;  %v689_v29 = vadd.f32 %v686_v26, %v683_v62  ;;  %v557_v3 = vrot.slane %v554_v17, 6  ;;  %v621_v44 = vmul.f32 %v527_v6, %v4563_v37 }
 0x1cc   : > { %v555_v18 = vadd.f32 %v552_v59, %v549_v5  ;;  %v651_v32 = vmul.f32 %v527_v6, %v4564_v2  ;;  %v590_v48 = vrot.slane %v587_v11, 7  ;;  %v588_v55 = vadd.f32 %v585_v38, %v582_v31 }
 0x1cd   : > { %v656_v14 = vrot.slane %v653_v50, 1  ;;  %v692_v23 = vrot.slane %v689_v29, 2  ;;  %v687_v7 = vmul.f32 %v527_v6, %v4565_v52  ;;  %v553_v1 = vmul.f32 %v529_v45, %v2655_v10 }
 0x1ce   : > { %v558_v47 = vrot.slane %v555_v18, 6  ;;  %v654_v61 = vadd.f32 %v651_v32, %v648_v49  ;;  %v591_v43 = vrot.slane %v588_v55, 7  ;;  %v586_v62 = vmul.f32 %v529_v45, %v2649_v9 }
 0x1cf   : > { %v622_v30 = vmul.f32 %v529_v45, %v4563_v37  ;;  %v652_v5 = vmul.f32 %v529_v45, %v4564_v2  ;;  %v690_v21 = vadd.f32 %v687_v7, %v684_v12  ;;  %v556_v51 = vadd.f32 %v553_v1, %v550_v8 }
 0x1d0   : > { %v561_v25 = vsel %vm314_vm0, %v557_v3, %v558_v47  ;;  %v657_v60 = vrot.slane %v654_v61, 1  ;;  %v594_v31 = vsel %vm353_vm1, %v590_v48, %v591_v43  ;;  %v624_v49 = vadd.f32 %v621_v44, %v618_v34 }
 0x1d1   : > { %v589_v56 = vadd.f32 %v586_v62, %v583_v54  ;;  %v655_v63 = vadd.f32 %v652_v5, %v649_v24  ;;  %v597_v6 = vadd.f32 %v594_v31, %v561_v25  ;;  %v693_v39 = vrot.slane %v690_v21, 2  ;;  %v4567_v62 = vld [vmem:[#allocation23_spill] sm:$0xff] }
 0x1d2   : > { %v660_v41 = vsel %vm430_vm2, %v656_v14, %v657_v60  ;;  %v559_v36 = vrot.slane %v556_v51, 6  ;;  %v625_v58 = vadd.f32 %v622_v30, %v619_v42  ;;  %v688_v17 = vmul.f32 %v529_v45, %v4565_v52  ;;  %v4573_v51 = vld [vmem:[#allocation32_spill] sm:$0xff] }
 0x1d3   : > { %v592_v40 = vrot.slane %v589_v56, 7  ;;  %v658_v26 = vrot.slane %v655_v63, 1  ;;  %v627_v11 = vadd.f32 %v624_v49, %v597_v6  ;;  %v696_v12 = vsel %vm472_vm3, %v692_v23, %v693_v39  ;;  %v4574_v56 = vld [vmem:[#allocation34_spill] sm:$0xff]  ;;  %v4575_v6 = vld [vmem:[#allocation35_spill] sm:$0xff] }
 0x1d4   : > { %v560_v34 = vsel %vm314_vm0, %v558_v47, %v559_v36  ;;  %v562_v8 = vsel %vm314_vm0, %v559_v36, %v557_v3  ;;  %v691_v45 = vadd.f32 %v688_v17, %v685_v0 }
 0x1d5   : > { %v593_v54 = vsel %vm353_vm1, %v591_v43, %v592_v40  ;;  %v595_v24 = vsel %vm353_vm1, %v592_v40, %v590_v48  ;;  %v659_v42 = vsel %vm430_vm2, %v657_v60, %v658_v26  ;;  %v661_v59 = vsel %vm430_vm2, %v658_v26, %v656_v14  ;;  %v4566_v43 = vld [vmem:[#allocation24_spill] sm:$0xff]  ;;  %v4577_v40 = vld [vmem:[#allocation37_spill] sm:$0xff] }
 0x1d6   : > { %v596_v50 = vadd.f32 %v595_v24, %v562_v8  ;;  %v598_v29 = vadd.f32 %v593_v54, %v560_v34  ;;  %v663_v38 = vadd.f32 %v659_v42, %v627_v11  ;;  %v694_v32 = vrot.slane %v691_v45, 2 }
 0x1d8   : > { %v626_v18 = vadd.f32 %v623_v13, %v596_v50  ;;  %v628_v44 = vadd.f32 %v625_v58, %v598_v29  ;;  %v695_v47 = vsel %vm472_vm3, %v693_v39, %v694_v32  ;;  %v697_v48 = vsel %vm472_vm3, %v694_v32, %v692_v23  ;;  %v4569_v13 = vld [vmem:[#allocation22_spill] sm:$0xff]  ;;  %v4576_v39 = vld [vmem:[#allocation36_spill] sm:$0xff] }
 0x1d9   : > { %v699_v61 = vadd.f32 %v695_v47, %v663_v38 }
 0x1da   : > { %v662_v3 = vadd.f32 %v660_v41, %v626_v18  ;;  %v664_v55 = vadd.f32 %v661_v59, %v628_v44 }
 0x1db   : > { %v702_v14 = vmul.f32 %v699_v61, %v4566_v43 }
 0x1dc   : > { %v698_v7 = vadd.f32 %v696_v12, %v662_v3  ;;  %v700_v1 = vadd.f32 %v697_v48, %v664_v55 }
 0x1dd   : > { %v3069_v0 = vsel %vm245_vm5, %v702_v14, 0.0 }
 0x1de   : > { %v701_v30 = vmul.f32 %v698_v7, %v4567_v62  ;;  %4568 = vst [vmem:[#allocation24_spill] sm:$0xff] %v3069_v0  ;;  %v703_v5 = vmul.f32 %v700_v1, %v4569_v13  ;;  %709 = vrot.lane.b32.xlu1 %v3069_v0, %s4550_s0  ;;  %v3106_v31 = vmul.f32 %v3069_v0, %v4573_v51 }
 0x1df   : > { %v3110_v63 = vmul.f32 %v3069_v0, %v4574_v56  ;;  %v3114_v41 = vmul.f32 %v3069_v0, %v4575_v6  ;;  %v3118_v36 = vmul.f32 %v3069_v0, %v4576_v39  ;;  %v3122_v58 = vmul.f32 %v3069_v0, %v4577_v40 }
 0x1e0   : > { %v3074_v25 = vsel %vm244_vm4, %v701_v30, 0.0  ;;  %v3082_v60 = vsel %vm246_vm6, %v703_v5, 0.0 }
 0x1e1   : > { %4570 = vst [vmem:[#allocation23_spill] sm:$0xff] %v3074_v25  ;;  %707 = vrot.lane.b32.xlu0 %v3074_v25, %s4550_s0  ;;  %4572 = vst [vmem:[#allocation22_spill] sm:$0xff] %v3082_v60  ;;  %v3126_v26 = vmul.f32 %v3074_v25, %v4573_v51  ;;  %v3130_v17 = vmul.f32 %v3074_v25, %v4574_v56  ;;  %v3134_v11 = vmul.f32 %v3074_v25, %v4575_v6 }
 0x1e2   : > { %713 = vrot.lane.b32.xlu1 %v3074_v25, %s4552_s1  ;;  %v3138_v12 = vmul.f32 %v3074_v25, %v4576_v39  ;;  %v3142_v34 = vmul.f32 %v3074_v25, %v4577_v40  ;;  %v3146_v8 = vmul.f32 %v3082_v60, %v4573_v51  ;;  %v3150_v54 = vmul.f32 %v3082_v60, %v4574_v56 }
 0x1e3   : > { %v3154_v24 = vmul.f32 %v3082_v60, %v4575_v6  ;;  %v3160_v29 = vmul.f32 %v3082_v60, %v4576_v39  ;;  %v3164_v38 = vmul.f32 %v3082_v60, %v4577_v40 }
 0x1e5   : > { %711 = vrot.lane.b32.xlu0 %v3082_v60, %s4550_s0  ;;  %4578 = vst [vmem:[#allocation50_spill] sm:$0xff] %v3160_v29  ;;  %4579 = vst [vmem:[#allocation51_spill] sm:$0xff] %v3164_v38 }
 0x1e6   : > { %717 = vrot.lane.b32.xlu1 %v3082_v60, %s4552_s1 }
 0x1e9   : > { %715 = vrot.lane.b32.xlu0 %v3069_v0, %s4552_s1 }
 0x1ea   : > { %721 = vrot.lane.b32.xlu1 %v3069_v0, %s4553_s2 }
 0x1ed   : > { %719 = vrot.lane.b32.xlu0 %v3074_v25, %s4553_s2 }
 0x1ee   : > { %725 = vrot.lane.b32.xlu1 %v3074_v25, %s4554_s13 }
 0x1f1   : > { %723 = vrot.lane.b32.xlu0 %v3082_v60, %s4553_s2 }
 0x1f2   : > { %729 = vrot.lane.b32.xlu1 %v3082_v60, %s4554_s13 }
 0x1f5   : > { %727 = vrot.lane.b32.xlu0 %v3069_v0, %s4554_s13 }
 0x250   : > { %v710_v21 = vpop.permute.xlu1 %709 }
 0x251   : > { %v732_v42 = vmul.f32 %v710_v21, %v4565_v52  ;;  %v765_v59 = vmul.f32 %v710_v21, %v4564_v2  ;;  %v801_v18 = vmul.f32 %v710_v21, %v4563_v37  ;;  %v831_v44 = vmul.f32 %v710_v21, %v2649_v9 }
 0x252   : > { %v867_v7 = vmul.f32 %v710_v21, %v2655_v10 }
 0x253   : > { %v708_v49 = vpop.permute.xlu0 %707 }
 0x254   : > { %v714_v50 = vpop.permute.xlu1 %713  ;;  %v731_v45 = vmul.f32 %v708_v49, %v4565_v52  ;;  %v764_v55 = vmul.f32 %v708_v49, %v4564_v2  ;;  %v800_v47 = vmul.f32 %v708_v49, %v4563_v37  ;;  %v830_v48 = vmul.f32 %v708_v49, %v2649_v9 }
 0x255   : > { %v734_v32 = vmul.f32 %v714_v50, %v4562_v35  ;;  %v866_v61 = vmul.f32 %v708_v49, %v2655_v10  ;;  %v767_v1 = vmul.f32 %v714_v50, %v4561_v57  ;;  %v803_v43 = vmul.f32 %v714_v50, %v4560_v22 }
 0x256   : > { %v833_v14 = vmul.f32 %v714_v50, %v2667_v15  ;;  %v869_v62 = vmul.f32 %v714_v50, %v2669_v16 }
 0x257   : > { %v712_v3 = vpop.permute.xlu0 %711  ;;  %v737_v0 = vadd.f32 %v734_v32, %v731_v45  ;;  %v806_v39 = vadd.f32 %v803_v43, %v800_v47 }
 0x258   : > { %v733_v30 = vmul.f32 %v712_v3, %v4565_v52  ;;  %v766_v13 = vmul.f32 %v712_v3, %v4564_v2  ;;  %v802_v5 = vmul.f32 %v712_v3, %v4563_v37  ;;  %v718_v60 = vpop.permute.xlu1 %717  ;;  %v770_v2 = vadd.f32 %v767_v1, %v764_v55 }
 0x259   : > { %v736_v49 = vmul.f32 %v718_v60, %v4562_v35  ;;  %v769_v21 = vmul.f32 %v718_v60, %v4561_v57  ;;  %v805_v25 = vmul.f32 %v718_v60, %v4560_v22  ;;  %v835_v56 = vmul.f32 %v718_v60, %v2667_v15 }
 0x25a   : > { %v836_v37 = vadd.f32 %v833_v14, %v830_v48  ;;  %v871_v45 = vmul.f32 %v718_v60, %v2669_v16  ;;  %v832_v32 = vmul.f32 %v712_v3, %v2649_v9  ;;  %v872_v53 = vadd.f32 %v869_v62, %v866_v61  ;;  %v4581_v62 = vld [vmem:[#allocation42_spill] sm:$0xff] }
 0x25b   : > { %v716_v51 = vpop.permute.xlu0 %715  ;;  %v868_v38 = vmul.f32 %v712_v3, %v2655_v10  ;;  %v739_v29 = vadd.f32 %v736_v49, %v733_v30  ;;  %v808_v55 = vadd.f32 %v805_v25, %v802_v5  ;;  %v4584_v30 = vld [vmem:[#allocation45_spill] sm:$0xff] }
 0x25c   : > { %v735_v6 = vmul.f32 %v716_v51, %v4562_v35  ;;  %v768_v50 = vmul.f32 %v716_v51, %v4561_v57  ;;  %v804_v52 = vmul.f32 %v716_v51, %v4560_v22  ;;  %v722_v46 = vpop.permute.xlu1 %721  ;;  %v834_v35 = vmul.f32 %v716_v51, %v2667_v15 }
 0x25d   : > { %v870_v57 = vmul.f32 %v716_v51, %v2669_v16  ;;  %v772_v22 = vadd.f32 %v769_v21, %v766_v13  ;;  %v3194_v47 = vadd.f32 %v835_v56, %v832_v32  ;;  %v3196_v60 = vadd.f32 %v871_v45, %v868_v38 }
 0x25e   : > { %v738_v40 = vadd.f32 %v735_v6, %v732_v42  ;;  %v771_v23 = vadd.f32 %v768_v50, %v765_v59  ;;  %v807_v4 = vadd.f32 %v804_v52, %v801_v18  ;;  %v837_v1 = vadd.f32 %v834_v35, %v831_v44 }
 0x25f   : > { %v720_v48 = vpop.permute.xlu0 %719  ;;  %v873_v6 = vadd.f32 %v870_v57, %v867_v7  ;;  %v747_v52 = vmul.f32 %v722_v46, %v2677_v19  ;;  %v780_v18 = vmul.f32 %v722_v46, %v2679_v20  ;;  %v816_v3 = vmul.f32 %v722_v46, %v2699_v27 }
 0x260   : > { %v744_v42 = vadd.f32 %v3106_v31, %v738_v40  ;;  %v777_v59 = vadd.f32 %v3110_v63, %v771_v23  ;;  %v813_v51 = vadd.f32 %v3114_v41, %v807_v4  ;;  %v846_v25 = vmul.f32 %v722_v46, %v2701_v28  ;;  %v726_v35 = vpop.permute.xlu1 %725 }
 0x261   : > { %v882_v56 = vmul.f32 %v722_v46, %v2712_v33  ;;  %v743_v38 = vadd.f32 %v3126_v26, %v737_v0  ;;  %v843_v57 = vadd.f32 %v3118_v36, %v837_v1  ;;  %v879_v44 = vadd.f32 %v3122_v58, %v873_v6  ;;  %v4580_v36 = vld [vmem:[#allocation41_spill] sm:$0xff] }
 0x262   : > { %v746_v31 = vmul.f32 %v720_v48, %v2677_v19  ;;  %v779_v23 = vmul.f32 %v720_v48, %v2679_v20  ;;  %v776_v63 = vadd.f32 %v3130_v17, %v770_v2  ;;  %v812_v4 = vadd.f32 %v3134_v11, %v806_v39  ;;  %v4582_v39 = vld [vmem:[#allocation43_spill] sm:$0xff] }
 0x263   : > { %v842_v41 = vadd.f32 %v3138_v12, %v836_v37  ;;  %v845_v40 = vmul.f32 %v720_v48, %v2701_v28  ;;  %v815_v0 = vmul.f32 %v720_v48, %v2699_v27  ;;  %v881_v26 = vmul.f32 %v720_v48, %v2712_v33  ;;  %v724_v58 = vpop.permute.xlu0 %723  ;;  %v4583_v37 = vld [vmem:[#allocation44_spill] sm:$0xff] }
 0x264   : > { %v749_v46 = vadd.f32 %v746_v31, %v743_v38  ;;  %v752_v61 = vmul.f32 %v726_v35, %v4580_v36  ;;  %v878_v7 = vadd.f32 %v3142_v34, %v872_v53  ;;  %v782_v43 = vadd.f32 %v779_v23, %v776_v63  ;;  %v730_v31 = vpop.permute.xlu1 %729 }
 0x265   : > { %v848_v14 = vadd.f32 %v845_v40, %v842_v41  ;;  %v785_v2 = vmul.f32 %v726_v35, %v4581_v62  ;;  %v821_v11 = vmul.f32 %v726_v35, %v4582_v39  ;;  %v851_v12 = vmul.f32 %v726_v35, %v4583_v37 }
 0x266   : > { %v755_v17 = vadd.f32 %v752_v61, %v749_v46  ;;  %v887_v13 = vmul.f32 %v726_v35, %v4584_v30  ;;  %v750_v5 = vadd.f32 %v747_v52, %v744_v42  ;;  %v783_v49 = vadd.f32 %v780_v18, %v777_v59 }
 0x267   : > { %v788_v21 = vadd.f32 %v785_v2, %v782_v43  ;;  %v748_v50 = vmul.f32 %v724_v58, %v2677_v19  ;;  %v819_v45 = vadd.f32 %v816_v3, %v813_v51  ;;  %v818_v32 = vadd.f32 %v815_v0, %v812_v4  ;;  %v728_v3 = vpop.permute.xlu0 %727 }
 0x268   : > { %v884_v48 = vadd.f32 %v881_v26, %v878_v7  ;;  %v3224_v53 = vadd.f32 %v851_v12, %v848_v14  ;;  %v849_v34 = vadd.f32 %v846_v25, %v843_v57  ;;  %v885_v1 = vadd.f32 %v882_v56, %v879_v44  ;;  %v4585_v44 = vld [vmem:[#allocation50_spill] sm:$0xff] }
 0x269   : > { %v745_v6 = vadd.f32 %v3146_v8, %v739_v29  ;;  %v781_v38 = vmul.f32 %v724_v58, %v2679_v20  ;;  %v758_v23 = vrot.slane %v755_v17, 6  ;;  %v824_v63 = vadd.f32 %v821_v11, %v818_v32 }
 0x26a   : > { %v3228_v35 = vadd.f32 %v887_v13, %v884_v48  ;;  %v778_v52 = vadd.f32 %v3150_v54, %v772_v22  ;;  %v791_v42 = vrot.slane %v788_v21, 7  ;;  %v814_v18 = vadd.f32 %v3154_v24, %v808_v55  ;;  %v4586_v24 = vld [vmem:[#allocation51_spill] sm:$0xff] }
 0x26b   : > { %v751_v59 = vadd.f32 %v748_v50, %v745_v6  ;;  %v847_v51 = vmul.f32 %v724_v58, %v2701_v28  ;;  %v857_v25 = vrot.slane %v3224_v53, 1  ;;  %v754_v8 = vmul.f32 %v730_v31, %v4580_v36 }
 0x26c   : > { %v784_v56 = vadd.f32 %v781_v38, %v778_v52  ;;  %v787_v29 = vmul.f32 %v730_v31, %v4581_v62  ;;  %v817_v57 = vmul.f32 %v724_v58, %v2699_v27  ;;  %v844_v4 = vadd.f32 %v4585_v44, %v3194_v47 }
 0x26d   : > { %v883_v22 = vmul.f32 %v724_v58, %v2712_v33  ;;  %v853_v54 = vmul.f32 %v730_v31, %v4583_v37  ;;  %v880_v55 = vadd.f32 %v4586_v24, %v3196_v60  ;;  %v757_v41 = vadd.f32 %v754_v8, %v751_v59 }
 0x26e   : > { %v790_v40 = vadd.f32 %v787_v29, %v784_v56  ;;  %v753_v46 = vmul.f32 %v728_v3, %v4580_v36  ;;  %v850_v0 = vadd.f32 %v847_v51, %v844_v4  ;;  %v823_v26 = vmul.f32 %v730_v31, %v4582_v39 }
 0x26f   : > { %v889_v61 = vmul.f32 %v730_v31, %v4584_v30  ;;  %v786_v7 = vmul.f32 %v728_v3, %v4581_v62  ;;  %v760_v43 = vrot.slane %v757_v41, 6  ;;  %v852_v58 = vmul.f32 %v728_v3, %v4583_v37 }
 0x270   : > { %v793_v47 = vrot.slane %v790_v40, 7  ;;  %v756_v14 = vadd.f32 %v753_v46, %v750_v5  ;;  %v886_v2 = vadd.f32 %v883_v22, %v880_v55  ;;  %v856_v17 = vadd.f32 %v853_v54, %v850_v0 }
 0x271   : > { %v789_v11 = vadd.f32 %v786_v7, %v783_v49  ;;  %v822_v60 = vmul.f32 %v728_v3, %v4582_v39  ;;  %v763_v13 = vsel %vm314_vm0, %v760_v43, %v758_v23  ;;  %v855_v32 = vadd.f32 %v852_v58, %v849_v34 }
 0x272   : > { %v796_v21 = vsel %vm353_vm1, %v793_v47, %v791_v42  ;;  %v759_v50 = vrot.slane %v756_v14, 6  ;;  %v820_v48 = vadd.f32 %v817_v57, %v814_v18  ;;  %v892_v6 = vadd.f32 %v889_v61, %v886_v2 }
 0x273   : > { %v797_v53 = vadd.f32 %v796_v21, %v763_v13  ;;  %v792_v38 = vrot.slane %v789_v11, 7  ;;  %v858_v31 = vrot.slane %v855_v32, 1  ;;  %v888_v52 = vmul.f32 %v728_v3, %v4584_v30 }
 0x274   : > { %v761_v5 = vsel %vm314_vm0, %v759_v50, %v760_v43  ;;  %v762_v49 = vsel %vm314_vm0, %v758_v23, %v759_v50  ;;  %v859_v59 = vrot.slane %v856_v17, 1  ;;  %v826_v56 = vadd.f32 %v823_v26, %v820_v48 }
 0x275   : > { %v794_v51 = vsel %vm353_vm1, %v792_v38, %v793_v47  ;;  %v795_v34 = vsel %vm353_vm1, %v791_v42, %v792_v38  ;;  %v827_v18 = vadd.f32 %v824_v63, %v797_v53  ;;  %v825_v57 = vadd.f32 %v822_v60, %v819_v45 }
 0x276   : > { %v798_v8 = vadd.f32 %v795_v34, %v762_v49  ;;  %v799_v29 = vadd.f32 %v794_v51, %v761_v5  ;;  %v895_v44 = vrot.slane %v892_v6, 2  ;;  %v861_v4 = vsel %vm430_vm2, %v857_v25, %v858_v31  ;;  %v4588_v49 = vld [vmem:[#allocation46_spill] sm:$0xff] }
 0x277   : > { %v891_v23 = vadd.f32 %v888_v52, %v885_v1  ;;  %v863_v3 = vadd.f32 %v861_v4, %v827_v18  ;;  %v893_v24 = vrot.slane %v3228_v35, 2  ;;  %v862_v55 = vsel %vm430_vm2, %v859_v59, %v857_v25 }
 0x278   : > { %v828_v22 = vadd.f32 %v825_v57, %v798_v8  ;;  %v829_v54 = vadd.f32 %v826_v56, %v799_v29  ;;  %v860_v63 = vsel %vm430_vm2, %v858_v31, %v859_v59  ;;  %v4589_v59 = vld [vmem:[#allocation47_spill] sm:$0xff]  ;;  %v4591_v56 = vld [vmem:[#allocation48_spill] sm:$0xff] }
 0x279   : > { %v894_v42 = vrot.slane %v891_v23, 2  ;;  %v898_v45 = vsel %vm472_vm3, %v895_v44, %v893_v24  ;;  %v4594_v23 = vld [vmem:[#allocation37_spill] sm:$0xff] }
 0x27a   : > { %v864_v41 = vadd.f32 %v860_v63, %v828_v22  ;;  %v865_v40 = vadd.f32 %v862_v55, %v829_v54  ;;  %v4595_v54 = vld [vmem:[#allocation36_spill] sm:$0xff] }
 0x27b   : > { %v896_v1 = vsel %vm472_vm3, %v894_v42, %v895_v44  ;;  %v897_v46 = vsel %vm472_vm3, %v893_v24, %v894_v42  ;;  %v4596_v42 = vld [vmem:[#allocation35_spill] sm:$0xff] }
 0x27c   : > { %v899_v0 = vadd.f32 %v897_v46, %v863_v3  ;;  %v900_v35 = vadd.f32 %v896_v1, %v864_v41  ;;  %v901_v26 = vadd.f32 %v898_v45, %v865_v40  ;;  %v4597_v1 = vld [vmem:[#allocation34_spill] sm:$0xff] }
 0x27e   : > { %2220 = vrcp.f32 %v899_v0 }
 0x27f   : > { %2222 = vrcp.f32 %v900_v35 }
 0x280   : > { %2224 = vrcp.f32 %v901_v26 }
 0x288   : > { %v2221_v25 = vpop.eup %2220 }
 0x289   : > { %v2223_v61 = vpop.eup %2222  ;;  %v905_v7 = vmul.f32 %v2221_v25, %v899_v0 }
 0x28a   : > { %v2225_v43 = vpop.eup %2224  ;;  %v906_v47 = vmul.f32 %v2223_v61, %v900_v35 }
 0x28b   : > { %v907_v14 = vmul.f32 %v2225_v43, %v901_v26  ;;  %v908_v58 = vsub.f32 2.0, %v905_v7 }
 0x28c   : > { %v909_v2 = vsub.f32 2.0, %v906_v47 }
 0x28d   : > { %v910_v17 = vsub.f32 2.0, %v907_v14  ;;  %v911_v11 = vmul.f32 %v2221_v25, %v908_v58 }
 0x28e   : > { %v912_v60 = vmul.f32 %v2223_v61, %v909_v2 }
 0x28f   : > { %v914_v13 = vmul.f32 %v911_v11, %v899_v0  ;;  %v913_v21 = vmul.f32 %v2225_v43, %v910_v17  ;;  %v4598_v0 = vld [vmem:[#allocation32_spill] sm:$0xff] }
 0x290   : > { %v915_v50 = vmul.f32 %v912_v60, %v900_v35 }
 0x291   : > { %v917_v32 = vsub.f32 2.0, %v914_v13  ;;  %v916_v48 = vmul.f32 %v913_v21, %v901_v26 }
 0x292   : > { %v918_v53 = vsub.f32 2.0, %v915_v50 }
 0x293   : > { %v920_v6 = vmul.f32 %v917_v32, %v911_v11  ;;  %v919_v38 = vsub.f32 2.0, %v916_v48 }
 0x294   : > { %v921_v5 = vmul.f32 %v918_v53, %v912_v60 }
 0x295   : > { %v923_v31 = vmul.f32 %v920_v6, %v4588_v49  ;;  %v922_v52 = vmul.f32 %v919_v38, %v913_v21 }
 0x296   : > { %v924_v51 = vmul.f32 %v921_v5, %v4589_v59 }
 0x297   : > { %v926_v18 = vsel %vm244_vm4, %v923_v31, 0.0  ;;  %v925_v8 = vmul.f32 %v922_v52, %v4591_v56 }
 0x298   : > { %v927_v57 = vsel %vm245_vm5, %v924_v51, 0.0  ;;  %929 = vrot.lane.b32.xlu0 %v926_v18, %s4550_s0  ;;  %v3297_v22 = vmul.f32 %v926_v18, %v4594_v23  ;;  %v3300_v3 = vmul.f32 %v926_v18, %v4595_v54  ;;  %v3308_v40 = vmul.f32 %v926_v18, %v4596_v42 }
 0x299   : > { %931 = vrot.lane.b32.xlu1 %v927_v57, %s4550_s0  ;;  %v928_v4 = vsel %vm246_vm6, %v925_v8, 0.0  ;;  %v963_v55 = vmul.f32 %v927_v57, %v4594_v23  ;;  %v996_v63 = vmul.f32 %v927_v57, %v4595_v54  ;;  %v3305_v41 = vmul.f32 %v927_v57, %v4596_v42 }
 0x29a   : > { %v3311_v46 = vmul.f32 %v927_v57, %v4597_v1  ;;  %v3314_v35 = vmul.f32 %v927_v57, %v4598_v0  ;;  %v3317_v26 = vmul.f32 %v926_v18, %v4597_v1  ;;  %v3320_v25 = vmul.f32 %v926_v18, %v4598_v0 }
 0x29b   : > { %v3323_v61 = vmul.f32 %v928_v4, %v4594_v23  ;;  %v3326_v7 = vmul.f32 %v928_v4, %v4595_v54  ;;  %v3329_v43 = vmul.f32 %v928_v4, %v4596_v42  ;;  %v3332_v47 = vmul.f32 %v928_v4, %v4597_v1 }
 0x29c   : > { %933 = vrot.lane.b32.xlu0 %v928_v4, %s4550_s0  ;;  %v3338_v17 = vmul.f32 %v928_v4, %v4598_v0 }
 0x29d   : > { %935 = vrot.lane.b32.xlu1 %v926_v18, %s4552_s1 }
 0x2a0   : > { %937 = vrot.lane.b32.xlu0 %v927_v57, %s4552_s1 }
 0x2a1   : > { %939 = vrot.lane.b32.xlu1 %v928_v4, %s4552_s1 }
 0x2a4   : > { %941 = vrot.lane.b32.xlu0 %v926_v18, %s4553_s2 }
 0x2a5   : > { %943 = vrot.lane.b32.xlu1 %v927_v57, %s4553_s2 }
 0x2a8   : > { %945 = vrot.lane.b32.xlu0 %v928_v4, %s4553_s2 }
 0x2a9   : > { %947 = vrot.lane.b32.xlu1 %v926_v18, %s4554_s13 }
 0x2ac   : > { %949 = vrot.lane.b32.xlu0 %v927_v57, %s4554_s13 }
 0x2ad   : > { %951 = vrot.lane.b32.xlu1 %v928_v4, %s4554_s13 }
 0x30a   : > { %v930_v24 = vpop.permute.xlu0 %929 }
 0x30b   : > { %v932_v45 = vpop.permute.xlu1 %931  ;;  %v953_v14 = vmul.f32 %v930_v24, %v4584_v30  ;;  %v986_v58 = vmul.f32 %v930_v24, %v4583_v37  ;;  %v1022_v2 = vmul.f32 %v930_v24, %v4582_v39  ;;  %v1052_v21 = vmul.f32 %v930_v24, %v4581_v62 }
 0x30c   : > { %v954_v11 = vmul.f32 %v932_v45, %v4584_v30  ;;  %v987_v60 = vmul.f32 %v932_v45, %v4583_v37  ;;  %v1023_v13 = vmul.f32 %v932_v45, %v4582_v39  ;;  %v1053_v32 = vmul.f32 %v932_v45, %v4581_v62 }
 0x30d   : > { %v1089_v48 = vmul.f32 %v932_v45, %v4580_v36  ;;  %v1088_v53 = vmul.f32 %v930_v24, %v4580_v36 }
 0x30e   : > { %v934_v50 = vpop.permute.xlu0 %933 }
 0x30f   : > { %v936_v6 = vpop.permute.xlu1 %935  ;;  %v955_v38 = vmul.f32 %v934_v50, %v4584_v30  ;;  %v988_v51 = vmul.f32 %v934_v50, %v4583_v37  ;;  %v1024_v18 = vmul.f32 %v934_v50, %v4582_v39  ;;  %v1054_v56 = vmul.f32 %v934_v50, %v4581_v62 }
 0x310   : > { %v956_v5 = vmul.f32 %v936_v6, %v2712_v33  ;;  %v989_v49 = vmul.f32 %v936_v6, %v2701_v28  ;;  %v1025_v31 = vmul.f32 %v936_v6, %v2699_v27  ;;  %v1055_v52 = vmul.f32 %v936_v6, %v2679_v20 }
 0x311   : > { %v1091_v59 = vmul.f32 %v936_v6, %v2677_v19  ;;  %v1090_v24 = vmul.f32 %v934_v50, %v4580_v36 }
 0x312   : > { %v959_v8 = vadd.f32 %v956_v5, %v953_v14  ;;  %v992_v57 = vadd.f32 %v989_v49, %v986_v58  ;;  %v1028_v4 = vadd.f32 %v1025_v31, %v1022_v2  ;;  %v938_v45 = vpop.permute.xlu0 %937  ;;  %v1058_v30 = vadd.f32 %v1055_v52, %v1052_v21 }
 0x313   : > { %v940_v23 = vpop.permute.xlu1 %939  ;;  %v957_v54 = vmul.f32 %v938_v45, %v2712_v33  ;;  %v990_v42 = vmul.f32 %v938_v45, %v2701_v28  ;;  %v1026_v6 = vmul.f32 %v938_v45, %v2699_v27  ;;  %v1094_v58 = vadd.f32 %v1091_v59, %v1088_v53 }
 0x314   : > { %v958_v37 = vmul.f32 %v940_v23, %v2712_v33  ;;  %v991_v39 = vmul.f32 %v940_v23, %v2701_v28  ;;  %v1027_v62 = vmul.f32 %v940_v23, %v2699_v27  ;;  %v1057_v14 = vmul.f32 %v940_v23, %v2679_v20 }
 0x315   : > { %v960_v2 = vadd.f32 %v957_v54, %v954_v11  ;;  %v993_v50 = vadd.f32 %v990_v42, %v987_v60  ;;  %v1029_v5 = vadd.f32 %v1026_v6, %v1023_v13  ;;  %v1093_v52 = vmul.f32 %v940_v23, %v2677_v19  ;;  %v4600_v11 = vld [vmem:[#allocation31_spill] sm:$0xff] }
 0x316   : > { %v961_v21 = vadd.f32 %v958_v37, %v955_v38  ;;  %v994_v49 = vadd.f32 %v991_v39, %v988_v51  ;;  %v1030_v31 = vadd.f32 %v1027_v62, %v1024_v18  ;;  %v1060_v36 = vadd.f32 %v1057_v14, %v1054_v56  ;;  %v4599_v39 = vld [vmem:[#allocation33_spill] sm:$0xff]  ;;  %v942_v60 = vpop.permute.xlu0 %941  ;;  %v4603_v14 = vld [vmem:[#allocation26_spill] sm:$0xff] }
 0x317   : > { %v1056_v1 = vmul.f32 %v938_v45, %v2679_v20  ;;  %v1092_v33 = vmul.f32 %v938_v45, %v2677_v19  ;;  %v944_v0 = vpop.permute.xlu1 %943  ;;  %v966_v28 = vadd.f32 %v963_v55, %v960_v2  ;;  %v999_v44 = vadd.f32 %v996_v63, %v993_v50  ;;  %v4601_v55 = vld [vmem:[#allocation30_spill] sm:$0xff] }
 0x318   : > { %v969_v27 = vmul.f32 %v944_v0, %v2669_v16  ;;  %v1002_v53 = vmul.f32 %v944_v0, %v2667_v15  ;;  %v1035_v54 = vadd.f32 %v3305_v41, %v1029_v5  ;;  %v1038_v62 = vmul.f32 %v944_v0, %v4599_v39 }
 0x319   : > { %v1059_v42 = vadd.f32 %v1056_v1, %v1053_v32  ;;  %v1095_v37 = vadd.f32 %v1092_v33, %v1089_v48  ;;  %v1068_v23 = vmul.f32 %v944_v0, %v4600_v11  ;;  %v1096_v13 = vadd.f32 %v1093_v52, %v1090_v24  ;;  %v4604_v52 = vld [vmem:[#allocation25_spill] sm:$0xff] }
 0x31a   : > { %v3372_v38 = vadd.f32 %v969_v27, %v966_v28  ;;  %v3374_v59 = vadd.f32 %v1002_v53, %v999_v44  ;;  %v1104_v51 = vmul.f32 %v944_v0, %v4601_v55  ;;  %v3377_v18 = vadd.f32 %v1038_v62, %v1035_v54  ;;  %v946_v24 = vpop.permute.xlu0 %945 }
 0x31b   : > { %v1065_v63 = vadd.f32 %v3311_v46, %v1059_v42  ;;  %v1101_v41 = vadd.f32 %v3314_v35, %v1095_v37  ;;  %v965_v33 = vadd.f32 %v3297_v22, %v959_v8  ;;  %v948_v1 = vpop.permute.xlu1 %947  ;;  %v998_v32 = vadd.f32 %v3300_v3, %v992_v57 }
 0x31c   : > { %v1034_v48 = vadd.f32 %v3308_v40, %v1028_v4  ;;  %v1064_v27 = vadd.f32 %v3317_v26, %v1058_v30  ;;  %v968_v28 = vmul.f32 %v942_v60, %v2669_v16  ;;  %v1100_v0 = vadd.f32 %v3320_v25, %v1094_v58  ;;  %v4602_v26 = vld [vmem:[#allocation27_spill] sm:$0xff] }
 0x31d   : > { %v3386_v44 = vadd.f32 %v1068_v23, %v1065_v63  ;;  %v1001_v56 = vmul.f32 %v942_v60, %v2667_v15  ;;  %v1037_v46 = vmul.f32 %v942_v60, %v4599_v39  ;;  %v1067_v22 = vmul.f32 %v942_v60, %v4600_v11 }
 0x31e   : > { %v971_v35 = vadd.f32 %v968_v28, %v965_v33  ;;  %v1103_v8 = vmul.f32 %v942_v60, %v4601_v55  ;;  %v974_v3 = vmul.f32 %v948_v1, %v2655_v10  ;;  %v1007_v30 = vmul.f32 %v948_v1, %v2649_v9 }
 0x31f   : > { %v1004_v40 = vadd.f32 %v1001_v56, %v998_v32  ;;  %v1040_v57 = vadd.f32 %v1037_v46, %v1034_v48  ;;  %v1043_v4 = vmul.f32 %v948_v1, %v4602_v26  ;;  %v3396_v45 = vadd.f32 %v1104_v51, %v1101_v41  ;;  %v952_v41 = vpop.permute.xlu1 %951 }
 0x320   : > { %v1070_v25 = vadd.f32 %v1067_v22, %v1064_v27  ;;  %v977_v6 = vadd.f32 %v974_v3, %v971_v35  ;;  %v1073_v58 = vmul.f32 %v948_v1, %v4603_v14  ;;  %v1106_v2 = vadd.f32 %v1103_v8, %v1100_v0  ;;  %v950_v0 = vpop.permute.xlu0 %949 }
 0x321   : > { %v1010_v50 = vadd.f32 %v1007_v30, %v1004_v40  ;;  %v1046_v5 = vadd.f32 %v1043_v4, %v1040_v57  ;;  %v1109_v53 = vmul.f32 %v948_v1, %v4604_v52  ;;  %v967_v37 = vadd.f32 %v3323_v61, %v961_v21 }
 0x322   : > { %v980_v54 = vrot.slane %v977_v6, 6  ;;  %v3400_v42 = vadd.f32 %v1073_v58, %v1070_v25  ;;  %v970_v62 = vmul.f32 %v946_v24, %v2669_v16  ;;  %v1000_v51 = vadd.f32 %v3326_v7, %v994_v49 }
 0x323   : > { %v1013_v23 = vrot.slane %v1010_v50, 7  ;;  %v3404_v60 = vadd.f32 %v1109_v53, %v1106_v2  ;;  %v1003_v63 = vmul.f32 %v946_v24, %v2667_v15  ;;  %v1036_v1 = vadd.f32 %v3329_v43, %v1030_v31 }
 0x324   : > { %v1079_v33 = vrot.slane %v3400_v42, 1  ;;  %v973_v32 = vadd.f32 %v970_v62, %v967_v37  ;;  %v1039_v48 = vmul.f32 %v946_v24, %v4599_v39  ;;  %v1066_v61 = vadd.f32 %v3332_v47, %v1060_v36 }
 0x325   : > { %v1006_v27 = vadd.f32 %v1003_v63, %v1000_v51  ;;  %v1069_v21 = vmul.f32 %v946_v24, %v4600_v11  ;;  %v1102_v28 = vadd.f32 %v3338_v17, %v1096_v13  ;;  %v1105_v7 = vmul.f32 %v946_v24, %v4601_v55 }
 0x326   : > { %v1042_v56 = vadd.f32 %v1039_v48, %v1036_v1  ;;  %v976_v49 = vmul.f32 %v952_v41, %v2655_v10  ;;  %v1009_v46 = vmul.f32 %v952_v41, %v2649_v9  ;;  %v1045_v43 = vmul.f32 %v952_v41, %v4602_v26 }
 0x327   : > { %v1072_v35 = vadd.f32 %v1069_v21, %v1066_v61  ;;  %v1075_v31 = vmul.f32 %v952_v41, %v4603_v14  ;;  %v1111_v22 = vmul.f32 %v952_v41, %v4604_v52  ;;  %v1108_v36 = vadd.f32 %v1105_v7, %v1102_v28 }
 0x328   : > { %v979_v47 = vadd.f32 %v976_v49, %v973_v32  ;;  %v1012_v8 = vadd.f32 %v1009_v46, %v1006_v27  ;;  %v975_v17 = vmul.f32 %v950_v0, %v2655_v10  ;;  %v1115_v13 = vrot.slane %v3404_v60, 2 }
 0x329   : > { %v1048_v3 = vadd.f32 %v1045_v43, %v1042_v56  ;;  %v1078_v40 = vadd.f32 %v1075_v31, %v1072_v35  ;;  %v1008_v57 = vmul.f32 %v950_v0, %v2649_v9  ;;  %v1114_v24 = vadd.f32 %v1111_v22, %v1108_v36 }
 0x32a   : > { %v982_v30 = vrot.slane %v979_v47, 6  ;;  %v1015_v4 = vrot.slane %v1012_v8, 7  ;;  %v978_v25 = vadd.f32 %v975_v17, %v3372_v38  ;;  %v1044_v2 = vmul.f32 %v950_v0, %v4602_v26  ;;  %v4605_v47 = vld [vmem:[#allocation23_spill] sm:$0xff]  ;;  %v4606_v17 = vld [vmem:[#allocation24_spill] sm:$0xff] }
 0x32b   : > { %v1081_v6 = vrot.slane %v1078_v40, 1  ;;  %v1011_v58 = vadd.f32 %v1008_v57, %v3374_v59  ;;  %v1074_v50 = vmul.f32 %v950_v0, %v4603_v14  ;;  %v1117_v37 = vrot.slane %v1114_v24, 2 }
 0x32c   : > { %v985_v53 = vsel %vm314_vm0, %v982_v30, %v980_v54  ;;  %v1018_v42 = vsel %vm353_vm1, %v1015_v4, %v1013_v23  ;;  %v981_v62 = vrot.slane %v978_v25, 6  ;;  %v1110_v1 = vmul.f32 %v950_v0, %v4604_v52  ;;  %v4612_v25 = vld [vmem:[#allocation32_spill] sm:$0xff] }
 0x32d   : > { %v1019_v60 = vadd.f32 %v1018_v42, %v985_v53  ;;  %v1084_v51 = vsel %vm430_vm2, %v1081_v6, %v1079_v33  ;;  %v1014_v38 = vrot.slane %v1011_v58, 7  ;;  %v1077_v63 = vadd.f32 %v1074_v50, %v3386_v44  ;;  %v4613_v58 = vld [vmem:[#allocation34_spill] sm:$0xff] }
 0x32e   : > { %v1120_v59 = vsel %vm472_vm3, %v1117_v37, %v1115_v13  ;;  %v983_v41 = vsel %vm314_vm0, %v981_v62, %v982_v30  ;;  %v984_v32 = vsel %vm314_vm0, %v980_v54, %v981_v62  ;;  %v1047_v56 = vadd.f32 %v1044_v2, %v3377_v18 }
 0x32f   : > { %v1016_v48 = vsel %vm353_vm1, %v1014_v38, %v1015_v4  ;;  %v1017_v27 = vsel %vm353_vm1, %v1013_v23, %v1014_v38  ;;  %v1049_v61 = vadd.f32 %v1046_v5, %v1019_v60  ;;  %v1080_v21 = vrot.slane %v1077_v63, 1  ;;  %v4615_v60 = vld [vmem:[#allocation36_spill] sm:$0xff]  ;;  %v4616_v38 = vld [vmem:[#allocation37_spill] sm:$0xff] }
 0x330   : > { %v1020_v44 = vadd.f32 %v1017_v27, %v984_v32  ;;  %v1021_v28 = vadd.f32 %v1016_v48, %v983_v41  ;;  %v1113_v7 = vadd.f32 %v1110_v1, %v3396_v45 }
 0x331   : > { %v1082_v49 = vsel %vm430_vm2, %v1080_v21, %v1081_v6  ;;  %v1083_v54 = vsel %vm430_vm2, %v1079_v33, %v1080_v21  ;;  %v4607_v33 = vld [vmem:[#allocation22_spill] sm:$0xff] }
 0x332   : > { %v1050_v0 = vadd.f32 %v1047_v56, %v1020_v44  ;;  %v1051_v46 = vadd.f32 %v1048_v3, %v1021_v28  ;;  %v1085_v35 = vadd.f32 %v1083_v54, %v1049_v61  ;;  %v1116_v43 = vrot.slane %v1113_v7, 2 }
 0x334   : > { %v1086_v31 = vadd.f32 %v1082_v49, %v1050_v0  ;;  %v1087_v23 = vadd.f32 %v1084_v51, %v1051_v46  ;;  %v1118_v5 = vsel %vm472_vm3, %v1116_v43, %v1117_v37  ;;  %v1119_v18 = vsel %vm472_vm3, %v1115_v13, %v1116_v43  ;;  %v4614_v37 = vld [vmem:[#allocation35_spill] sm:$0xff] }
 0x335   : > { %v1121_v22 = vadd.f32 %v1119_v18, %v1085_v35 }
 0x336   : > { %v1122_v45 = vadd.f32 %v1118_v5, %v1086_v31  ;;  %v1123_v36 = vadd.f32 %v1120_v59, %v1087_v23 }
 0x337   : > { %v1124_v8 = vmul.f32 %v1121_v22, %v4605_v47 }
 0x338   : > { %v1125_v40 = vmul.f32 %v1122_v45, %v4606_v17  ;;  %v1126_v57 = vmul.f32 %v1123_v36, %v4607_v33 }
 0x339   : > { %v3460_v3 = vsel %vm244_vm4, %v1124_v8, 0.0 }
 0x33a   : > { %4608 = vst [vmem:[#allocation50_spill] sm:$0xff] %v3460_v3  ;;  %v3464_v30 = vsel %vm245_vm5, %v1125_v40, 0.0  ;;  %1130 = vrot.lane.b32.xlu0 %v3460_v3, %s4550_s0  ;;  %v3472_v4 = vsel %vm246_vm6, %v1126_v57, 0.0  ;;  %v3496_v6 = vmul.f32 %v3460_v3, %v4612_v25  ;;  %v3500_v2 = vmul.f32 %v3460_v3, %v4613_v58 }
 0x33b   : > { %4609 = vst [vmem:[#allocation51_spill] sm:$0xff] %v3464_v30  ;;  %1132 = vrot.lane.b32.xlu1 %v3464_v30, %s4550_s0  ;;  %4611 = vst [vmem:[#allocation49_spill] sm:$0xff] %v3472_v4  ;;  %v1164_v53 = vmul.f32 %v3464_v30, %v4612_v25  ;;  %v1197_v42 = vmul.f32 %v3464_v30, %v4613_v58  ;;  %v3508_v62 = vmul.f32 %v3464_v30, %v4614_v37 }
 0x33c   : > { %v3512_v51 = vmul.f32 %v3464_v30, %v4615_v60  ;;  %v3516_v63 = vmul.f32 %v3464_v30, %v4616_v38  ;;  %v3520_v59 = vmul.f32 %v3460_v3, %v4614_v37  ;;  %v3524_v41 = vmul.f32 %v3460_v3, %v4615_v60 }
 0x33d   : > { %v3528_v32 = vmul.f32 %v3460_v3, %v4616_v38  ;;  %v3532_v1 = vmul.f32 %v3472_v4, %v4612_v25  ;;  %v3536_v48 = vmul.f32 %v3472_v4, %v4613_v58  ;;  %v3540_v27 = vmul.f32 %v3472_v4, %v4614_v37 }
 0x33e   : > { %1134 = vrot.lane.b32.xlu0 %v3472_v4, %s4550_s0  ;;  %v3544_v61 = vmul.f32 %v3472_v4, %v4615_v60  ;;  %v3551_v7 = vmul.f32 %v3472_v4, %v4616_v38 }
 0x33f   : > { %1136 = vrot.lane.b32.xlu1 %v3460_v3, %s4552_s1 }
 0x342   : > { %1138 = vrot.lane.b32.xlu0 %v3464_v30, %s4552_s1 }
 0x343   : > { %1140 = vrot.lane.b32.xlu1 %v3472_v4, %s4552_s1 }
 0x346   : > { %1142 = vrot.lane.b32.xlu0 %v3460_v3, %s4553_s2 }
 0x347   : > { %1144 = vrot.lane.b32.xlu1 %v3464_v30, %s4553_s2 }
 0x34a   : > { %1146 = vrot.lane.b32.xlu0 %v3472_v4, %s4553_s2 }
 0x34b   : > { %1148 = vrot.lane.b32.xlu1 %v3460_v3, %s4554_s13 }
 0x34e   : > { %1150 = vrot.lane.b32.xlu0 %v3464_v30, %s4554_s13 }
 0x34f   : > { %1152 = vrot.lane.b32.xlu1 %v3472_v4, %s4554_s13 }
 0x3ac   : > { %v1131_v24 = vpop.permute.xlu0 %1130 }
 0x3ad   : > { %v1133_v50 = vpop.permute.xlu1 %1132  ;;  %v1154_v21 = vmul.f32 %v1131_v24, %v4604_v52  ;;  %v1187_v44 = vmul.f32 %v1131_v24, %v4603_v14  ;;  %v1223_v28 = vmul.f32 %v1131_v24, %v4602_v26  ;;  %v1253_v46 = vmul.f32 %v1131_v24, %v2649_v9 }
 0x3ae   : > { %v1155_v49 = vmul.f32 %v1133_v50, %v4604_v52  ;;  %v1188_v54 = vmul.f32 %v1133_v50, %v4603_v14  ;;  %v1224_v0 = vmul.f32 %v1133_v50, %v4602_v26  ;;  %v1254_v43 = vmul.f32 %v1133_v50, %v2649_v9 }
 0x3af   : > { %v1290_v18 = vmul.f32 %v1133_v50, %v2655_v10  ;;  %v1289_v22 = vmul.f32 %v1131_v24, %v2655_v10 }
 0x3b0   : > { %v1135_v56 = vpop.permute.xlu0 %1134 }
 0x3b1   : > { %v1137_v35 = vpop.permute.xlu1 %1136  ;;  %v1156_v45 = vmul.f32 %v1135_v56, %v4604_v52  ;;  %v1189_v36 = vmul.f32 %v1135_v56, %v4603_v14  ;;  %v1225_v17 = vmul.f32 %v1135_v56, %v4602_v26  ;;  %v1255_v40 = vmul.f32 %v1135_v56, %v2649_v9 }
 0x3b2   : > { %v1157_v31 = vmul.f32 %v1137_v35, %v4601_v55  ;;  %v1190_v23 = vmul.f32 %v1137_v35, %v4600_v11  ;;  %v1226_v5 = vmul.f32 %v1137_v35, %v4599_v39  ;;  %v1256_v47 = vmul.f32 %v1137_v35, %v2667_v15 }
 0x3b3   : > { %v1292_v8 = vmul.f32 %v1137_v35, %v2669_v16  ;;  %v1291_v57 = vmul.f32 %v1135_v56, %v2655_v10 }
 0x3b4   : > { %v1139_v33 = vpop.permute.xlu0 %1138  ;;  %v1160_v3 = vadd.f32 %v1157_v31, %v1154_v21  ;;  %v1193_v52 = vadd.f32 %v1190_v23, %v1187_v44  ;;  %v1229_v14 = vadd.f32 %v1226_v5, %v1223_v28  ;;  %v1259_v37 = vadd.f32 %v1256_v47, %v1253_v46 }
 0x3b5   : > { %v1141_v4 = vpop.permute.xlu1 %1140  ;;  %v1158_v50 = vmul.f32 %v1139_v33, %v4601_v55  ;;  %v1191_v24 = vmul.f32 %v1139_v33, %v4600_v11  ;;  %v1227_v30 = vmul.f32 %v1139_v33, %v4599_v39  ;;  %v1295_v38 = vadd.f32 %v1292_v8, %v1289_v22  ;;  %v4617_v22 = vld [vmem:[#allocation38_spill] sm:$0xff] }
 0x3b6   : > { %v1159_v25 = vmul.f32 %v1141_v4, %v4601_v55  ;;  %v1192_v35 = vmul.f32 %v1141_v4, %v4600_v11  ;;  %v1228_v26 = vmul.f32 %v1141_v4, %v4599_v39  ;;  %v1258_v56 = vmul.f32 %v1141_v4, %v2667_v15 }
 0x3b7   : > { %v1161_v9 = vadd.f32 %v1158_v50, %v1155_v49  ;;  %v1194_v58 = vadd.f32 %v1191_v24, %v1188_v54  ;;  %v1294_v10 = vmul.f32 %v1141_v4, %v2669_v16  ;;  %v1230_v60 = vadd.f32 %v1227_v30, %v1224_v0 }
 0x3b8   : > { %v1257_v13 = vmul.f32 %v1139_v33, %v2667_v15  ;;  %v1293_v21 = vmul.f32 %v1139_v33, %v2669_v16  ;;  %v1162_v31 = vadd.f32 %v1159_v25, %v1156_v45  ;;  %v1195_v54 = vadd.f32 %v1192_v35, %v1189_v36  ;;  %v1143_v24 = vpop.permute.xlu0 %1142  ;;  %v4618_v25 = vld [vmem:[#allocation39_spill] sm:$0xff] }
 0x3b9   : > { %v1145_v44 = vpop.permute.xlu1 %1144  ;;  %v1167_v28 = vadd.f32 %v1164_v53, %v1161_v9  ;;  %v1200_v5 = vadd.f32 %v1197_v42, %v1194_v58  ;;  %v1231_v46 = vadd.f32 %v1228_v26, %v1225_v17  ;;  %v1261_v4 = vadd.f32 %v1258_v56, %v1255_v40  ;;  %v4619_v53 = vld [vmem:[#allocation40_spill] sm:$0xff] }
 0x3ba   : > { %v1170_v23 = vmul.f32 %v1145_v44, %v2677_v19  ;;  %v1203_v49 = vmul.f32 %v1145_v44, %v2679_v20  ;;  %v1260_v47 = vadd.f32 %v1257_v13, %v1254_v43  ;;  %v1296_v50 = vadd.f32 %v1293_v21, %v1290_v18  ;;  %v4622_v21 = vld [vmem:[#allocation43_spill] sm:$0xff] }
 0x3bb   : > { %v3582_v30 = vadd.f32 %v1294_v10, %v1291_v57  ;;  %v1236_v0 = vadd.f32 %v3508_v62, %v1230_v60  ;;  %v1239_v8 = vmul.f32 %v1145_v44, %v4617_v22  ;;  %v1269_v58 = vmul.f32 %v1145_v44, %v4618_v25 }
 0x3bc   : > { %v3586_v33 = vadd.f32 %v1170_v23, %v1167_v28  ;;  %v3588_v9 = vadd.f32 %v1203_v49, %v1200_v5  ;;  %v1305_v42 = vmul.f32 %v1145_v44, %v4619_v53  ;;  %v1266_v26 = vadd.f32 %v3512_v51, %v1260_v47  ;;  %v4620_v51 = vld [vmem:[#allocation41_spill] sm:$0xff]  ;;  %v4623_v28 = vld [vmem:[#allocation44_spill] sm:$0xff] }
 0x3bd   : > { %v1149_v45 = vpop.permute.xlu1 %1148  ;;  %v1302_v13 = vadd.f32 %v3516_v63, %v1296_v50  ;;  %v1166_v10 = vadd.f32 %v3496_v6, %v1160_v3  ;;  %v1169_v43 = vmul.f32 %v1143_v24, %v2677_v19  ;;  %v1199_v62 = vadd.f32 %v3500_v2, %v1193_v52  ;;  %v4621_v6 = vld [vmem:[#allocation42_spill] sm:$0xff]  ;;  %v1147_v2 = vpop.permute.xlu0 %1146  ;;  %v4624_v50 = vld [vmem:[#allocation45_spill] sm:$0xff] }
 0x3be   : > { %v1235_v60 = vadd.f32 %v3520_v59, %v1229_v14  ;;  %v1202_v18 = vmul.f32 %v1143_v24, %v2679_v20  ;;  %v1238_v36 = vmul.f32 %v1143_v24, %v4617_v22  ;;  %v1268_v40 = vmul.f32 %v1143_v24, %v4618_v25 }
 0x3bf   : > { %v1172_v17 = vadd.f32 %v1169_v43, %v1166_v10  ;;  %v1304_v57 = vmul.f32 %v1143_v24, %v4619_v53  ;;  %v1175_v35 = vmul.f32 %v1149_v45, %v4620_v51  ;;  %v1265_v63 = vadd.f32 %v3524_v41, %v1259_v37 }
 0x3c0   : > { %v1205_v3 = vadd.f32 %v1202_v18, %v1199_v62  ;;  %v1208_v56 = vmul.f32 %v1149_v45, %v4621_v6  ;;  %v1244_v52 = vmul.f32 %v1149_v45, %v4622_v21  ;;  %v3606_v14 = vadd.f32 %v1239_v8, %v1236_v0 }
 0x3c1   : > { %v1301_v59 = vadd.f32 %v3528_v32, %v1295_v38  ;;  %v1178_v44 = vadd.f32 %v1175_v35, %v1172_v17  ;;  %v1274_v23 = vmul.f32 %v1149_v45, %v4623_v28  ;;  %v1241_v5 = vadd.f32 %v1238_v36, %v1235_v60  ;;  %v1153_v32 = vpop.permute.xlu1 %1152 }
 0x3c2   : > { %v1271_v49 = vadd.f32 %v1268_v40, %v1265_v63  ;;  %v1211_v47 = vadd.f32 %v1208_v56, %v1205_v3  ;;  %v1310_v24 = vmul.f32 %v1149_v45, %v4624_v50  ;;  %v1272_v10 = vadd.f32 %v1269_v58, %v1266_v26 }
 0x3c3   : > { %v1308_v37 = vadd.f32 %v1305_v42, %v1302_v13  ;;  %v1307_v41 = vadd.f32 %v1304_v57, %v1301_v59  ;;  %v1171_v43 = vmul.f32 %v1147_v2, %v2677_v19  ;;  %v1247_v62 = vadd.f32 %v1244_v52, %v1241_v5  ;;  %v1151_v13 = vpop.permute.xlu0 %1150 }
 0x3c4   : > { %v3612_v18 = vadd.f32 %v1274_v23, %v1271_v49  ;;  %v1168_v0 = vadd.f32 %v3532_v1, %v1162_v31  ;;  %v1204_v38 = vmul.f32 %v1147_v2, %v2679_v20  ;;  %v1181_v8 = vrot.slane %v1178_v44, 6 }
 0x3c5   : > { %v1214_v17 = vrot.slane %v1211_v47, 7  ;;  %v3616_v60 = vadd.f32 %v1310_v24, %v1307_v41  ;;  %v1201_v36 = vadd.f32 %v3536_v48, %v1195_v54  ;;  %v1237_v58 = vadd.f32 %v3540_v27, %v1231_v46 }
 0x3c6   : > { %v1174_v45 = vadd.f32 %v1171_v43, %v1168_v0  ;;  %v1240_v42 = vmul.f32 %v1147_v2, %v4617_v22  ;;  %v1270_v26 = vmul.f32 %v1147_v2, %v4618_v25  ;;  %v1267_v1 = vadd.f32 %v3544_v61, %v1261_v4 }
 0x3c7   : > { %v1207_v40 = vadd.f32 %v1204_v38, %v1201_v36  ;;  %v1177_v31 = vmul.f32 %v1153_v32, %v4620_v51  ;;  %v1210_v57 = vmul.f32 %v1153_v32, %v4621_v6  ;;  %v1280_v35 = vrot.slane %v3612_v18, 1 }
 0x3c8   : > { %v1306_v63 = vmul.f32 %v1147_v2, %v4619_v53  ;;  %v1246_v48 = vmul.f32 %v1153_v32, %v4622_v21  ;;  %v1276_v27 = vmul.f32 %v1153_v32, %v4623_v28  ;;  %v1273_v54 = vadd.f32 %v1270_v26, %v1267_v1 }
 0x3c9   : > { %v1180_v46 = vadd.f32 %v1177_v31, %v1174_v45  ;;  %v1213_v3 = vadd.f32 %v1210_v57, %v1207_v40  ;;  %v1176_v56 = vmul.f32 %v1151_v13, %v4620_v51  ;;  %v1243_v52 = vadd.f32 %v1240_v42, %v1237_v58 }
 0x3ca   : > { %v1303_v61 = vadd.f32 %v3551_v7, %v3582_v30  ;;  %v1312_v4 = vmul.f32 %v1153_v32, %v4624_v50  ;;  %v1209_v59 = vmul.f32 %v1151_v13, %v4621_v6  ;;  %v1279_v2 = vadd.f32 %v1276_v27, %v1273_v54 }
 0x3cb   : > { %v1183_v44 = vrot.slane %v1180_v46, 6  ;;  %v1216_v23 = vrot.slane %v1213_v3, 7  ;;  %v1179_v5 = vadd.f32 %v1176_v56, %v3586_v33  ;;  %v1249_v47 = vadd.f32 %v1246_v48, %v1243_v52 }
 0x3cc   : > { %v1309_v49 = vadd.f32 %v1306_v63, %v1303_v61  ;;  %v1212_v24 = vadd.f32 %v1209_v59, %v3588_v9  ;;  %v1275_v41 = vmul.f32 %v1151_v13, %v4623_v28  ;;  %v1245_v18 = vmul.f32 %v1151_v13, %v4622_v21 }
 0x3cd   : > { %v1186_v43 = vsel %vm314_vm0, %v1183_v44, %v1181_v8  ;;  %v1219_v7 = vsel %vm353_vm1, %v1216_v23, %v1214_v17  ;;  %v1182_v30 = vrot.slane %v1179_v5, 6  ;;  %v1282_v33 = vrot.slane %v1279_v2, 1 }
 0x3ce   : > { %v1220_v0 = vadd.f32 %v1219_v7, %v1186_v43  ;;  %v1315_v38 = vadd.f32 %v1312_v4, %v1309_v49  ;;  %v1215_v32 = vrot.slane %v1212_v24, 7  ;;  %v1278_v36 = vadd.f32 %v1275_v41, %v1272_v10 }
 0x3cf   : > { %v1184_v45 = vsel %vm314_vm0, %v1182_v30, %v1183_v44  ;;  %v1185_v9 = vsel %vm314_vm0, %v1181_v8, %v1182_v30  ;;  %v1311_v58 = vmul.f32 %v1151_v13, %v4624_v50  ;;  %v1248_v10 = vadd.f32 %v1245_v18, %v3606_v14 }
 0x3d0   : > { %v1217_v42 = vsel %vm353_vm1, %v1215_v32, %v1216_v23  ;;  %v1218_v26 = vsel %vm353_vm1, %v1214_v17, %v1215_v32  ;;  %v1250_v40 = vadd.f32 %v1247_v62, %v1220_v0  ;;  %v1281_v1 = vrot.slane %v1278_v36, 1 }
 0x3d1   : > { %v1221_v31 = vadd.f32 %v1218_v26, %v1185_v9  ;;  %v1222_v57 = vadd.f32 %v1217_v42, %v1184_v45  ;;  %v1314_v63 = vadd.f32 %v1311_v58, %v1308_v37  ;;  %v1316_v48 = vrot.slane %v3616_v60, 2  ;;  %v3666_v58 = vld [vmem:[%s2592_s10] sm:$0xff] }
 0x3d2   : > { %v1318_v27 = vrot.slane %v1315_v38, 2  ;;  %v1284_v8 = vsel %vm430_vm2, %v1280_v35, %v1281_v1  ;;  %v1285_v17 = vsel %vm430_vm2, %v1282_v33, %v1280_v35  ;;  %v1283_v62 = vsel %vm430_vm2, %v1281_v1, %v1282_v33  ;;  %4625 = vst [vmem:[#allocation46_spill] sm:$0xff] %v3666_v58 }
 0x3d3   : > { %v1251_v13 = vadd.f32 %v1248_v10, %v1221_v31  ;;  %v1252_v54 = vadd.f32 %v1249_v47, %v1222_v57  ;;  %v1286_v46 = vadd.f32 %v1284_v8, %v1250_v40  ;;  %v1317_v3 = vrot.slane %v1314_v63, 2  ;;  %v3670_v40 = vld [vmem:[%s2592_s10 + $0x8] sm:$0xff]  ;;  %v3676_v57 = vld [vmem:[%s2592_s10 + $0x10] sm:$0xff]  ;;  %s4288_s10 = scalar_lea.hbm %s4336_s3, %s2138_s14 }
 0x3d4   : > { %v1321_v37 = vsel %vm472_vm3, %v1318_v27, %v1316_v48  ;;  %4626 = vst [vmem:[#allocation47_spill] sm:$0xff] %v3670_v40  ;;  %4627 = vst [vmem:[#allocation48_spill] sm:$0xff] %v3676_v57  ;;  %v4629_v8 = vld [vmem:[#allocation37_spill] sm:$0xff] }
 0x3d5   : > { %v1287_v56 = vadd.f32 %v1283_v62, %v1251_v13  ;;  %v1288_v52 = vadd.f32 %v1285_v17, %v1252_v54  ;;  %v1320_v14 = vsel %vm472_vm3, %v1316_v48, %v1317_v3  ;;  %v1319_v60 = vsel %vm472_vm3, %v1317_v3, %v1318_v27  ;;  %v4630_v54 = vld [vmem:[#allocation36_spill] sm:$0xff] }
 0x3d6   : > { %v1322_v61 = vadd.f32 %v1320_v14, %v1286_v46 }
 0x3d7   : > { %v1323_v4 = vadd.f32 %v1319_v60, %v1287_v56  ;;  %v1324_v59 = vadd.f32 %v1321_v37, %v1288_v52  ;;  %v4631_v56 = vld [vmem:[#allocation35_spill] sm:$0xff]  ;;  %v4632_v60 = vld [vmem:[#allocation34_spill] sm:$0xff] }
 0x3d8   : > { %2226 = vrcp.f32 %v1322_v61 }
 0x3d9   : > { %2228 = vrcp.f32 %v1323_v4 }
 0x3da   : > { %2230 = vrcp.f32 %v1324_v59 }
 0x3e2   : > { %v2227_v35 = vpop.eup %2226 }
 0x3e3   : > { %v2229_v44 = vpop.eup %2228  ;;  %v1328_v23 = vmul.f32 %v2227_v35, %v1322_v61 }
 0x3e4   : > { %v2231_v2 = vpop.eup %2230  ;;  %v1329_v5 = vmul.f32 %v2229_v44, %v1323_v4 }
 0x3e5   : > { %v1330_v49 = vmul.f32 %v2231_v2, %v1324_v59  ;;  %v1331_v47 = vsub.f32 2.0, %v1328_v23 }
 0x3e6   : > { %v1332_v24 = vsub.f32 2.0, %v1329_v5 }
 0x3e7   : > { %v1333_v41 = vsub.f32 2.0, %v1330_v49  ;;  %v1334_v43 = vmul.f32 %v2227_v35, %v1331_v47 }
 0x3e8   : > { %v1335_v7 = vmul.f32 %v2229_v44, %v1332_v24 }
 0x3e9   : > { %v1337_v30 = vmul.f32 %v1334_v43, %v1322_v61  ;;  %v1336_v18 = vmul.f32 %v2231_v2, %v1333_v41 }
 0x3ea   : > { %v1338_v0 = vmul.f32 %v1335_v7, %v1323_v4  ;;  %v4633_v4 = vld [vmem:[#allocation32_spill] sm:$0xff] }
 0x3eb   : > { %v1340_v38 = vsub.f32 2.0, %v1337_v30  ;;  %v1339_v32 = vmul.f32 %v1336_v18, %v1324_v59 }
 0x3ec   : > { %v1341_v36 = vsub.f32 2.0, %v1338_v0 }
 0x3ed   : > { %v1343_v33 = vmul.f32 %v1340_v38, %v1334_v43  ;;  %v1342_v45 = vsub.f32 2.0, %v1339_v32 }
 0x3ee   : > { %v1344_v9 = vmul.f32 %v1341_v36, %v1335_v7 }
 0x3ef   : > { %v1346_v42 = vmul.f32 %v3666_v58, %v1343_v33  ;;  %v1345_v26 = vmul.f32 %v1342_v45, %v1336_v18 }
 0x3f0   : > { %v1347_v1 = vmul.f32 %v3670_v40, %v1344_v9 }
 0x3f1   : > { %v1349_v31 = vsel %vm244_vm4, %v1346_v42, 0.0  ;;  %v1348_v10 = vmul.f32 %v3676_v57, %v1345_v26 }
 0x3f2   : > { %v1350_v63 = vsel %vm245_vm5, %v1347_v1, 0.0  ;;  %1352 = vrot.lane.b32.xlu0 %v1349_v31, %s4550_s0  ;;  %v3696_v13 = vmul.f32 %v1349_v31, %v4629_v8  ;;  %v3699_v46 = vmul.f32 %v1349_v31, %v4630_v54  ;;  %v3707_v14 = vmul.f32 %v1349_v31, %v4631_v56 }
 0x3f3   : > { %1354 = vrot.lane.b32.xlu1 %v1350_v63, %s4550_s0  ;;  %v1351_v27 = vsel %vm246_vm6, %v1348_v10, 0.0  ;;  %v1386_v17 = vmul.f32 %v1350_v63, %v4629_v8  ;;  %v1419_v62 = vmul.f32 %v1350_v63, %v4630_v54  ;;  %v3704_v52 = vmul.f32 %v1350_v63, %v4631_v56 }
 0x3f4   : > { %v3710_v61 = vmul.f32 %v1350_v63, %v4632_v60  ;;  %v3713_v59 = vmul.f32 %v1350_v63, %v4633_v4  ;;  %v3716_v35 = vmul.f32 %v1349_v31, %v4632_v60  ;;  %v3719_v44 = vmul.f32 %v1349_v31, %v4633_v4 }
 0x3f5   : > { %v3722_v23 = vmul.f32 %v1351_v27, %v4629_v8  ;;  %v3725_v2 = vmul.f32 %v1351_v27, %v4630_v54  ;;  %v3728_v5 = vmul.f32 %v1351_v27, %v4631_v56  ;;  %v3731_v49 = vmul.f32 %v1351_v27, %v4632_v60 }
 0x3f6   : > { %1356 = vrot.lane.b32.xlu0 %v1351_v27, %s4550_s0  ;;  %v3737_v43 = vmul.f32 %v1351_v27, %v4633_v4 }
 0x3f7   : > { %1358 = vrot.lane.b32.xlu1 %v1349_v31, %s4552_s1 }
 0x3fa   : > { %1360 = vrot.lane.b32.xlu0 %v1350_v63, %s4552_s1 }
 0x3fb   : > { %1362 = vrot.lane.b32.xlu1 %v1351_v27, %s4552_s1 }
 0x3fe   : > { %1364 = vrot.lane.b32.xlu0 %v1349_v31, %s4553_s2 }
 0x3ff   : > { %1366 = vrot.lane.b32.xlu1 %v1350_v63, %s4553_s2 }
 0x402   : > { %1368 = vrot.lane.b32.xlu0 %v1351_v27, %s4553_s2 }
 0x403   : > { %1370 = vrot.lane.b32.xlu1 %v1349_v31, %s4554_s13 }
 0x406   : > { %1372 = vrot.lane.b32.xlu0 %v1350_v63, %s4554_s13 }
 0x407   : > { %1374 = vrot.lane.b32.xlu1 %v1351_v27, %s4554_s13 }
 0x464   : > { %v1353_v3 = vpop.permute.xlu0 %1352 }
 0x465   : > { %v1355_v37 = vpop.permute.xlu1 %1354  ;;  %v1376_v47 = vmul.f32 %v1353_v3, %v4624_v50  ;;  %v1409_v24 = vmul.f32 %v1353_v3, %v4623_v28  ;;  %v1445_v41 = vmul.f32 %v1353_v3, %v4622_v21  ;;  %v1475_v0 = vmul.f32 %v1353_v3, %v4621_v6 }
 0x466   : > { %v1377_v7 = vmul.f32 %v1355_v37, %v4624_v50  ;;  %v1410_v30 = vmul.f32 %v1355_v37, %v4623_v28  ;;  %v1446_v18 = vmul.f32 %v1355_v37, %v4622_v21  ;;  %v1476_v32 = vmul.f32 %v1355_v37, %v4621_v6 }
 0x467   : > { %v1512_v36 = vmul.f32 %v1355_v37, %v4620_v51  ;;  %v1511_v33 = vmul.f32 %v1353_v3, %v4620_v51 }
 0x468   : > { %v1357_v38 = vpop.permute.xlu0 %1356 }
 0x469   : > { %v1359_v45 = vpop.permute.xlu1 %1358  ;;  %v1378_v9 = vmul.f32 %v1357_v38, %v4624_v50  ;;  %v1411_v63 = vmul.f32 %v1357_v38, %v4623_v28  ;;  %v1447_v27 = vmul.f32 %v1357_v38, %v4622_v21  ;;  %v1477_v37 = vmul.f32 %v1357_v38, %v4621_v6 }
 0x46a   : > { %v1379_v42 = vmul.f32 %v1359_v45, %v4619_v53  ;;  %v1412_v26 = vmul.f32 %v1359_v45, %v4618_v25  ;;  %v1448_v1 = vmul.f32 %v1359_v45, %v4617_v22  ;;  %v1478_v31 = vmul.f32 %v1359_v45, %v2679_v20 }
 0x46b   : > { %v1514_v10 = vmul.f32 %v1359_v45, %v2677_v19  ;;  %v1513_v58 = vmul.f32 %v1357_v38, %v4620_v51 }
 0x46c   : > { %v1382_v3 = vadd.f32 %v1379_v42, %v1376_v47  ;;  %v1415_v57 = vadd.f32 %v1412_v26, %v1409_v24  ;;  %v1451_v40 = vadd.f32 %v1448_v1, %v1445_v41  ;;  %v1361_v50 = vpop.permute.xlu0 %1360  ;;  %v1481_v8 = vadd.f32 %v1478_v31, %v1475_v0 }
 0x46d   : > { %v1363_v54 = vpop.permute.xlu1 %1362  ;;  %v1380_v56 = vmul.f32 %v1361_v50, %v4619_v53  ;;  %v1413_v60 = vmul.f32 %v1361_v50, %v4618_v25  ;;  %v1449_v45 = vmul.f32 %v1361_v50, %v4617_v22  ;;  %v1517_v24 = vadd.f32 %v1514_v10, %v1511_v33  ;;  %v4636_v10 = vld [vmem:[#allocation27_spill] sm:$0xff] }
 0x46e   : > { %v1381_v28 = vmul.f32 %v1363_v54, %v4619_v53  ;;  %v1414_v21 = vmul.f32 %v1363_v54, %v4618_v25  ;;  %v1450_v6 = vmul.f32 %v1363_v54, %v4617_v22  ;;  %v1480_v47 = vmul.f32 %v1363_v54, %v2679_v20 }
 0x46f   : > { %v1383_v41 = vadd.f32 %v1380_v56, %v1377_v7  ;;  %v1416_v38 = vadd.f32 %v1413_v60, %v1410_v30  ;;  %v1452_v42 = vadd.f32 %v1449_v45, %v1446_v18  ;;  %v1516_v31 = vmul.f32 %v1363_v54, %v2677_v19  ;;  %v4637_v45 = vld [vmem:[#allocation26_spill] sm:$0xff] }
 0x470   : > { %v1384_v0 = vadd.f32 %v1381_v28, %v1378_v9  ;;  %v1417_v26 = vadd.f32 %v1414_v21, %v1411_v63  ;;  %v1453_v1 = vadd.f32 %v1450_v6, %v1447_v27  ;;  %v1483_v51 = vadd.f32 %v1480_v47, %v1477_v37  ;;  %v1365_v54 = vpop.permute.xlu0 %1364 }
 0x471   : > { %v1479_v4 = vmul.f32 %v1361_v50, %v2679_v20  ;;  %v1515_v53 = vmul.f32 %v1361_v50, %v2677_v19  ;;  %v1367_v48 = vpop.permute.xlu1 %1366  ;;  %v1389_v25 = vadd.f32 %v1386_v17, %v1383_v41  ;;  %v1422_v29 = vadd.f32 %v1419_v62, %v1416_v38 }
 0x472   : > { %v1392_v22 = vmul.f32 %v1367_v48, %v2669_v16  ;;  %v1425_v33 = vmul.f32 %v1367_v48, %v2667_v15  ;;  %v1458_v56 = vadd.f32 %v3704_v52, %v1452_v42  ;;  %v1461_v6 = vmul.f32 %v1367_v48, %v4599_v39  ;;  %v4638_v42 = vld [vmem:[#allocation25_spill] sm:$0xff] }
 0x473   : > { %v1482_v60 = vadd.f32 %v1479_v4, %v1476_v32  ;;  %v1518_v28 = vadd.f32 %v1515_v53, %v1512_v36  ;;  %v1491_v21 = vmul.f32 %v1367_v48, %v4600_v11  ;;  %v1519_v7 = vadd.f32 %v1516_v31, %v1513_v58 }
 0x474   : > { %v3771_v30 = vadd.f32 %v1392_v22, %v1389_v25  ;;  %v3773_v50 = vadd.f32 %v1425_v33, %v1422_v29  ;;  %v1527_v17 = vmul.f32 %v1367_v48, %v4601_v55  ;;  %v3776_v18 = vadd.f32 %v1461_v6, %v1458_v56  ;;  %v1369_v27 = vpop.permute.xlu0 %1368 }
 0x475   : > { %v1488_v62 = vadd.f32 %v3710_v61, %v1482_v60  ;;  %v1524_v52 = vadd.f32 %v3713_v59, %v1518_v28  ;;  %v1388_v53 = vadd.f32 %v3696_v13, %v1382_v3  ;;  %v1371_v4 = vpop.permute.xlu1 %1370  ;;  %v1421_v32 = vadd.f32 %v3699_v46, %v1415_v57  ;;  %v4634_v57 = vld [vmem:[#allocation29_spill] sm:$0xff] }
 0x476   : > { %v1457_v36 = vadd.f32 %v3707_v14, %v1451_v40  ;;  %v1487_v22 = vadd.f32 %v3716_v35, %v1481_v8  ;;  %v1391_v29 = vmul.f32 %v1365_v54, %v2669_v16  ;;  %v1523_v58 = vadd.f32 %v3719_v44, %v1517_v24  ;;  %v4635_v8 = vld [vmem:[#allocation28_spill] sm:$0xff] }
 0x477   : > { %v3785_v25 = vadd.f32 %v1491_v21, %v1488_v62  ;;  %v1424_v48 = vmul.f32 %v1365_v54, %v2667_v15  ;;  %v1460_v61 = vmul.f32 %v1365_v54, %v4599_v39  ;;  %v1490_v13 = vmul.f32 %v1365_v54, %v4600_v11 }
 0x478   : > { %v1394_v59 = vadd.f32 %v1391_v29, %v1388_v53  ;;  %v1526_v9 = vmul.f32 %v1365_v54, %v4601_v55  ;;  %v1397_v46 = vmul.f32 %v1371_v4, %v4634_v57  ;;  %v1430_v35 = vmul.f32 %v1371_v4, %v4635_v8  ;;  %v1373_v29 = vpop.permute.xlu0 %1372 }
 0x479   : > { %v1427_v40 = vadd.f32 %v1424_v48, %v1421_v32  ;;  %v1463_v14 = vadd.f32 %v1460_v61, %v1457_v36  ;;  %v1466_v63 = vmul.f32 %v1371_v4, %v4636_v10  ;;  %v3795_v37 = vadd.f32 %v1527_v17, %v1524_v52  ;;  %v1375_v62 = vpop.permute.xlu1 %1374 }
 0x47a   : > { %v1493_v44 = vadd.f32 %v1490_v13, %v1487_v22  ;;  %v1400_v3 = vadd.f32 %v1397_v46, %v1394_v59  ;;  %v1496_v47 = vmul.f32 %v1371_v4, %v4637_v45  ;;  %v1529_v24 = vadd.f32 %v1526_v9, %v1523_v58 }
 0x47b   : > { %v1433_v41 = vadd.f32 %v1430_v35, %v1427_v40  ;;  %v1469_v38 = vadd.f32 %v1466_v63, %v1463_v14  ;;  %v1532_v31 = vmul.f32 %v1371_v4, %v4638_v42  ;;  %v1390_v60 = vadd.f32 %v3722_v23, %v1384_v0 }
 0x47c   : > { %v1403_v33 = vrot.slane %v1400_v3, 6  ;;  %v3799_v56 = vadd.f32 %v1496_v47, %v1493_v44  ;;  %v1393_v28 = vmul.f32 %v1369_v27, %v2669_v16  ;;  %v1423_v54 = vadd.f32 %v3725_v2, %v1417_v26 }
 0x47d   : > { %v1436_v6 = vrot.slane %v1433_v41, 7  ;;  %v3803_v21 = vadd.f32 %v1532_v31, %v1529_v24  ;;  %v1426_v17 = vmul.f32 %v1369_v27, %v2667_v15  ;;  %v1459_v4 = vadd.f32 %v3728_v5, %v1453_v1 }
 0x47e   : > { %v1502_v52 = vrot.slane %v3799_v56, 1  ;;  %v1396_v53 = vadd.f32 %v1393_v28, %v1390_v60  ;;  %v1462_v32 = vmul.f32 %v1369_v27, %v4599_v39  ;;  %v1489_v23 = vadd.f32 %v3731_v49, %v1483_v51 }
 0x47f   : > { %v1429_v36 = vadd.f32 %v1426_v17, %v1423_v54  ;;  %v1492_v0 = vmul.f32 %v1369_v27, %v4600_v11  ;;  %v1525_v22 = vadd.f32 %v3737_v43, %v1519_v7  ;;  %v1528_v2 = vmul.f32 %v1369_v27, %v4601_v55 }
 0x480   : > { %v1465_v58 = vadd.f32 %v1462_v32, %v1459_v4  ;;  %v1399_v26 = vmul.f32 %v1375_v62, %v4634_v57  ;;  %v1432_v48 = vmul.f32 %v1375_v62, %v4635_v8  ;;  %v1468_v5 = vmul.f32 %v1375_v62, %v4636_v10 }
 0x481   : > { %v1495_v61 = vadd.f32 %v1492_v0, %v1489_v23  ;;  %v1498_v1 = vmul.f32 %v1375_v62, %v4637_v45  ;;  %v1534_v59 = vmul.f32 %v1375_v62, %v4638_v42  ;;  %v1531_v51 = vadd.f32 %v1528_v2, %v1525_v22 }
 0x482   : > { %v1402_v49 = vadd.f32 %v1399_v26, %v1396_v53  ;;  %v1435_v13 = vadd.f32 %v1432_v48, %v1429_v36  ;;  %v1398_v43 = vmul.f32 %v1373_v29, %v4634_v57  ;;  %v1538_v7 = vrot.slane %v3803_v21, 2 }
 0x483   : > { %v1471_v9 = vadd.f32 %v1468_v5, %v1465_v58  ;;  %v1501_v46 = vadd.f32 %v1498_v1, %v1495_v61  ;;  %v1431_v40 = vmul.f32 %v1373_v29, %v4635_v8  ;;  %v1537_v63 = vadd.f32 %v1534_v59, %v1531_v51  ;;  %v4639_v51 = vld [vmem:[#allocation50_spill] sm:$0xff] }
 0x484   : > { %v1405_v14 = vrot.slane %v1402_v49, 6  ;;  %v1438_v35 = vrot.slane %v1435_v13, 7  ;;  %v1401_v27 = vadd.f32 %v1398_v43, %v3771_v30  ;;  %v1467_v47 = vmul.f32 %v1373_v29, %v4636_v10  ;;  %v4640_v13 = vld [vmem:[#allocation51_spill] sm:$0xff] }
 0x485   : > { %v1504_v44 = vrot.slane %v1501_v46, 1  ;;  %v1434_v3 = vadd.f32 %v1431_v40, %v3773_v50  ;;  %v1497_v24 = vmul.f32 %v1373_v29, %v4637_v45  ;;  %v1540_v56 = vrot.slane %v1537_v63, 2 }
 0x486   : > { %v1408_v41 = vsel %vm314_vm0, %v1405_v14, %v1403_v33  ;;  %v1441_v31 = vsel %vm353_vm1, %v1438_v35, %v1436_v6  ;;  %v1404_v60 = vrot.slane %v1401_v27, 6  ;;  %v1533_v53 = vmul.f32 %v1373_v29, %v4638_v42  ;;  %v4647_v27 = vld [vmem:[#allocation32_spill] sm:$0xff] }
 0x487   : > { %v1442_v28 = vadd.f32 %v1441_v31, %v1408_v41  ;;  %v1507_v21 = vsel %vm430_vm2, %v1504_v44, %v1502_v52  ;;  %v1437_v30 = vrot.slane %v1434_v3, 7  ;;  %v1500_v54 = vadd.f32 %v1497_v24, %v3785_v25  ;;  %v4648_v3 = vld [vmem:[#allocation34_spill] sm:$0xff] }
 0x488   : > { %v1543_v50 = vsel %vm472_vm3, %v1540_v56, %v1538_v7  ;;  %v1406_v17 = vsel %vm314_vm0, %v1404_v60, %v1405_v14  ;;  %v1407_v62 = vsel %vm314_vm0, %v1403_v33, %v1404_v60  ;;  %v1470_v22 = vadd.f32 %v1467_v47, %v3776_v18 }
 0x489   : > { %v1439_v4 = vsel %vm353_vm1, %v1437_v30, %v1438_v35  ;;  %v1440_v32 = vsel %vm353_vm1, %v1436_v6, %v1437_v30  ;;  %v1472_v36 = vadd.f32 %v1469_v38, %v1442_v28  ;;  %v1503_v23 = vrot.slane %v1500_v54, 1  ;;  %v4650_v28 = vld [vmem:[#allocation36_spill] sm:$0xff]  ;;  %v4651_v30 = vld [vmem:[#allocation37_spill] sm:$0xff] }
 0x48a   : > { %v1443_v25 = vadd.f32 %v1440_v32, %v1407_v62  ;;  %v1444_v0 = vadd.f32 %v1439_v4, %v1406_v17  ;;  %v1536_v58 = vadd.f32 %v1533_v53, %v3795_v37 }
 0x48b   : > { %v1505_v2 = vsel %vm430_vm2, %v1503_v23, %v1504_v44  ;;  %v1506_v33 = vsel %vm430_vm2, %v1502_v52, %v1503_v23  ;;  %v4641_v52 = vld [vmem:[#allocation49_spill] sm:$0xff] }
 0x48c   : > { %v1473_v29 = vadd.f32 %v1470_v22, %v1443_v25  ;;  %v1474_v26 = vadd.f32 %v1471_v9, %v1444_v0  ;;  %v1508_v48 = vadd.f32 %v1506_v33, %v1472_v36  ;;  %v1539_v61 = vrot.slane %v1536_v58, 2 }
 0x48e   : > { %v1509_v5 = vadd.f32 %v1505_v2, %v1473_v29  ;;  %v1510_v6 = vadd.f32 %v1507_v21, %v1474_v26  ;;  %v1541_v38 = vsel %vm472_vm3, %v1539_v61, %v1540_v56  ;;  %v1542_v18 = vsel %vm472_vm3, %v1538_v7, %v1539_v61  ;;  %v4649_v56 = vld [vmem:[#allocation35_spill] sm:$0xff] }
 0x48f   : > { %v1544_v1 = vadd.f32 %v1542_v18, %v1508_v48 }
 0x490   : > { %v1545_v37 = vadd.f32 %v1541_v38, %v1509_v5  ;;  %v1546_v59 = vadd.f32 %v1543_v50, %v1510_v6 }
 0x491   : > { %v1547_v49 = vmul.f32 %v1544_v1, %v4639_v51 }
 0x492   : > { %v1548_v43 = vmul.f32 %v1545_v37, %v4640_v13  ;;  %v1549_v46 = vmul.f32 %v1546_v59, %v4641_v52 }
 0x493   : > { %v3859_v9 = vsel %vm244_vm4, %v1547_v49, 0.0 }
 0x494   : > { %4642 = vst [vmem:[#allocation33_spill] sm:$0xff] %v3859_v9  ;;  %v3863_v14 = vsel %vm245_vm5, %v1548_v43, 0.0  ;;  %1553 = vrot.lane.b32.xlu0 %v3859_v9, %s4550_s0  ;;  %v3871_v35 = vsel %vm246_vm6, %v1549_v46, 0.0  ;;  %v3895_v44 = vmul.f32 %v3859_v9, %v4647_v27  ;;  %v3899_v47 = vmul.f32 %v3859_v9, %v4648_v3 }
 0x495   : > { %4644 = vst [vmem:[#allocation31_spill] sm:$0xff] %v3863_v14  ;;  %1555 = vrot.lane.b32.xlu1 %v3863_v14, %s4550_s0  ;;  %4646 = vst [vmem:[#allocation30_spill] sm:$0xff] %v3871_v35  ;;  %v1587_v41 = vmul.f32 %v3863_v14, %v4647_v27  ;;  %v1620_v31 = vmul.f32 %v3863_v14, %v4648_v3  ;;  %v3907_v60 = vmul.f32 %v3863_v14, %v4649_v56 }
 0x496   : > { %v3911_v21 = vmul.f32 %v3863_v14, %v4650_v28  ;;  %v3915_v54 = vmul.f32 %v3863_v14, %v4651_v30  ;;  %v3919_v50 = vmul.f32 %v3859_v9, %v4649_v56  ;;  %v3923_v17 = vmul.f32 %v3859_v9, %v4650_v28 }
 0x497   : > { %v3927_v62 = vmul.f32 %v3859_v9, %v4651_v30  ;;  %v3931_v53 = vmul.f32 %v3871_v35, %v4647_v27  ;;  %v3935_v4 = vmul.f32 %v3871_v35, %v4648_v3  ;;  %v3939_v32 = vmul.f32 %v3871_v35, %v4649_v56 }
 0x498   : > { %1557 = vrot.lane.b32.xlu0 %v3871_v35, %s4550_s0  ;;  %v3943_v36 = vmul.f32 %v3871_v35, %v4650_v28  ;;  %v3950_v58 = vmul.f32 %v3871_v35, %v4651_v30 }
 0x499   : > { %1559 = vrot.lane.b32.xlu1 %v3859_v9, %s4552_s1 }
 0x49c   : > { %1561 = vrot.lane.b32.xlu0 %v3863_v14, %s4552_s1 }
 0x49d   : > { %1563 = vrot.lane.b32.xlu1 %v3871_v35, %s4552_s1 }
 0x4a0   : > { %1565 = vrot.lane.b32.xlu0 %v3859_v9, %s4553_s2 }
 0x4a1   : > { %1567 = vrot.lane.b32.xlu1 %v3863_v14, %s4553_s2 }
 0x4a4   : > { %1569 = vrot.lane.b32.xlu0 %v3871_v35, %s4553_s2 }
 0x4a5   : > { %1571 = vrot.lane.b32.xlu1 %v3859_v9, %s4554_s13 }
 0x4a8   : > { %1573 = vrot.lane.b32.xlu0 %v3863_v14, %s4554_s13 }
 0x4a9   : > { %1575 = vrot.lane.b32.xlu1 %v3871_v35, %s4554_s13 }
 0x506   : > { %v1554_v63 = vpop.permute.xlu0 %1553 }
 0x507   : > { %v1556_v24 = vpop.permute.xlu1 %1555  ;;  %v1577_v23 = vmul.f32 %v1554_v63, %v4638_v42  ;;  %v1610_v25 = vmul.f32 %v1554_v63, %v4637_v45  ;;  %v1646_v0 = vmul.f32 %v1554_v63, %v4636_v10  ;;  %v1676_v26 = vmul.f32 %v1554_v63, %v4635_v8 }
 0x508   : > { %v1578_v2 = vmul.f32 %v1556_v24, %v4638_v42  ;;  %v1611_v33 = vmul.f32 %v1556_v24, %v4637_v45  ;;  %v1647_v29 = vmul.f32 %v1556_v24, %v4636_v10  ;;  %v1677_v61 = vmul.f32 %v1556_v24, %v4635_v8 }
 0x509   : > { %v1713_v18 = vmul.f32 %v1556_v24, %v4634_v57  ;;  %v1712_v1 = vmul.f32 %v1554_v63, %v4634_v57 }
 0x50a   : > { %v1558_v22 = vpop.permute.xlu0 %1557 }
 0x50b   : > { %v1560_v48 = vpop.permute.xlu1 %1559  ;;  %v1579_v37 = vmul.f32 %v1558_v22, %v4638_v42  ;;  %v1612_v59 = vmul.f32 %v1558_v22, %v4637_v45  ;;  %v1648_v13 = vmul.f32 %v1558_v22, %v4636_v10  ;;  %v1678_v43 = vmul.f32 %v1558_v22, %v4635_v8 }
 0x50c   : > { %v1580_v5 = vmul.f32 %v1560_v48, %v4601_v55  ;;  %v1613_v6 = vmul.f32 %v1560_v48, %v4600_v11  ;;  %v1649_v38 = vmul.f32 %v1560_v48, %v4599_v39  ;;  %v1679_v51 = vmul.f32 %v1560_v48, %v2667_v15 }
 0x50d   : > { %v1715_v49 = vmul.f32 %v1560_v48, %v2669_v16  ;;  %v1714_v46 = vmul.f32 %v1558_v22, %v4634_v57 }
 0x50e   : > { %v1562_v52 = vpop.permute.xlu0 %1561  ;;  %v1583_v9 = vadd.f32 %v1580_v5, %v1577_v23  ;;  %v1616_v42 = vadd.f32 %v1613_v6, %v1610_v25  ;;  %v1652_v45 = vadd.f32 %v1649_v38, %v1646_v0  ;;  %v1682_v56 = vadd.f32 %v1679_v51, %v1676_v26 }
 0x50f   : > { %v1564_v35 = vpop.permute.xlu1 %1563  ;;  %v1581_v24 = vmul.f32 %v1562_v52, %v4601_v55  ;;  %v1614_v63 = vmul.f32 %v1562_v52, %v4600_v11  ;;  %v1650_v14 = vmul.f32 %v1562_v52, %v4599_v39  ;;  %v1718_v30 = vadd.f32 %v1715_v49, %v1712_v1  ;;  %v4652_v1 = vld [vmem:[#allocation38_spill] sm:$0xff] }
 0x510   : > { %v1582_v27 = vmul.f32 %v1564_v35, %v4601_v55  ;;  %v1615_v48 = vmul.f32 %v1564_v35, %v4600_v11  ;;  %v1651_v10 = vmul.f32 %v1564_v35, %v4599_v39  ;;  %v1681_v22 = vmul.f32 %v1564_v35, %v2667_v15 }
 0x511   : > { %v1584_v8 = vadd.f32 %v1581_v24, %v1578_v2  ;;  %v1617_v3 = vadd.f32 %v1614_v63, %v1611_v33  ;;  %v1717_v57 = vmul.f32 %v1564_v35, %v2669_v16  ;;  %v1653_v28 = vadd.f32 %v1650_v14, %v1647_v29 }
 0x512   : > { %v1680_v7 = vmul.f32 %v1562_v52, %v2667_v15  ;;  %v1716_v23 = vmul.f32 %v1562_v52, %v2669_v16  ;;  %v1585_v5 = vadd.f32 %v1582_v27, %v1579_v37  ;;  %v1618_v33 = vadd.f32 %v1615_v48, %v1612_v59  ;;  %v1566_v63 = vpop.permute.xlu0 %1565  ;;  %v4653_v27 = vld [vmem:[#allocation39_spill] sm:$0xff] }
 0x513   : > { %v1568_v25 = vpop.permute.xlu1 %1567  ;;  %v1590_v0 = vadd.f32 %v1587_v41, %v1584_v8  ;;  %v1623_v38 = vadd.f32 %v1620_v31, %v1617_v3  ;;  %v1654_v26 = vadd.f32 %v1651_v10, %v1648_v13  ;;  %v1684_v35 = vadd.f32 %v1681_v22, %v1678_v43  ;;  %v4654_v41 = vld [vmem:[#allocation40_spill] sm:$0xff] }
 0x514   : > { %v1593_v6 = vmul.f32 %v1568_v25, %v2677_v19  ;;  %v1626_v2 = vmul.f32 %v1568_v25, %v2679_v20  ;;  %v1683_v51 = vadd.f32 %v1680_v7, %v1677_v61  ;;  %v1719_v24 = vadd.f32 %v1716_v23, %v1713_v18  ;;  %v4657_v23 = vld [vmem:[#allocation43_spill] sm:$0xff] }
 0x515   : > { %v3981_v14 = vadd.f32 %v1717_v57, %v1714_v46  ;;  %v1659_v29 = vadd.f32 %v3907_v60, %v1653_v28  ;;  %v1662_v49 = vmul.f32 %v1568_v25, %v4652_v1  ;;  %v1692_v3 = vmul.f32 %v1568_v25, %v4653_v27 }
 0x516   : > { %v3985_v52 = vadd.f32 %v1593_v6, %v1590_v0  ;;  %v3987_v8 = vadd.f32 %v1626_v2, %v1623_v38  ;;  %v1728_v31 = vmul.f32 %v1568_v25, %v4654_v41  ;;  %v1689_v10 = vadd.f32 %v3911_v21, %v1683_v51  ;;  %v4655_v21 = vld [vmem:[#allocation41_spill] sm:$0xff]  ;;  %v4658_v0 = vld [vmem:[#allocation44_spill] sm:$0xff] }
 0x517   : > { %v1572_v37 = vpop.permute.xlu1 %1571  ;;  %v1725_v7 = vadd.f32 %v3915_v54, %v1719_v24  ;;  %v1589_v57 = vadd.f32 %v3895_v44, %v1583_v9  ;;  %v1592_v61 = vmul.f32 %v1566_v63, %v2677_v19  ;;  %v1622_v60 = vadd.f32 %v3899_v47, %v1616_v42  ;;  %v4656_v44 = vld [vmem:[#allocation42_spill] sm:$0xff]  ;;  %v1570_v47 = vpop.permute.xlu0 %1569  ;;  %v4659_v24 = vld [vmem:[#allocation45_spill] sm:$0xff] }
 0x518   : > { %v1658_v28 = vadd.f32 %v3919_v50, %v1652_v45  ;;  %v1625_v18 = vmul.f32 %v1566_v63, %v2679_v20  ;;  %v1661_v59 = vmul.f32 %v1566_v63, %v4652_v1  ;;  %v1691_v43 = vmul.f32 %v1566_v63, %v4653_v27 }
 0x519   : > { %v1595_v13 = vadd.f32 %v1592_v61, %v1589_v57  ;;  %v1727_v46 = vmul.f32 %v1566_v63, %v4654_v41  ;;  %v1598_v48 = vmul.f32 %v1572_v37, %v4655_v21  ;;  %v1688_v54 = vadd.f32 %v3923_v17, %v1682_v56 }
 0x51a   : > { %v1628_v9 = vadd.f32 %v1625_v18, %v1622_v60  ;;  %v1631_v22 = vmul.f32 %v1572_v37, %v4656_v44  ;;  %v1667_v42 = vmul.f32 %v1572_v37, %v4657_v23  ;;  %v4005_v45 = vadd.f32 %v1662_v49, %v1659_v29 }
 0x51b   : > { %v1724_v50 = vadd.f32 %v3927_v62, %v1718_v30  ;;  %v1601_v25 = vadd.f32 %v1598_v48, %v1595_v13  ;;  %v1697_v6 = vmul.f32 %v1572_v37, %v4658_v0  ;;  %v1664_v38 = vadd.f32 %v1661_v59, %v1658_v28  ;;  %v1576_v62 = vpop.permute.xlu1 %1575 }
 0x51c   : > { %v1694_v2 = vadd.f32 %v1691_v43, %v1688_v54  ;;  %v1634_v51 = vadd.f32 %v1631_v22, %v1628_v9  ;;  %v1733_v63 = vmul.f32 %v1572_v37, %v4659_v24  ;;  %v1695_v57 = vadd.f32 %v1692_v3, %v1689_v10 }
 0x51d   : > { %v1731_v56 = vadd.f32 %v1728_v31, %v1725_v7  ;;  %v1730_v17 = vadd.f32 %v1727_v46, %v1724_v50  ;;  %v1594_v61 = vmul.f32 %v1570_v47, %v2677_v19  ;;  %v1670_v60 = vadd.f32 %v1667_v42, %v1664_v38  ;;  %v1574_v7 = vpop.permute.xlu0 %1573 }
 0x51e   : > { %v4011_v18 = vadd.f32 %v1697_v6, %v1694_v2  ;;  %v1591_v29 = vadd.f32 %v3931_v53, %v1585_v5  ;;  %v1627_v30 = vmul.f32 %v1570_v47, %v2679_v20  ;;  %v1604_v49 = vrot.slane %v1601_v25, 6 }
 0x51f   : > { %v1637_v13 = vrot.slane %v1634_v51, 7  ;;  %v4015_v28 = vadd.f32 %v1733_v63, %v1730_v17  ;;  %v1624_v59 = vadd.f32 %v3935_v4, %v1618_v33  ;;  %v1660_v3 = vadd.f32 %v3939_v32, %v1654_v26 }
 0x520   : > { %v1597_v37 = vadd.f32 %v1594_v61, %v1591_v29  ;;  %v1663_v31 = vmul.f32 %v1570_v47, %v4652_v1  ;;  %v1693_v10 = vmul.f32 %v1570_v47, %v4653_v27  ;;  %v1690_v53 = vadd.f32 %v3943_v36, %v1684_v35 }
 0x521   : > { %v1630_v43 = vadd.f32 %v1627_v30, %v1624_v59  ;;  %v1600_v5 = vmul.f32 %v1576_v62, %v4655_v21  ;;  %v1633_v46 = vmul.f32 %v1576_v62, %v4656_v44  ;;  %v1703_v48 = vrot.slane %v4011_v18, 1 }
 0x522   : > { %v1729_v54 = vmul.f32 %v1570_v47, %v4654_v41  ;;  %v1669_v4 = vmul.f32 %v1576_v62, %v4657_v23  ;;  %v1699_v32 = vmul.f32 %v1576_v62, %v4658_v0  ;;  %v1696_v33 = vadd.f32 %v1693_v10, %v1690_v53 }
 0x523   : > { %v1603_v26 = vadd.f32 %v1600_v5, %v1597_v37  ;;  %v1636_v9 = vadd.f32 %v1633_v46, %v1630_v43  ;;  %v1599_v22 = vmul.f32 %v1574_v7, %v4655_v21  ;;  %v1666_v42 = vadd.f32 %v1663_v31, %v1660_v3 }
 0x524   : > { %v1726_v36 = vadd.f32 %v3950_v58, %v3981_v14  ;;  %v1735_v35 = vmul.f32 %v1576_v62, %v4659_v24  ;;  %v1632_v50 = vmul.f32 %v1574_v7, %v4656_v44  ;;  %v1702_v47 = vadd.f32 %v1699_v32, %v1696_v33 }
 0x525   : > { %v1606_v25 = vrot.slane %v1603_v26, 6  ;;  %v1639_v6 = vrot.slane %v1636_v9, 7  ;;  %v1602_v38 = vadd.f32 %v1599_v22, %v3985_v52  ;;  %v1672_v51 = vadd.f32 %v1669_v4, %v1666_v42 }
 0x526   : > { %v1732_v2 = vadd.f32 %v1729_v54, %v1726_v36  ;;  %v1635_v63 = vadd.f32 %v1632_v50, %v3987_v8  ;;  %v1698_v17 = vmul.f32 %v1574_v7, %v4658_v0  ;;  %v1668_v18 = vmul.f32 %v1574_v7, %v4657_v23 }
 0x527   : > { %v1609_v61 = vsel %vm314_vm0, %v1606_v25, %v1604_v49  ;;  %v1642_v58 = vsel %vm353_vm1, %v1639_v6, %v1637_v13  ;;  %v1605_v14 = vrot.slane %v1602_v38, 6  ;;  %v1705_v52 = vrot.slane %v1702_v47, 1 }
 0x528   : > { %v1643_v29 = vadd.f32 %v1642_v58, %v1609_v61  ;;  %v1738_v30 = vadd.f32 %v1735_v35, %v1732_v2  ;;  %v1638_v62 = vrot.slane %v1635_v63, 7  ;;  %v1701_v59 = vadd.f32 %v1698_v17, %v1695_v57 }
 0x529   : > { %v1607_v37 = vsel %vm314_vm0, %v1605_v14, %v1606_v25  ;;  %v1608_v8 = vsel %vm314_vm0, %v1604_v49, %v1605_v14  ;;  %v1734_v3 = vmul.f32 %v1574_v7, %v4659_v24  ;;  %v1671_v57 = vadd.f32 %v1668_v18, %v4005_v45 }
 0x52a   : > { %v1640_v31 = vsel %vm353_vm1, %v1638_v62, %v1639_v6  ;;  %v1641_v10 = vsel %vm353_vm1, %v1637_v13, %v1638_v62  ;;  %v1673_v43 = vadd.f32 %v1670_v60, %v1643_v29  ;;  %v1704_v53 = vrot.slane %v1701_v59, 1 }
 0x52b   : > { %v1644_v5 = vadd.f32 %v1641_v10, %v1608_v8  ;;  %v1645_v46 = vadd.f32 %v1640_v31, %v1607_v37  ;;  %v1737_v54 = vadd.f32 %v1734_v3, %v1731_v56  ;;  %v1739_v4 = vrot.slane %v4015_v28, 2  ;;  %v4660_v3 = vld [vmem:[#allocation46_spill] sm:$0xff] }
 0x52c   : > { %v1741_v32 = vrot.slane %v1738_v30, 2  ;;  %v1707_v49 = vsel %vm430_vm2, %v1703_v48, %v1704_v53  ;;  %v1708_v13 = vsel %vm430_vm2, %v1705_v52, %v1703_v48  ;;  %v1706_v60 = vsel %vm430_vm2, %v1704_v53, %v1705_v52 }
 0x52d   : > { %v1674_v7 = vadd.f32 %v1671_v57, %v1644_v5  ;;  %v1675_v33 = vadd.f32 %v1672_v51, %v1645_v46  ;;  %v1709_v26 = vadd.f32 %v1707_v49, %v1673_v43  ;;  %v1740_v9 = vrot.slane %v1737_v54, 2  ;;  %v4661_v43 = vld [vmem:[#allocation47_spill] sm:$0xff]  ;;  %v4662_v46 = vld [vmem:[#allocation48_spill] sm:$0xff]  ;;  %v4664_v49 = vld [vmem:[#allocation37_spill] sm:$0xff] }
 0x52e   : > { %v1744_v56 = vsel %vm472_vm3, %v1741_v32, %v1739_v4 }
 0x52f   : > { %v1710_v22 = vadd.f32 %v1706_v60, %v1674_v7  ;;  %v1711_v42 = vadd.f32 %v1708_v13, %v1675_v33  ;;  %v1743_v45 = vsel %vm472_vm3, %v1739_v4, %v1740_v9  ;;  %v1742_v28 = vsel %vm472_vm3, %v1740_v9, %v1741_v32  ;;  %v4666_v13 = vld [vmem:[#allocation35_spill] sm:$0xff] }
 0x530   : > { %v1745_v36 = vadd.f32 %v1743_v45, %v1709_v26  ;;  %v4665_v26 = vld [vmem:[#allocation36_spill] sm:$0xff] }
 0x531   : > { %v1746_v35 = vadd.f32 %v1742_v28, %v1710_v22  ;;  %v1747_v50 = vadd.f32 %v1744_v56, %v1711_v42  ;;  %v4667_v22 = vld [vmem:[#allocation34_spill] sm:$0xff]  ;;  %v4668_v45 = vld [vmem:[#allocation32_spill] sm:$0xff] }
 0x532   : > { %2232 = vrcp.f32 %v1745_v36 }
 0x533   : > { %2234 = vrcp.f32 %v1746_v35 }
 0x534   : > { %2236 = vrcp.f32 %v1747_v50 }
 0x53c   : > { %v2233_v48 = vpop.eup %2232 }
 0x53d   : > { %v2235_v25 = vpop.eup %2234  ;;  %v1751_v6 = vmul.f32 %v2233_v48, %v1745_v36 }
 0x53e   : > { %v2237_v47 = vpop.eup %2236  ;;  %v1752_v38 = vmul.f32 %v2235_v25, %v1746_v35 }
 0x53f   : > { %v1753_v2 = vmul.f32 %v2237_v47, %v1747_v50  ;;  %v1754_v51 = vsub.f32 2.0, %v1751_v6 }
 0x540   : > { %v1755_v63 = vsub.f32 2.0, %v1752_v38 }
 0x541   : > { %v1756_v17 = vsub.f32 2.0, %v1753_v2  ;;  %v1757_v61 = vmul.f32 %v2233_v48, %v1754_v51 }
 0x542   : > { %v1758_v58 = vmul.f32 %v2235_v25, %v1755_v63 }
 0x543   : > { %v1760_v14 = vmul.f32 %v1757_v61, %v1745_v36  ;;  %v1759_v18 = vmul.f32 %v2237_v47, %v1756_v17 }
 0x544   : > { %v1761_v29 = vmul.f32 %v1758_v58, %v1746_v35 }
 0x545   : > { %v1763_v30 = vsub.f32 2.0, %v1760_v14  ;;  %v1762_v62 = vmul.f32 %v1759_v18, %v1747_v50 }
 0x546   : > { %v1764_v59 = vsub.f32 2.0, %v1761_v29 }
 0x547   : > { %v1766_v52 = vmul.f32 %v1763_v30, %v1757_v61  ;;  %v1765_v37 = vsub.f32 2.0, %v1762_v62 }
 0x548   : > { %v1767_v8 = vmul.f32 %v1764_v59, %v1758_v58 }
 0x549   : > { %v1769_v31 = vmul.f32 %v4660_v3, %v1766_v52  ;;  %v1768_v10 = vmul.f32 %v1765_v37, %v1759_v18 }
 0x54a   : > { %v1770_v53 = vmul.f32 %v4661_v43, %v1767_v8 }
 0x54b   : > { %v1772_v5 = vsel %vm244_vm4, %v1769_v31, 0.0  ;;  %v1771_v57 = vmul.f32 %v4662_v46, %v1768_v10 }
 0x54c   : > { %v1773_v54 = vsel %vm245_vm5, %v1770_v53, 0.0  ;;  %1775 = vrot.lane.b32.xlu0 %v1772_v5, %s4550_s0  ;;  %v4086_v7 = vmul.f32 %v1772_v5, %v4664_v49  ;;  %v4089_v9 = vmul.f32 %v1772_v5, %v4665_v26  ;;  %v4092_v60 = vmul.f32 %v1772_v5, %v4666_v13 }
 0x54d   : > { %1777 = vrot.lane.b32.xlu1 %v1773_v54, %s4550_s0  ;;  %v1774_v32 = vsel %vm246_vm6, %v1771_v57, 0.0  ;;  %v4095_v42 = vmul.f32 %v1772_v5, %v4667_v22  ;;  %v4098_v56 = vmul.f32 %v1772_v5, %v4668_v45  ;;  %v4110_v48 = vmul.f32 %v1773_v54, %v4664_v49 }
 0x54e   : > { %v4101_v36 = vmul.f32 %v1774_v32, %v4664_v49  ;;  %v4104_v35 = vmul.f32 %v1774_v32, %v4665_v26  ;;  %v4107_v50 = vmul.f32 %v1774_v32, %v4666_v13  ;;  %v4113_v25 = vmul.f32 %v1774_v32, %v4667_v22 }
 0x54f   : > { %v4116_v6 = vmul.f32 %v1774_v32, %v4668_v45  ;;  %v4119_v47 = vmul.f32 %v1773_v54, %v4665_v26  ;;  %v4122_v38 = vmul.f32 %v1773_v54, %v4666_v13  ;;  %v4127_v63 = vmul.f32 %v1773_v54, %v4667_v22 }
 0x550   : > { %1779 = vrot.lane.b32.xlu0 %v1774_v32, %s4550_s0  ;;  %v4130_v17 = vmul.f32 %v1773_v54, %v4668_v45 }
 0x551   : > { %1781 = vrot.lane.b32.xlu1 %v1772_v5, %s4552_s1 }
 0x554   : > { %1783 = vrot.lane.b32.xlu0 %v1773_v54, %s4552_s1 }
 0x555   : > { %1785 = vrot.lane.b32.xlu1 %v1774_v32, %s4552_s1 }
 0x558   : > { %1787 = vrot.lane.b32.xlu0 %v1772_v5, %s4553_s2 }
 0x559   : > { %1789 = vrot.lane.b32.xlu1 %v1773_v54, %s4553_s2 }
 0x55c   : > { %1791 = vrot.lane.b32.xlu0 %v1774_v32, %s4553_s2 }
 0x55d   : > { %1793 = vrot.lane.b32.xlu1 %v1772_v5, %s4554_s13 }
 0x560   : > { %1795 = vrot.lane.b32.xlu0 %v1773_v54, %s4554_s13 }
 0x561   : > { %1797 = vrot.lane.b32.xlu1 %v1774_v32, %s4554_s13 }
 0x5be   : > { %v1776_v33 = vpop.permute.xlu0 %1775 }
 0x5bf   : > { %v1778_v28 = vpop.permute.xlu1 %1777  ;;  %v1799_v2 = vmul.f32 %v1776_v33, %v4659_v24  ;;  %v1832_v51 = vmul.f32 %v1776_v33, %v4658_v0  ;;  %v1868_v14 = vmul.f32 %v1776_v33, %v4657_v23  ;;  %v1898_v18 = vmul.f32 %v1776_v33, %v4656_v44 }
 0x5c0   : > { %v1800_v61 = vmul.f32 %v1778_v28, %v4659_v24  ;;  %v1833_v58 = vmul.f32 %v1778_v28, %v4658_v0  ;;  %v1869_v30 = vmul.f32 %v1778_v28, %v4657_v23  ;;  %v1899_v62 = vmul.f32 %v1778_v28, %v4656_v44 }
 0x5c1   : > { %v1935_v59 = vmul.f32 %v1778_v28, %v4655_v21  ;;  %v1934_v52 = vmul.f32 %v1776_v33, %v4655_v21 }
 0x5c2   : > { %v1780_v29 = vpop.permute.xlu0 %1779 }
 0x5c3   : > { %v1782_v37 = vpop.permute.xlu1 %1781  ;;  %v1801_v10 = vmul.f32 %v1780_v29, %v4659_v24  ;;  %v1834_v5 = vmul.f32 %v1780_v29, %v4658_v0  ;;  %v1870_v46 = vmul.f32 %v1780_v29, %v4657_v23  ;;  %v1900_v32 = vmul.f32 %v1780_v29, %v4656_v44 }
 0x5c4   : > { %v1802_v8 = vmul.f32 %v1782_v37, %v4654_v41  ;;  %v1835_v3 = vmul.f32 %v1782_v37, %v4653_v27  ;;  %v1871_v31 = vmul.f32 %v1782_v37, %v4652_v1  ;;  %v1901_v43 = vmul.f32 %v1782_v37, %v2679_v20 }
 0x5c5   : > { %v1937_v53 = vmul.f32 %v1782_v37, %v2677_v19  ;;  %v1936_v49 = vmul.f32 %v1780_v29, %v4655_v21 }
 0x5c6   : > { %v1805_v57 = vadd.f32 %v1802_v8, %v1799_v2  ;;  %v1838_v54 = vadd.f32 %v1835_v3, %v1832_v51  ;;  %v1784_v33 = vpop.permute.xlu0 %1783  ;;  %v1874_v26 = vadd.f32 %v1871_v31, %v1868_v14  ;;  %v1904_v44 = vadd.f32 %v1901_v43, %v1898_v18 }
 0x5c7   : > { %v1786_v13 = vpop.permute.xlu1 %1785  ;;  %v1803_v22 = vmul.f32 %v1784_v33, %v4654_v41  ;;  %v1836_v24 = vmul.f32 %v1784_v33, %v4653_v27  ;;  %v1872_v45 = vmul.f32 %v1784_v33, %v4652_v1  ;;  %v1940_v51 = vadd.f32 %v1937_v53, %v1934_v52 }
 0x5c8   : > { %v1804_v28 = vmul.f32 %v1786_v13, %v4654_v41  ;;  %v1837_v0 = vmul.f32 %v1786_v13, %v4653_v27  ;;  %v1873_v23 = vmul.f32 %v1786_v13, %v4652_v1  ;;  %v1903_v2 = vmul.f32 %v1786_v13, %v2679_v20 }
 0x5c9   : > { %v1939_v21 = vmul.f32 %v1786_v13, %v2677_v19  ;;  %v4158_v14 = vadd.f32 %v1803_v22, %v1800_v61  ;;  %v4160_v8 = vadd.f32 %v1836_v24, %v1833_v58  ;;  %v4162_v3 = vadd.f32 %v1872_v45, %v1869_v30  ;;  %v4670_v13 = vld [vmem:[#allocation29_spill] sm:$0xff] }
 0x5ca   : > { %v1807_v29 = vadd.f32 %v1804_v28, %v1801_v10  ;;  %v1840_v37 = vadd.f32 %v1837_v0, %v1834_v5  ;;  %v1788_v31 = vpop.permute.xlu0 %1787  ;;  %v1876_v41 = vadd.f32 %v1873_v23, %v1870_v46  ;;  %v1906_v4 = vadd.f32 %v1903_v2, %v1900_v32  ;;  %v4673_v2 = vld [vmem:[#allocation26_spill] sm:$0xff] }
 0x5cb   : > { %v1942_v27 = vadd.f32 %v1939_v21, %v1936_v49  ;;  %v1902_v1 = vmul.f32 %v1784_v33, %v2679_v20  ;;  %v1790_v40 = vpop.permute.xlu1 %1789  ;;  %v1938_v18 = vmul.f32 %v1784_v33, %v2677_v19  ;;  %v1811_v58 = vadd.f32 %v4086_v7, %v1805_v57 }
 0x5cc   : > { %v4167_v52 = vmul.f32 %v1790_v40, %v2669_v16  ;;  %v4170_v61 = vmul.f32 %v1790_v40, %v2667_v15  ;;  %v4176_v30 = vmul.f32 %v1790_v40, %v4599_v39  ;;  %v4179_v43 = vmul.f32 %v1790_v40, %v4600_v11 }
 0x5cd   : > { %v4173_v10 = vadd.f32 %v1902_v1, %v1899_v62  ;;  %v1844_v20 = vadd.f32 %v4089_v9, %v1838_v54  ;;  %v1880_v19 = vadd.f32 %v4092_v60, %v1874_v26  ;;  %v1910_v53 = vadd.f32 %v4095_v42, %v1904_v44  ;;  %v4671_v54 = vld [vmem:[#allocation28_spill] sm:$0xff]  ;;  %v4672_v26 = vld [vmem:[#allocation27_spill] sm:$0xff] }
 0x5ce   : > { %4669 = vst [vmem:[#allocation23_spill] sm:$0xff] %v4179_v43  ;;  %v1946_v5 = vadd.f32 %v4098_v56, %v1940_v51  ;;  %v1814_v46 = vmul.f32 %v1788_v31, %v2669_v16  ;;  %v1847_v7 = vmul.f32 %v1788_v31, %v2667_v15  ;;  %v1883_v62 = vmul.f32 %v1788_v31, %v4599_v39  ;;  %v1792_v22 = vpop.permute.xlu0 %1791  ;;  %v4674_v51 = vld [vmem:[#allocation25_spill] sm:$0xff] }
 0x5cf   : > { %v1913_v57 = vmul.f32 %v1788_v31, %v4600_v11  ;;  %v1949_v32 = vmul.f32 %v1788_v31, %v4601_v55  ;;  %v1794_v49 = vpop.permute.xlu1 %1793  ;;  %v1941_v56 = vadd.f32 %v1938_v18, %v1935_v59  ;;  %v1950_v31 = vmul.f32 %v1790_v40, %v4601_v55 }
 0x5d0   : > { %v1817_v33 = vadd.f32 %v1814_v46, %v1811_v58  ;;  %v1820_v9 = vmul.f32 %v1794_v49, %v4670_v13  ;;  %v1853_v60 = vmul.f32 %v1794_v49, %v4671_v54  ;;  %v1889_v42 = vmul.f32 %v1794_v49, %v4672_v26 }
 0x5d1   : > { %v1850_v24 = vadd.f32 %v1847_v7, %v1844_v20  ;;  %v1886_v45 = vadd.f32 %v1883_v62, %v1880_v19  ;;  %v1916_v28 = vadd.f32 %v1913_v57, %v1910_v53  ;;  %v1952_v0 = vadd.f32 %v1949_v32, %v1946_v5 }
 0x5d2   : > { %v4193_v23 = vadd.f32 %v1820_v9, %v1817_v33  ;;  %v1919_v44 = vmul.f32 %v1794_v49, %v4673_v2  ;;  %v1955_v21 = vmul.f32 %v1794_v49, %v4674_v51  ;;  %v1816_v46 = vmul.f32 %v1792_v22, %v2669_v16 }
 0x5d3   : > { %v4198_v1 = vadd.f32 %v1853_v60, %v1850_v24  ;;  %v1892_v58 = vadd.f32 %v1889_v42, %v1886_v45  ;;  %v1798_v34 = vpop.permute.xlu1 %1797  ;;  %v1849_v18 = vmul.f32 %v1792_v22, %v2667_v15  ;;  %v1885_v20 = vmul.f32 %v1792_v22, %v4599_v39 }
 0x5d4   : > { %v4201_v43 = vadd.f32 %v1919_v44, %v1916_v28  ;;  %v4203_v59 = vadd.f32 %v1955_v21, %v1952_v0  ;;  %v1826_v19 = vrot.slane %v4193_v23, 6  ;;  %v1915_v53 = vmul.f32 %v1792_v22, %v4600_v11 }
 0x5d5   : > { %v1813_v40 = vadd.f32 %v4101_v36, %v1807_v29  ;;  %v1822_v5 = vmul.f32 %v1798_v34, %v4670_v13  ;;  %v1859_v7 = vrot.slane %v4198_v1, 7  ;;  %v1951_v16 = vmul.f32 %v1792_v22, %v4601_v55  ;;  %v4675_v21 = vld [vmem:[#allocation23_spill] sm:$0xff] }
 0x5d6   : > { %v1846_v62 = vadd.f32 %v4104_v35, %v1840_v37  ;;  %v1855_v57 = vmul.f32 %v1798_v34, %v4671_v54  ;;  %v1925_v15 = vrot.slane %v4201_v43, 1  ;;  %v1961_v39 = vrot.slane %v4203_v59, 2 }
 0x5d7   : > { %v1819_v32 = vadd.f32 %v1816_v46, %v1813_v40  ;;  %v1912_v49 = vadd.f32 %v4113_v25, %v1906_v4  ;;  %v1921_v36 = vmul.f32 %v1798_v34, %v4673_v2  ;;  %v1948_v29 = vadd.f32 %v4116_v6, %v1942_v27  ;;  %v1796_v27 = vpop.permute.xlu0 %1795 }
 0x5d8   : > { %v1852_v11 = vadd.f32 %v1849_v18, %v1846_v62  ;;  %v1957_v33 = vmul.f32 %v1798_v34, %v4674_v51  ;;  %v1882_v55 = vadd.f32 %v4107_v50, %v1876_v41  ;;  %v1812_v37 = vadd.f32 %v4110_v48, %v4158_v14 }
 0x5d9   : > { %v1825_v9 = vadd.f32 %v1822_v5, %v1819_v32  ;;  %v1918_v35 = vadd.f32 %v1915_v53, %v1912_v49  ;;  %v1891_v42 = vmul.f32 %v1798_v34, %v4672_v26  ;;  %v1954_v22 = vadd.f32 %v1951_v16, %v1948_v29 }
 0x5da   : > { %v1858_v60 = vadd.f32 %v1855_v57, %v1852_v11  ;;  %v1845_v4 = vadd.f32 %v4119_v47, %v4160_v8  ;;  %v1888_v24 = vadd.f32 %v1885_v20, %v1882_v55  ;;  %v1881_v6 = vadd.f32 %v4122_v38, %v4162_v3 }
 0x5db   : > { %v1828_v25 = vrot.slane %v1825_v9, 6  ;;  %v1924_v45 = vadd.f32 %v1921_v36, %v1918_v35  ;;  %v1960_v50 = vadd.f32 %v1957_v33, %v1954_v22  ;;  %v1818_v41 = vadd.f32 %v4167_v52, %v1812_v37  ;;  %v4677_v22 = vld [vmem:[#allocation31_spill] sm:$0xff] }
 0x5dc   : > { %v1861_v28 = vrot.slane %v1858_v60, 7  ;;  %v1851_v48 = vadd.f32 %v4170_v61, %v1845_v4  ;;  %v1911_v47 = vadd.f32 %v4127_v63, %v4173_v10  ;;  %v1947_v8 = vadd.f32 %v4130_v17, %v1941_v56  ;;  %v4678_v4 = vld [vmem:[#allocation30_spill] sm:$0xff] }
 0x5dd   : > { %v1831_v34 = vsel %vm314_vm0, %v1828_v25, %v1826_v19  ;;  %v1927_v14 = vrot.slane %v1924_v45, 1  ;;  %v1963_v38 = vrot.slane %v1960_v50, 2  ;;  %v1821_v3 = vmul.f32 %v1796_v27, %v4670_v13 }
 0x5de   : > { %v1864_v0 = vsel %vm353_vm1, %v1861_v28, %v1859_v7  ;;  %v1854_v23 = vmul.f32 %v1796_v27, %v4671_v54  ;;  %v1887_v44 = vadd.f32 %v4176_v30, %v1881_v6  ;;  %v1917_v63 = vadd.f32 %v4675_v21, %v1911_v47 }
 0x5df   : > { %v1865_v52 = vadd.f32 %v1864_v0, %v1831_v34  ;;  %v1930_v61 = vsel %vm430_vm2, %v1927_v14, %v1925_v15  ;;  %v1966_v17 = vsel %vm472_vm3, %v1963_v38, %v1961_v39  ;;  %v1824_v10 = vadd.f32 %v1821_v3, %v1818_v41 }
 0x5e0   : > { %v1857_v56 = vadd.f32 %v1854_v23, %v1851_v48  ;;  %v1890_v13 = vmul.f32 %v1796_v27, %v4672_v26  ;;  %v1953_v54 = vadd.f32 %v1950_v31, %v1947_v8  ;;  %v1920_v46 = vmul.f32 %v1796_v27, %v4673_v2 }
 0x5e1   : > { %v1895_v1 = vadd.f32 %v1892_v58, %v1865_v52  ;;  %v1956_v18 = vmul.f32 %v1796_v27, %v4674_v51  ;;  %v1827_v20 = vrot.slane %v1824_v10, 6  ;;  %v1894_v30 = vadd.f32 %v1891_v42, %v1888_v24  ;;  %v4676_v42 = vld [vmem:[#allocation33_spill] sm:$0xff] }
 0x5e2   : > { %v1860_v53 = vrot.slane %v1857_v56, 7  ;;  %v1893_v40 = vadd.f32 %v1890_v13, %v1887_v44  ;;  %v1923_v5 = vadd.f32 %v1920_v46, %v1917_v63 }
 0x5e3   : > { %v1959_v16 = vadd.f32 %v1956_v18, %v1953_v54  ;;  %v1829_v62 = vsel %vm314_vm0, %v1827_v20, %v1828_v25  ;;  %v1830_v57 = vsel %vm314_vm0, %v1826_v19, %v1827_v20 }
 0x5e4   : > { %v1862_v26 = vsel %vm353_vm1, %v1860_v53, %v1861_v28  ;;  %v1863_v2 = vsel %vm353_vm1, %v1859_v7, %v1860_v53  ;;  %v1926_v58 = vrot.slane %v1923_v5, 1 }
 0x5e5   : > { %v1866_v31 = vadd.f32 %v1863_v2, %v1830_v57  ;;  %v1867_v51 = vadd.f32 %v1862_v26, %v1829_v62  ;;  %v1962_v32 = vrot.slane %v1959_v16, 2 }
 0x5e6   : > { %v1928_v36 = vsel %vm430_vm2, %v1926_v58, %v1927_v14  ;;  %v1929_v19 = vsel %vm430_vm2, %v1925_v15, %v1926_v58 }
 0x5e7   : > { %v1896_v49 = vadd.f32 %v1893_v40, %v1866_v31  ;;  %v1897_v11 = vadd.f32 %v1894_v30, %v1867_v51  ;;  %v1931_v29 = vadd.f32 %v1929_v19, %v1895_v1  ;;  %v1964_v7 = vsel %vm472_vm3, %v1962_v32, %v1963_v38 }
 0x5e8   : > { %v1965_v33 = vsel %vm472_vm3, %v1961_v39, %v1962_v32 }
 0x5e9   : > { %v1932_v9 = vadd.f32 %v1928_v36, %v1896_v49  ;;  %v1933_v55 = vadd.f32 %v1930_v61, %v1897_v11  ;;  %v1967_v35 = vadd.f32 %v1965_v33, %v1931_v29 }
 0x5eb   : > { %v1968_v37 = vadd.f32 %v1964_v7, %v1932_v9  ;;  %v1969_v60 = vadd.f32 %v1966_v17, %v1933_v55  ;;  %v1970_v43 = vmul.f32 %v1967_v35, %v4676_v42 }
 0x5ed   : > { %v1971_v15 = vmul.f32 %v1968_v37, %v4677_v22  ;;  %v1972_v25 = vmul.f32 %v1969_v60, %v4678_v4  ;;  %v1973_v12 = vsel %vm244_vm4, %v1970_v43, 0.0 }
 0x5ee   : > { %v2129_v27 = vclamps-f32 %v1973_v12, 1.0 }
 0x5ef   : > { %v1974_v24 = vsel %vm245_vm5, %v1971_v15, 0.0  ;;  %v1975_v6 = vsel %vm246_vm6, %v1972_v25, 0.0 }
 0x5f0   : > { %v2130_v28 = vclamps-f32 %v1974_v24, 1.0  ;;  %v2131_v50 = vclamps-f32 %v1975_v6, 1.0  ;;  %1982 = vst [vmem:[%s215_s21] sm:$0xff] %v2129_v27 }
 0x5f2   : > { %1983 = vst [vmem:[%s215_s21 + $0x8] sm:$0xff] %v2130_v28  ;;  %1984 = vst [vmem:[%s215_s21 + $0x10] sm:$0xff] %v2131_v50 }
 0x5f3   : > { %2325 = shalt.err (!%p2322_p7)
}
 0x5f4   : > { %s2326_s11 = scalar_lea.hbm %s4288_s10, 384  ;;  %s2330_s30 = scalar_lea.hbm %s4336_s3, 1152 }
 0x5f5   : > { %p2327_p11 = scmp.ne.s32.totalorder %s4288_s10, %s2326_s11  ;;  %p2331_p2 = scmp.lt.u32.totalorder %s4288_s10, %s4336_s3 }
 0x5f6   : > { %p2332_p3 = scmp.lt.u32.totalorder %s2330_s30, %s2326_s11  ;;  %p2334_p8 = scmp.lt.u32.totalorder %s2326_s11, %s4288_s10 }
 0x5f7   : > { %p2328_p13 = pnand %p2327_p11, %p4683_p9 }
 0x5f8   : > { %p2333_p6 = por %p2332_p3, %p2331_p2 }
 0x5f9   : > { %p2329_p1 = pneg %p2328_p13 }
 0x5fa   : > { %p2335_p5 = por %p2334_p8, %p2333_p6 }
 0x5fc   : > { %p2336_p10 = pnand %p2335_p5, %p2329_p1 }
 0x5fe   : > { %2339 = shalt.err (!%p2336_p10)
}
 0x5ff   : > { %s2398_s4 = smov 128   ;;  %s2399_s5 = smov 8  }
 0x600   : > { %2149 = dma.vmem_to_hbm [thread:$0]  (%p4683_p9), %s4290_s24, 384, %s4288_s10, %s1986_s6, %s2398_s4, %s2398_s4, %s2399_s5  }
 0x601 PF: > { %s4684_s9 = sld [smem:[#allocation18_spill]]  ;;  %p2171_p4 = scmp.ge.s32.totalorder %s2386_s15, 2 }
 0x602   : > { %s2014_s8 = sand.u32 1, %s2374_s12  }
 0x603   : > { %s2015_s0 = scalar_lea.sflag [#allocation4], %s2014_s8 }
 0x607   : > { %p4685_p12 = scmp.ne.s32.totalorder %s4684_s9, 0 }
 0x609   : > { %p2163_p0 = pnand %p2171_p4, %p4685_p12 }
 0x60b   : > { %2369 = dma.done.wait (!%p2163_p0), %s2015_s0, 384  }
 0x60c   : > { %2371 = vsyncadd (!%p2163_p0), %s2015_s0, 4294966912  ;;  %s4686_s15 = sld [smem:[#allocation16_spill]]  ;;  %s4687_s12 = sld [smem:[#allocation14_spill]] }
 0x60d   : > { %s4688_s13 = sld [smem:[#allocation15_spill]]  ;;  %s4689_s14 = sld [smem:[#allocation17_spill]] }
 0x612   : > { %p18_p7 = scmp.ge.s32.totalorder %s4686_s15, 5  }
 0x614   :  { %20 = sbr.rel (!%p18_p7) target bundleno = 11 (0xb), region = 87 }
 0x61b   :  { %2020 = vsyncpa [#allocation3], 1 }
 0x61c   :  { %2022 = vsyncpa [#allocation3 + $0x1], 1 }
 0x61d   :  { %2023 = vsyncpa [#allocation8], 1 }
 0x61e   :  { %2025 = vsyncpa [#allocation8 + $0x1], 1 }
 0x61f   :  { %2026 = vsyncpa [#allocation4], 1 }
 0x620   :  { %2028 = vsyncpa [#allocation4 + $0x1], 1 }
 0x621   :  { %2029 = vsyncpa [#allocation5], 1 }
 0x622   :  { %2031 = vsyncpa [#allocation5 + $0x1], 1 }

</bundles_post_ra>
